<compile_context>
chip_gen: v6e
topology: v6e:2x2x1
jax: 0.10.0
libtpu: 0.0.40
codegen_flags: <defaults>
</compile_context>

<pallas_src>
import functools

import jax
import jax.numpy as jnp
from jax import lax
from jax.experimental import pallas as pl
from jax.experimental.pallas import tpu as pltpu


def _round_up(x, m):
    return (x + m - 1) // m * m


# ---------------------------------------------------------------------------
# Pallas kernels
# ---------------------------------------------------------------------------
def conv_mm_relu_kernel(p_ref, w_ref, b_ref, o_ref):
    """Fused (im2col patches) @ W + b, then ReLU.  Full-array VMEM blocks."""
    acc = jnp.dot(p_ref[...], w_ref[...], preferred_element_type=jnp.float32)
    o_ref[...] = jnp.maximum(acc + b_ref[...], 0.0).astype(o_ref.dtype)


def fc_head_kernel(x_ref, w1_ref, b1_ref, w2_ref, b2_ref, o_ref, *, n_valid):
    """Fused FC head: fc1 + ReLU + fc2 + LogSoftmax over the first n_valid lanes."""
    h = jnp.dot(x_ref[...], w1_ref[...], preferred_element_type=jnp.float32)
    h = jnp.maximum(h + b1_ref[...], 0.0)                              # (Bp, 512)
    logits = jnp.dot(h, w2_ref[...], preferred_element_type=jnp.float32)
    logits = logits + b2_ref[...]                                      # (Bp, 128)
    # LogSoftmax over the real classes only; padded lanes are masked out.
    lane = lax.broadcasted_iota(jnp.int32, logits.shape, 1)
    valid = lane < n_valid
    masked = jnp.where(valid, logits, jnp.float32(-1e30))
    m = jnp.max(masked, axis=-1, keepdims=True)
    e = jnp.where(valid, jnp.exp(masked - m), 0.0)
    lse = m + jnp.log(jnp.sum(e, axis=-1, keepdims=True))
    o_ref[...] = (logits - lse).astype(o_ref.dtype)


# ---------------------------------------------------------------------------
# pallas_call wrappers
# ---------------------------------------------------------------------------
def _conv_mm_relu(patches, w_pad, b_pad):
    M, K = patches.shape
    Np = w_pad.shape[1]
    return pl.pallas_call(
        conv_mm_relu_kernel,
        out_shape=jax.ShapeDtypeStruct((M, Np), jnp.float32),
        grid=(1,),
        in_specs=[
            pl.BlockSpec((M, K), lambda i: (0, 0)),
            pl.BlockSpec((K, Np), lambda i: (0, 0)),
            pl.BlockSpec((1, Np), lambda i: (0, 0)),
        ],
        out_specs=pl.BlockSpec((M, Np), lambda i: (0, 0)),
        compiler_params=pltpu.CompilerParams(dimension_semantics=("arbitrary",)),
    )(patches, w_pad, b_pad)


def _fc_head(x, w1t, b1, w2t, b2, n_classes=10):
    B, K = x.shape
    Bp = _round_up(max(B, 8), 8)                     # pad batch to sublane height
    xp = jnp.pad(x, ((0, Bp - B), (0, 0)))
    N1 = w1t.shape[1]                                # 512 (padded from 500)
    N2 = w2t.shape[1]                                # 128 (padded from 10)
    out = pl.pallas_call(
        functools.partial(fc_head_kernel, n_valid=n_classes),
        out_shape=jax.ShapeDtypeStruct((Bp, N2), jnp.float32),
        grid=(1,),
        in_specs=[
            pl.BlockSpec((Bp, K), lambda i: (0, 0)),
            pl.BlockSpec((K, N1), lambda i: (0, 0)),
            pl.BlockSpec((1, N1), lambda i: (0, 0)),
            pl.BlockSpec((N1, N2), lambda i: (0, 0)),
            pl.BlockSpec((1, N2), lambda i: (0, 0)),
        ],
        out_specs=pl.BlockSpec((Bp, N2), lambda i: (0, 0)),
        compiler_params=pltpu.CompilerParams(dimension_semantics=("arbitrary",)),
    )(xp, w1t, b1, w2t, b2)
    return out[:B, :n_classes]


# ---------------------------------------------------------------------------
# One-time parameter layout prep (transpose + zero-pad) -- NOT in the per-call path
# ---------------------------------------------------------------------------
def prepare_params(params):
    c1w, c1b, c2w, c2b, f1w, f1b, f2w, f2b = params
    LANE = 128

    def conv_w(w, b):
        cout = w.shape[0]
        npad = _round_up(cout, LANE)
        wm = w.reshape(cout, -1).T                               # (Cin*KH*KW, Cout)
        wm = jnp.pad(wm, ((0, 0), (0, npad - cout)))
        bp = jnp.pad(b, (0, npad - cout)).reshape(1, -1)
        return wm.astype(jnp.float32), bp.astype(jnp.float32)

    c1wm, c1bp = conv_w(c1w, c1b)                                # (25, 128), (1, 128)
    c2wm, c2bp = conv_w(c2w, c2b)                                # (500, 128), (1, 128)

    n1 = _round_up(f1w.shape[0], LANE)                           # 500 -> 512
    n2 = _round_up(f2w.shape[0], LANE)                           # 10  -> 128
    f1wt = jnp.pad(f1w.T, ((0, 0), (0, n1 - f1w.shape[0])))      # (800, 512)
    f1bp = jnp.pad(f1b, (0, n1 - f1b.shape[0])).reshape(1, -1)   # (1, 512)
    f2wt = jnp.pad(f2w.T, ((0, n1 - f2w.shape[1]),
                           (0, n2 - f2w.shape[0])))              # (512, 128)
    f2bp = jnp.pad(f2b, (0, n2 - f2b.shape[0])).reshape(1, -1)   # (1, 128)
    return dict(c1w=c1wm, c1b=c1bp, c2w=c2wm, c2b=c2bp,
                f1w=f1wt, f1b=f1bp, f2w=f2wt, f2b=f2bp)


# ---------------------------------------------------------------------------
# Layout-only glue (im2col / maxpool) + full forward
# ---------------------------------------------------------------------------
def _im2col_nchw(x, k):
    # (B, C, H, W) -> (B*OH*OW, C*k*k) with (ci, kh, kw) inner order, matching
    # the PyTorch Conv2d weight.reshape(Cout, -1) flattening convention.
    B, C, H, W = x.shape
    oh, ow = H - k + 1, W - k + 1
    cols = jnp.stack([x[:, :, i:i + oh, j:j + ow]
                      for i in range(k) for j in range(k)], axis=2)  # (B,C,k*k,oh,ow)
    cols = cols.transpose(0, 3, 4, 1, 2)                             # (B,oh,ow,C,k*k)
    return cols.reshape(B * oh * ow, C * k * k), oh, ow


def _maxpool2_nchw(y):
    B, C, H, W = y.shape
    return y.reshape(B, C, H // 2, 2, W // 2, 2).max(axis=(3, 5))


def lenet5_forward(x, prep):
    """x: (B, 1, 28, 28) f32 NCHW.  Returns (B, 10) log-probabilities."""
    # TODO(synk): the torch module's np.save(...) of intermediate activations is
    # host file I/O with no Pallas equivalent; intentionally skipped.
    B = x.shape[0]
    # ---- C1: conv 1->20 (5x5) + ReLU (Pallas), maxpool 2x2 (glue) ----------
    p1, oh1, ow1 = _im2col_nchw(x, 5)                                 # (B*576, 25)
    y1 = _conv_mm_relu(p1, prep["c1w"], prep["c1b"])                  # (B*576, 128)
    y1 = y1[:, :20].reshape(B, oh1, ow1, 20).transpose(0, 3, 1, 2)    # (B,20,24,24)
    y1 = _maxpool2_nchw(y1)                                           # (B,20,12,12)
    # ---- C2: conv 20->50 (5x5) + ReLU (Pallas), maxpool 2x2 (glue) ---------
    p2, oh2, ow2 = _im2col_nchw(y1, 5)                                # (B*64, 500)
    y2 = _conv_mm_relu(p2, prep["c2w"], prep["c2b"])                  # (B*64, 128)
    y2 = y2[:, :50].reshape(B, oh2, ow2, 50).transpose(0, 3, 1, 2)    # (B,50,8,8)
    y2 = _maxpool2_nchw(y2)                                           # (B,50,4,4)
    flat = y2.reshape(B, -1)                # (B, 800), channel-major == torch .view
    # ---- FC head: fc1 + ReLU + fc2 + LogSoftmax in a single pallas_call ----
    return _fc_head(flat, prep["f1w"], prep["f1b"], prep["f2w"], prep["f2b"])


# ---------------------------------------------------------------------------
# Plain-JAX reference (PyTorch-layout params) for correctness checking
# ---------------------------------------------------------------------------
def lenet5_reference(x, params):
    c1w, c1b, c2w, c2b, f1w, f1b, f2w, f2b = params
    dn = ("NCHW", "OIHW", "NCHW")
    y = lax.conv_general_dilated(x, c1w, (1, 1), "VALID", dimension_numbers=dn)
    y = jnp.maximum(y + c1b[None, :, None, None], 0.0)
    y = lax.reduce_window(y, jnp.float32(-jnp.inf), lax.max,
                          (1, 1, 2, 2), (1, 1, 2, 2), "VALID")
    y = lax.conv_general_dilated(y, c2w, (1, 1), "VALID", dimension_numbers=dn)
    y = jnp.maximum(y + c2b[None, :, None, None], 0.0)
    y = lax.reduce_window(y, jnp.float32(-jnp.inf), lax.max,
                          (1, 1, 2, 2), (1, 1, 2, 2), "VALID")
    y = y.reshape(x.shape[0], -1)
    y = jnp.maximum(y @ f1w.T + f1b, 0.0)
    logits = y @ f2w.T + f2b
    return jax.nn.log_softmax(logits, axis=-1)


if __name__ == "__main__":
    key = jax.random.PRNGKey(0)
    ks = jax.random.split(key, 9)
    B = 2
    x = jax.random.normal(ks[0], (B, 1, 28, 28), dtype=jnp.float32)

    def rnd(k, shape, scale):
        return jax.random.normal(k, shape, dtype=jnp.float32) * scale

    # PyTorch-layout parameters: Conv2d (Cout, Cin, KH, KW), Linear (out, in).
    params = (
        rnd(ks[1], (20, 1, 5, 5), 0.2),   rnd(ks[2], (20,), 0.1),
        rnd(ks[3], (50, 20, 5, 5), 0.05), rnd(ks[4], (50,), 0.1),
        rnd(ks[5], (500, 800), 0.03),     rnd(ks[6], (500,), 0.05),
        rnd(ks[7], (10, 500), 0.05),      rnd(ks[8], (10,), 0.05),
    )

    prep = prepare_params(params)            # one-time layout prep (hoisted)
    fwd = jax.jit(lenet5_forward)

    out = fwd(x, prep)
    jax.block_until_ready(out)

    ref = lenet5_reference(x, params)
    assert out.shape == (B, 10), out.shape
    assert jnp.allclose(out, ref, atol=1e-3, rtol=1e-3), \
        float(jnp.max(jnp.abs(out - ref)))

    print("KERNEL_OK")
</pallas_src>

<mosaic_0001>
module attributes {stable_mosaic.version = 11 : i64} {
  func.func @conv_mm_relu_kernel(%arg0: i32, %arg1: memref<1152x25xf32, #tpu.memory_space<vmem>>, %arg2: memref<25x128xf32, #tpu.memory_space<vmem>>, %arg3: memref<1x128xf32, #tpu.memory_space<vmem>>, %arg4: memref<1152x128xf32, #tpu.memory_space<vmem>>) attributes {dimension_semantics = [#tpu.dimension_semantics<arbitrary>], iteration_bounds = array<i64: 1>, scalar_prefetch = 0 : i64, scratch_operands = 0 : i64, tpu.core_type = #tpu.core_type<tc>, window_params = [{pipeline_mode = #tpu.pipeline_mode<synchronous>, transform_indices = @transform_0, window_bounds = array<i64: 1152, 25>}, {pipeline_mode = #tpu.pipeline_mode<synchronous>, transform_indices = @transform_1, window_bounds = array<i64: 25, 128>}, {pipeline_mode = #tpu.pipeline_mode<synchronous>, transform_indices = @transform_2, window_bounds = array<i64: 1, 128>}, {pipeline_mode = #tpu.pipeline_mode<synchronous>, transform_indices = @transform_3, window_bounds = array<i64: 1152, 128>}]} {
    %c0 = arith.constant 0 : index
    %c0_0 = arith.constant 0 : index
    %0 = vector.load %arg1[%c0, %c0_0] : memref<1152x25xf32, #tpu.memory_space<vmem>>, vector<1152x25xf32>
    %c0_1 = arith.constant 0 : index
    %c0_2 = arith.constant 0 : index
    %1 = vector.load %arg2[%c0_1, %c0_2] : memref<25x128xf32, #tpu.memory_space<vmem>>, vector<25x128xf32>
    %cst = arith.constant dense<0.000000e+00> : vector<1152x128xf32>
    %2 = tpu.matmul %0, %1, %cst {dimension_numbers = #tpu.dot_dimension_numbers<[1], [0], [0], [1], [0, 0, 1, 1], [], []>} : vector<1152x25xf32>, vector<25x128xf32>, vector<1152x128xf32> -> vector<1152x128xf32>
    %c0_3 = arith.constant 0 : index
    %c0_4 = arith.constant 0 : index
    %3 = vector.load %arg3[%c0_3, %c0_4] : memref<1x128xf32, #tpu.memory_space<vmem>>, vector<1x128xf32>
    %4 = vector.broadcast %3 : vector<1x128xf32> to vector<1152x128xf32>
    %5 = arith.addf %2, %4 : vector<1152x128xf32>
    %cst_5 = arith.constant 0.000000e+00 : f32
    %6 = vector.broadcast %cst_5 : f32 to vector<1152x128xf32>
    %7 = arith.maximumf %5, %6 : vector<1152x128xf32>
    %c0_6 = arith.constant 0 : index
    %c0_7 = arith.constant 0 : index
    %8 = vector.load %arg4[%c0_6, %c0_7] : memref<1152x128xf32, #tpu.memory_space<vmem>>, vector<1152x128xf32>
    tpu.vector_store %arg4[%c0_6, %c0_7], %7 {strides = array<i32>} : memref<1152x128xf32, #tpu.memory_space<vmem>>, vector<1152x128xf32>,
    return
  }
  func.func @transform_0(%arg0: i32) -> (i32, i32) {
    %c0_i32 = arith.constant 0 : i32
    %c0_i32_0 = arith.constant 0 : i32
    %c0_i32_1 = arith.constant 0 : i32
    return %c0_i32, %c0_i32_0 : i32, i32
  }
  func.func @transform_1(%arg0: i32) -> (i32, i32) {
    %c0_i32 = arith.constant 0 : i32
    %c0_i32_0 = arith.constant 0 : i32
    %c0_i32_1 = arith.constant 0 : i32
    return %c0_i32, %c0_i32_0 : i32, i32
  }
  func.func @transform_2(%arg0: i32) -> (i32, i32) {
    %c0_i32 = arith.constant 0 : i32
    %c0_i32_0 = arith.constant 0 : i32
    %c0_i32_1 = arith.constant 0 : i32
    return %c0_i32, %c0_i32_0 : i32, i32
  }
  func.func @transform_3(%arg0: i32) -> (i32, i32) {
    %c0_i32 = arith.constant 0 : i32
    %c0_i32_0 = arith.constant 0 : i32
    %c0_i32_1 = arith.constant 0 : i32
    return %c0_i32, %c0_i32_0 : i32, i32
  }
}

module attributes {stable_mosaic.version = 11 : i64} {
  func.func @conv_mm_relu_kernel(%arg0: i32, %arg1: memref<128x500xf32, #tpu.memory_space<vmem>>, %arg2: memref<500x128xf32, #tpu.memory_space<vmem>>, %arg3: memref<1x128xf32, #tpu.memory_space<vmem>>, %arg4: memref<128x128xf32, #tpu.memory_space<vmem>>) attributes {dimension_semantics = [#tpu.dimension_semantics<arbitrary>], iteration_bounds = array<i64: 1>, scalar_prefetch = 0 : i64, scratch_operands = 0 : i64, tpu.core_type = #tpu.core_type<tc>, window_params = [{pipeline_mode = #tpu.pipeline_mode<synchronous>, transform_indices = @transform_0, window_bounds = array<i64: 128, 500>}, {pipeline_mode = #tpu.pipeline_mode<synchronous>, transform_indices = @transform_1, window_bounds = array<i64: 500, 128>}, {pipeline_mode = #tpu.pipeline_mode<synchronous>, transform_indices = @transform_2, window_bounds = array<i64: 1, 128>}, {pipeline_mode = #tpu.pipeline_mode<synchronous>, transform_indices = @transform_3, window_bounds = array<i64: 128, 128>}]} {
    %c0 = arith.constant 0 : index
    %c0_0 = arith.constant 0 : index
    %0 = vector.load %arg1[%c0, %c0_0] : memref<128x500xf32, #tpu.memory_space<vmem>>, vector<128x500xf32>
    %c0_1 = arith.constant 0 : index
    %c0_2 = arith.constant 0 : index
    %1 = vector.load %arg2[%c0_1, %c0_2] : memref<500x128xf32, #tpu.memory_space<vmem>>, vector<500x128xf32>
    %cst = arith.constant dense<0.000000e+00> : vector<128x128xf32>
    %2 = tpu.matmul %0, %1, %cst {dimension_numbers = #tpu.dot_dimension_numbers<[1], [0], [0], [1], [0, 0, 1, 1], [], []>} : vector<128x500xf32>, vector<500x128xf32>, vector<128x128xf32> -> vector<128x128xf32>
    %c0_3 = arith.constant 0 : index
    %c0_4 = arith.constant 0 : index
    %3 = vector.load %arg3[%c0_3, %c0_4] : memref<1x128xf32, #tpu.memory_space<vmem>>, vector<1x128xf32>
    %4 = vector.broadcast %3 : vector<1x128xf32> to vector<128x128xf32>
    %5 = arith.addf %2, %4 : vector<128x128xf32>
    %cst_5 = arith.constant 0.000000e+00 : f32
    %6 = vector.broadcast %cst_5 : f32 to vector<128x128xf32>
    %7 = arith.maximumf %5, %6 : vector<128x128xf32>
    %c0_6 = arith.constant 0 : index
    %c0_7 = arith.constant 0 : index
    %8 = vector.load %arg4[%c0_6, %c0_7] : memref<128x128xf32, #tpu.memory_space<vmem>>, vector<128x128xf32>
    tpu.vector_store %arg4[%c0_6, %c0_7], %7 {strides = array<i32>} : memref<128x128xf32, #tpu.memory_space<vmem>>, vector<128x128xf32>,
    return
  }
  func.func @transform_0(%arg0: i32) -> (i32, i32) {
    %c0_i32 = arith.constant 0 : i32
    %c0_i32_0 = arith.constant 0 : i32
    %c0_i32_1 = arith.constant 0 : i32
    return %c0_i32, %c0_i32_0 : i32, i32
  }
  func.func @transform_1(%arg0: i32) -> (i32, i32) {
    %c0_i32 = arith.constant 0 : i32
    %c0_i32_0 = arith.constant 0 : i32
    %c0_i32_1 = arith.constant 0 : i32
    return %c0_i32, %c0_i32_0 : i32, i32
  }
  func.func @transform_2(%arg0: i32) -> (i32, i32) {
    %c0_i32 = arith.constant 0 : i32
    %c0_i32_0 = arith.constant 0 : i32
    %c0_i32_1 = arith.constant 0 : i32
    return %c0_i32, %c0_i32_0 : i32, i32
  }
  func.func @transform_3(%arg0: i32) -> (i32, i32) {
    %c0_i32 = arith.constant 0 : i32
    %c0_i32_0 = arith.constant 0 : i32
    %c0_i32_1 = arith.constant 0 : i32
    return %c0_i32, %c0_i32_0 : i32, i32
  }
}

module attributes {stable_mosaic.version = 11 : i64} {
  func.func @fc_head_kernel(%arg0: i32, %arg1: memref<8x800xf32, #tpu.memory_space<vmem>>, %arg2: memref<800x512xf32, #tpu.memory_space<vmem>>, %arg3: memref<1x512xf32, #tpu.memory_space<vmem>>, %arg4: memref<512x128xf32, #tpu.memory_space<vmem>>, %arg5: memref<1x128xf32, #tpu.memory_space<vmem>>, %arg6: memref<8x128xf32, #tpu.memory_space<vmem>>) attributes {dimension_semantics = [#tpu.dimension_semantics<arbitrary>], iteration_bounds = array<i64: 1>, scalar_prefetch = 0 : i64, scratch_operands = 0 : i64, tpu.core_type = #tpu.core_type<tc>, window_params = [{pipeline_mode = #tpu.pipeline_mode<synchronous>, transform_indices = @transform_0, window_bounds = array<i64: 8, 800>}, {pipeline_mode = #tpu.pipeline_mode<synchronous>, transform_indices = @transform_1, window_bounds = array<i64: 800, 512>}, {pipeline_mode = #tpu.pipeline_mode<synchronous>, transform_indices = @transform_2, window_bounds = array<i64: 1, 512>}, {pipeline_mode = #tpu.pipeline_mode<synchronous>, transform_indices = @transform_3, window_bounds = array<i64: 512, 128>}, {pipeline_mode = #tpu.pipeline_mode<synchronous>, transform_indices = @transform_4, window_bounds = array<i64: 1, 128>}, {pipeline_mode = #tpu.pipeline_mode<synchronous>, transform_indices = @transform_5, window_bounds = array<i64: 8, 128>}]} {
    %c0 = arith.constant 0 : index
    %c0_0 = arith.constant 0 : index
    %0 = vector.load %arg1[%c0, %c0_0] : memref<8x800xf32, #tpu.memory_space<vmem>>, vector<8x800xf32>
    %c0_1 = arith.constant 0 : index
    %c0_2 = arith.constant 0 : index
    %1 = vector.load %arg2[%c0_1, %c0_2] : memref<800x512xf32, #tpu.memory_space<vmem>>, vector<800x512xf32>
    %cst = arith.constant dense<0.000000e+00> : vector<8x512xf32>
    %2 = tpu.matmul %0, %1, %cst {dimension_numbers = #tpu.dot_dimension_numbers<[1], [0], [0], [1], [0, 0, 1, 1], [], []>} : vector<8x800xf32>, vector<800x512xf32>, vector<8x512xf32> -> vector<8x512xf32>
    %c0_3 = arith.constant 0 : index
    %c0_4 = arith.constant 0 : index
    %3 = vector.load %arg3[%c0_3, %c0_4] : memref<1x512xf32, #tpu.memory_space<vmem>>, vector<1x512xf32>
    %4 = vector.broadcast %3 : vector<1x512xf32> to vector<8x512xf32>
    %5 = arith.addf %2, %4 : vector<8x512xf32>
    %cst_5 = arith.constant 0.000000e+00 : f32
    %6 = vector.broadcast %cst_5 : f32 to vector<8x512xf32>
    %7 = arith.maximumf %5, %6 : vector<8x512xf32>
    %c0_6 = arith.constant 0 : index
    %c0_7 = arith.constant 0 : index
    %8 = vector.load %arg4[%c0_6, %c0_7] : memref<512x128xf32, #tpu.memory_space<vmem>>, vector<512x128xf32>
    %cst_8 = arith.constant dense<0.000000e+00> : vector<8x128xf32>
    %9 = tpu.matmul %7, %8, %cst_8 {dimension_numbers = #tpu.dot_dimension_numbers<[1], [0], [0], [1], [0, 0, 1, 1], [], []>} : vector<8x512xf32>, vector<512x128xf32>, vector<8x128xf32> -> vector<8x128xf32>
    %c0_9 = arith.constant 0 : index
    %c0_10 = arith.constant 0 : index
    %10 = vector.load %arg5[%c0_9, %c0_10] : memref<1x128xf32, #tpu.memory_space<vmem>>, vector<1x128xf32>
    %11 = vector.broadcast %10 : vector<1x128xf32> to vector<8x128xf32>
    %12 = arith.addf %9, %11 : vector<8x128xf32>
    %13 = tpu.iota {dimensions = array<i32: 1>} : vector<8x128xi32>
    %c10_i32 = arith.constant 10 : i32
    %14 = vector.broadcast %c10_i32 : i32 to vector<8x128xi32>
    %15 = arith.cmpi slt, %13, %14 : vector<8x128xi32>
    %cst_11 = arith.constant -1.000000e+30 : f32
    %16 = vector.broadcast %cst_11 : f32 to vector<8x128xf32>
    %17 = arith.select %15, %12, %16 : vector<8x128xi1>, vector<8x128xf32>
    %cst_12 = arith.constant dense<0xFF800000> : vector<8xf32>
    %18 = vector.multi_reduction <maximumf>, %17, %cst_12 [1] : vector<8x128xf32> to vector<8xf32>
    %19 = vector.shape_cast %18 : vector<8xf32> to vector<8x1xf32>
    %20 = vector.broadcast %19 : vector<8x1xf32> to vector<8x128xf32>
    %21 = arith.subf %17, %20 : vector<8x128xf32>
    %22 = math.exp %21 : vector<8x128xf32>
    %cst_13 = arith.constant 0.000000e+00 : f32
    %23 = vector.broadcast %cst_13 : f32 to vector<8x128xf32>
    %24 = arith.select %15, %22, %23 : vector<8x128xi1>, vector<8x128xf32>
    %cst_14 = arith.constant dense<0.000000e+00> : vector<8xf32>
    %25 = vector.multi_reduction <add>, %24, %cst_14 [1] : vector<8x128xf32> to vector<8xf32>
    %26 = vector.shape_cast %25 : vector<8xf32> to vector<8x1xf32>
    %27 = math.log %26 : vector<8x1xf32>
    %28 = arith.addf %19, %27 : vector<8x1xf32>
    %29 = vector.broadcast %28 : vector<8x1xf32> to vector<8x128xf32>
    %30 = arith.subf %12, %29 : vector<8x128xf32>
    %c0_15 = arith.constant 0 : index
    %c0_16 = arith.constant 0 : index
    %31 = vector.load %arg6[%c0_15, %c0_16] : memref<8x128xf32, #tpu.memory_space<vmem>>, vector<8x128xf32>
    tpu.vector_store %arg6[%c0_15, %c0_16], %30 {strides = array<i32>} : memref<8x128xf32, #tpu.memory_space<vmem>>, vector<8x128xf32>,
    return
  }
  func.func @transform_0(%arg0: i32) -> (i32, i32) {
    %c0_i32 = arith.constant 0 : i32
    %c0_i32_0 = arith.constant 0 : i32
    %c0_i32_1 = arith.constant 0 : i32
    return %c0_i32, %c0_i32_0 : i32, i32
  }
  func.func @transform_1(%arg0: i32) -> (i32, i32) {
    %c0_i32 = arith.constant 0 : i32
    %c0_i32_0 = arith.constant 0 : i32
    %c0_i32_1 = arith.constant 0 : i32
    return %c0_i32, %c0_i32_0 : i32, i32
  }
  func.func @transform_2(%arg0: i32) -> (i32, i32) {
    %c0_i32 = arith.constant 0 : i32
    %c0_i32_0 = arith.constant 0 : i32
    %c0_i32_1 = arith.constant 0 : i32
    return %c0_i32, %c0_i32_0 : i32, i32
  }
  func.func @transform_3(%arg0: i32) -> (i32, i32) {
    %c0_i32 = arith.constant 0 : i32
    %c0_i32_0 = arith.constant 0 : i32
    %c0_i32_1 = arith.constant 0 : i32
    return %c0_i32, %c0_i32_0 : i32, i32
  }
  func.func @transform_4(%arg0: i32) -> (i32, i32) {
    %c0_i32 = arith.constant 0 : i32
    %c0_i32_0 = arith.constant 0 : i32
    %c0_i32_1 = arith.constant 0 : i32
    return %c0_i32, %c0_i32_0 : i32, i32
  }
  func.func @transform_5(%arg0: i32) -> (i32, i32) {
    %c0_i32 = arith.constant 0 : i32
    %c0_i32_0 = arith.constant 0 : i32
    %c0_i32_1 = arith.constant 0 : i32
    return %c0_i32, %c0_i32_0 : i32, i32
  }
}

</mosaic_0001>

<bundles_post_ra>
// kernel: lenet5_forward.3
= control target key start
LH: loop header
LB: loop body
LE: loop exit
PB: predicated region body
PF: predicated region fallthrough
CT: control target
= control target key end

     0   :  { %vm602_vm0 = vcmask 1040384   ;;  %vm169_vm1 = vcmask 203776   ;;  %s3386_s1 = inlined_call_operand.vmem [shape: f32[25,128], index: 1, kind: input, shape index: {}]   ;;  %s3387_s0 = inlined_call_operand.vmem [shape: f32[1152,25], index: 0, kind: input, shape index: {}]   ;;  %s3388_s2 = inlined_call_operand.vmem [shape: f32[1,128], index: 2, kind: input, shape index: {}]   ;;  %s3389_s3 = inlined_call_operand.vmem [shape: f32[1152,128], index: 3, kind: output, shape index: {}]  }
   0x1   :  { %v161_v0 = vld [vmem:[%s3386_s1 + $0x18] sm:$0x1]  ;;  %v160_v1 = vld [vmem:[%s3386_s1 + $0x10] sm:$0xff]  ;;  %v159_v2 = vld [vmem:[%s3386_s1 + $0x8] sm:$0xff] }
   0x2   :  { %1977 = vmatprep.subr.msk.mxu0 %vm602_vm0, %v161_v0  ;;  %2201 = vmatprep.subr.msk.mxu1 %vm602_vm0, %v161_v0  ;;  %v158_v3 = vld [vmem:[%s3386_s1] sm:$0xff]  ;;  %v15_v6 = vld [vmem:[%s3387_s0 + $0x8] sm:$0xff]  ;;  %v16_v8 = vld [vmem:[%s3387_s0 + $0x10] sm:$0xff] }
   0x3   :  { %1978 = vmatpush3.msk.msra.mxu0 %vm602_vm0, %v161_v0  ;;  %2205 = vmatpush3.msk.msra.mxu1 %vm602_vm0, %v161_v0  ;;  %v14_v4 = vld [vmem:[%s3387_s0] sm:$0xff]  ;;  %v87_v7 = vld [vmem:[%s3387_s0 + $0x248] sm:$0xff]  ;;  %v88_v9 = vld [vmem:[%s3387_s0 + $0x250] sm:$0xff] }
   0x4   :  { %1979 = vmatprep.subr.mxu0 %v160_v1  ;;  %2202 = vmatprep.subr.mxu1 %v160_v1  ;;  %v86_v5 = vld [vmem:[%s3387_s0 + $0x240] sm:$0xff]  ;;  %v17_v10 = vld [vmem:[%s3387_s0 + $0x18] sm:$0xff]  ;;  %v19_v14 = vld [vmem:[%s3387_s0 + $0x28] sm:$0xff] }
   0x5   :  { %1980 = vmatpush3.msra.mxu0 %v160_v1  ;;  %2206 = vmatpush3.msra.mxu1 %v160_v1  ;;  %v89_v11 = vld [vmem:[%s3387_s0 + $0x258] sm:$0xff]  ;;  %v18_v12 = vld [vmem:[%s3387_s0 + $0x20] sm:$0xff]  ;;  %v91_v15 = vld [vmem:[%s3387_s0 + $0x268] sm:$0xff] }
   0x6   :  { %1981 = vmatprep.subr.mxu0 %v159_v2  ;;  %2203 = vmatprep.subr.mxu1 %v159_v2  ;;  %v90_v13 = vld [vmem:[%s3387_s0 + $0x260] sm:$0xff]  ;;  %v20_v16 = vld [vmem:[%s3387_s0 + $0x30] sm:$0xff]  ;;  %v21_v18 = vld [vmem:[%s3387_s0 + $0x38] sm:$0xff] }
   0x7   :  { %1982 = vmatpush3.msra.mxu0 %v159_v2  ;;  %2207 = vmatpush3.msra.mxu1 %v159_v2  ;;  %v92_v17 = vld [vmem:[%s3387_s0 + $0x270] sm:$0xff]  ;;  %v93_v19 = vld [vmem:[%s3387_s0 + $0x278] sm:$0xff]  ;;  %v22_v20 = vld [vmem:[%s3387_s0 + $0x40] sm:$0xff] }
   0x8   :  { %1983 = vmatprep.subr.mxu0 %v158_v3  ;;  %2204 = vmatprep.subr.mxu1 %v158_v3  ;;  %v94_v21 = vld [vmem:[%s3387_s0 + $0x280] sm:$0xff]  ;;  %v23_v22 = vld [vmem:[%s3387_s0 + $0x48] sm:$0xff]  ;;  %v24_v24 = vld [vmem:[%s3387_s0 + $0x50] sm:$0xff] }
   0x9   :  { %1984 = vmatpush3.msra.mxu0 %v158_v3  ;;  %2208 = vmatpush3.msra.mxu1 %v158_v3  ;;  %v95_v23 = vld [vmem:[%s3387_s0 + $0x288] sm:$0xff]  ;;  %v96_v25 = vld [vmem:[%s3387_s0 + $0x290] sm:$0xff]  ;;  %v25_v26 = vld [vmem:[%s3387_s0 + $0x58] sm:$0xff] }
   0xa   :  { %1985 = vmatprep.mubr.msk.f32.mxu0 %vm169_vm1, %v14_v4  ;;  %2093 = vmatprep.mubr.msk.f32.mxu1 %vm169_vm1, %v86_v5  ;;  %v97_v27 = vld [vmem:[%s3387_s0 + $0x298] sm:$0xff]  ;;  %v26_v28 = vld [vmem:[%s3387_s0 + $0x60] sm:$0xff]  ;;  %v27_v30 = vld [vmem:[%s3387_s0 + $0x68] sm:$0xff] }
   0xb   :  { %1986 = vmatmul.mubr.msk.f32.vlgmr.msra.gmra.mxu0 %vm169_vm1, %v15_v6  ;;  %2094 = vmatmul.mubr.msk.f32.vlgmr.msra.gmra.mxu1 %vm169_vm1, %v87_v7  ;;  %v98_v29 = vld [vmem:[%s3387_s0 + $0x2a0] sm:$0xff]  ;;  %v99_v31 = vld [vmem:[%s3387_s0 + $0x2a8] sm:$0xff]  ;;  %v28_v32 = vld [vmem:[%s3387_s0 + $0x70] sm:$0xff] }
   0xc   :  { %1988 = vmatprep.mubr.msk.f32.mxu0 %vm169_vm1, %v16_v8  ;;  %2096 = vmatprep.mubr.msk.f32.mxu1 %vm169_vm1, %v88_v9  ;;  %v100_v33 = vld [vmem:[%s3387_s0 + $0x2b0] sm:$0xff]  ;;  %v29_v34 = vld [vmem:[%s3387_s0 + $0x78] sm:$0xff]  ;;  %v30_v36 = vld [vmem:[%s3387_s0 + $0x80] sm:$0xff] }
   0xd   :  { %v101_v35 = vld [vmem:[%s3387_s0 + $0x2b8] sm:$0xff]  ;;  %v102_v37 = vld [vmem:[%s3387_s0 + $0x2c0] sm:$0xff]  ;;  %v31_v38 = vld [vmem:[%s3387_s0 + $0x88] sm:$0xff] }
   0xe   :  { %v103_v39 = vld [vmem:[%s3387_s0 + $0x2c8] sm:$0xff]  ;;  %v32_v40 = vld [vmem:[%s3387_s0 + $0x90] sm:$0xff]  ;;  %v33_v42 = vld [vmem:[%s3387_s0 + $0x98] sm:$0xff] }
   0xf   :  { %1989 = vmatmul.mubr.msk.f32.gmra.mxu0 %vm169_vm1, %v17_v10  ;;  %2097 = vmatmul.mubr.msk.f32.gmra.mxu1 %vm169_vm1, %v89_v11  ;;  %v104_v41 = vld [vmem:[%s3387_s0 + $0x2d0] sm:$0xff]  ;;  %v105_v43 = vld [vmem:[%s3387_s0 + $0x2d8] sm:$0xff]  ;;  %v34_v44 = vld [vmem:[%s3387_s0 + $0xa0] sm:$0xff] }
  0x10   :  { %1991 = vmatprep.mubr.msk.f32.mxu0 %vm169_vm1, %v18_v12  ;;  %2099 = vmatprep.mubr.msk.f32.mxu1 %vm169_vm1, %v90_v13  ;;  %v106_v45 = vld [vmem:[%s3387_s0 + $0x2e0] sm:$0xff]  ;;  %v35_v46 = vld [vmem:[%s3387_s0 + $0xa8] sm:$0xff]  ;;  %v36_v48 = vld [vmem:[%s3387_s0 + $0xb0] sm:$0xff] }
  0x11   :  { %v107_v47 = vld [vmem:[%s3387_s0 + $0x2e8] sm:$0xff]  ;;  %v108_v49 = vld [vmem:[%s3387_s0 + $0x2f0] sm:$0xff]  ;;  %v37_v50 = vld [vmem:[%s3387_s0 + $0xb8] sm:$0xff] }
  0x12   :  { %v109_v51 = vld [vmem:[%s3387_s0 + $0x2f8] sm:$0xff]  ;;  %v38_v52 = vld [vmem:[%s3387_s0 + $0xc0] sm:$0xff]  ;;  %v39_v54 = vld [vmem:[%s3387_s0 + $0xc8] sm:$0xff] }
  0x13   :  { %1992 = vmatmul.mubr.msk.f32.gmra.mxu0 %vm169_vm1, %v19_v14  ;;  %2100 = vmatmul.mubr.msk.f32.gmra.mxu1 %vm169_vm1, %v91_v15  ;;  %v110_v53 = vld [vmem:[%s3387_s0 + $0x300] sm:$0xff]  ;;  %v111_v55 = vld [vmem:[%s3387_s0 + $0x308] sm:$0xff]  ;;  %v40_v56 = vld [vmem:[%s3387_s0 + $0xd0] sm:$0xff] }
  0x14   :  { %1994 = vmatprep.mubr.msk.f32.mxu0 %vm169_vm1, %v20_v16  ;;  %2102 = vmatprep.mubr.msk.f32.mxu1 %vm169_vm1, %v92_v17  ;;  %v112_v57 = vld [vmem:[%s3387_s0 + $0x310] sm:$0xff]  ;;  %v41_v58 = vld [vmem:[%s3387_s0 + $0xd8] sm:$0xff]  ;;  %v42_v60 = vld [vmem:[%s3387_s0 + $0xe0] sm:$0xff] }
  0x15   :  { %v113_v59 = vld [vmem:[%s3387_s0 + $0x318] sm:$0xff]  ;;  %v114_v61 = vld [vmem:[%s3387_s0 + $0x320] sm:$0xff]  ;;  %v43_v62 = vld [vmem:[%s3387_s0 + $0xe8] sm:$0xff] }
  0x16   :  { %v115_v63 = vld [vmem:[%s3387_s0 + $0x328] sm:$0xff]  ;;  %v44_v0 = vld [vmem:[%s3387_s0 + $0xf0] sm:$0xff]  ;;  %v45_v2 = vld [vmem:[%s3387_s0 + $0xf8] sm:$0xff] }
  0x17   :  { %1995 = vmatmul.mubr.msk.f32.gmra.mxu0 %vm169_vm1, %v21_v18  ;;  %2103 = vmatmul.mubr.msk.f32.gmra.mxu1 %vm169_vm1, %v93_v19  ;;  %v116_v1 = vld [vmem:[%s3387_s0 + $0x330] sm:$0xff]  ;;  %v117_v3 = vld [vmem:[%s3387_s0 + $0x338] sm:$0xff]  ;;  %v46_v4 = vld [vmem:[%s3387_s0 + $0x100] sm:$0xff] }
  0x18   :  { %1997 = vmatprep.mubr.msk.f32.mxu0 %vm169_vm1, %v22_v20  ;;  %2105 = vmatprep.mubr.msk.f32.mxu1 %vm169_vm1, %v94_v21  ;;  %v118_v5 = vld [vmem:[%s3387_s0 + $0x340] sm:$0xff]  ;;  %v47_v6 = vld [vmem:[%s3387_s0 + $0x108] sm:$0xff]  ;;  %v48_v8 = vld [vmem:[%s3387_s0 + $0x110] sm:$0xff] }
  0x19   :  { %v119_v7 = vld [vmem:[%s3387_s0 + $0x348] sm:$0xff]  ;;  %v120_v9 = vld [vmem:[%s3387_s0 + $0x350] sm:$0xff]  ;;  %v49_v10 = vld [vmem:[%s3387_s0 + $0x118] sm:$0xff] }
  0x1a   :  { %v121_v11 = vld [vmem:[%s3387_s0 + $0x358] sm:$0xff]  ;;  %v50_v12 = vld [vmem:[%s3387_s0 + $0x120] sm:$0xff]  ;;  %v51_v14 = vld [vmem:[%s3387_s0 + $0x128] sm:$0xff] }
  0x1b   :  { %1998 = vmatmul.mubr.msk.f32.gmra.mxu0 %vm169_vm1, %v23_v22  ;;  %2106 = vmatmul.mubr.msk.f32.gmra.mxu1 %vm169_vm1, %v95_v23  ;;  %v122_v13 = vld [vmem:[%s3387_s0 + $0x360] sm:$0xff]  ;;  %v123_v15 = vld [vmem:[%s3387_s0 + $0x368] sm:$0xff]  ;;  %v52_v16 = vld [vmem:[%s3387_s0 + $0x130] sm:$0xff] }
  0x1c   :  { %2000 = vmatprep.mubr.msk.f32.mxu0 %vm169_vm1, %v24_v24  ;;  %2108 = vmatprep.mubr.msk.f32.mxu1 %vm169_vm1, %v96_v25  ;;  %v124_v17 = vld [vmem:[%s3387_s0 + $0x370] sm:$0xff]  ;;  %v53_v18 = vld [vmem:[%s3387_s0 + $0x138] sm:$0xff]  ;;  %v54_v20 = vld [vmem:[%s3387_s0 + $0x140] sm:$0xff] }
  0x1d   :  { %v125_v19 = vld [vmem:[%s3387_s0 + $0x378] sm:$0xff]  ;;  %v126_v21 = vld [vmem:[%s3387_s0 + $0x380] sm:$0xff]  ;;  %v55_v22 = vld [vmem:[%s3387_s0 + $0x148] sm:$0xff] }
  0x1e   :  { %v127_v23 = vld [vmem:[%s3387_s0 + $0x388] sm:$0xff]  ;;  %v56_v24 = vld [vmem:[%s3387_s0 + $0x150] sm:$0xff] }
  0x1f   :  { %2001 = vmatmul.mubr.msk.f32.gmra.mxu0 %vm169_vm1, %v25_v26  ;;  %2109 = vmatmul.mubr.msk.f32.gmra.mxu1 %vm169_vm1, %v97_v27  ;;  %v128_v25 = vld [vmem:[%s3387_s0 + $0x390] sm:$0xff]  ;;  %v57_v26 = vld [vmem:[%s3387_s0 + $0x158] sm:$0xff] }
  0x20   :  { %2003 = vmatprep.mubr.msk.f32.mxu0 %vm169_vm1, %v26_v28  ;;  %2111 = vmatprep.mubr.msk.f32.mxu1 %vm169_vm1, %v98_v29  ;;  %v129_v27 = vld [vmem:[%s3387_s0 + $0x398] sm:$0xff]  ;;  %v58_v28 = vld [vmem:[%s3387_s0 + $0x160] sm:$0xff] }
  0x21   :  { %v130_v29 = vld [vmem:[%s3387_s0 + $0x3a0] sm:$0xff] }
  0x23   :  { %2004 = vmatmul.mubr.msk.f32.gmra.mxu0 %vm169_vm1, %v27_v30  ;;  %2112 = vmatmul.mubr.msk.f32.gmra.mxu1 %vm169_vm1, %v99_v31  ;;  %v59_v30 = vld [vmem:[%s3387_s0 + $0x168] sm:$0xff] }
  0x24   :  { %2006 = vmatprep.mubr.msk.f32.mxu0 %vm169_vm1, %v28_v32  ;;  %2114 = vmatprep.mubr.msk.f32.mxu1 %vm169_vm1, %v100_v33  ;;  %v131_v31 = vld [vmem:[%s3387_s0 + $0x3a8] sm:$0xff]  ;;  %v60_v32 = vld [vmem:[%s3387_s0 + $0x170] sm:$0xff] }
  0x25   :  { %v132_v33 = vld [vmem:[%s3387_s0 + $0x3b0] sm:$0xff] }
  0x27   :  { %2007 = vmatmul.mubr.msk.f32.gmra.mxu0 %vm169_vm1, %v29_v34  ;;  %2115 = vmatmul.mubr.msk.f32.gmra.mxu1 %vm169_vm1, %v101_v35  ;;  %v61_v34 = vld [vmem:[%s3387_s0 + $0x178] sm:$0xff] }
  0x28   :  { %2009 = vmatprep.mubr.msk.f32.mxu0 %vm169_vm1, %v30_v36  ;;  %2117 = vmatprep.mubr.msk.f32.mxu1 %vm169_vm1, %v102_v37  ;;  %v133_v35 = vld [vmem:[%s3387_s0 + $0x3b8] sm:$0xff]  ;;  %v62_v36 = vld [vmem:[%s3387_s0 + $0x180] sm:$0xff] }
  0x29   :  { %v134_v37 = vld [vmem:[%s3387_s0 + $0x3c0] sm:$0xff] }
  0x2b   :  { %2010 = vmatmul.mubr.msk.f32.gmra.mxu0 %vm169_vm1, %v31_v38  ;;  %2118 = vmatmul.mubr.msk.f32.gmra.mxu1 %vm169_vm1, %v103_v39  ;;  %v63_v38 = vld [vmem:[%s3387_s0 + $0x188] sm:$0xff] }
  0x2c   :  { %2012 = vmatprep.mubr.msk.f32.mxu0 %vm169_vm1, %v32_v40  ;;  %2120 = vmatprep.mubr.msk.f32.mxu1 %vm169_vm1, %v104_v41  ;;  %v135_v39 = vld [vmem:[%s3387_s0 + $0x3c8] sm:$0xff]  ;;  %v64_v40 = vld [vmem:[%s3387_s0 + $0x190] sm:$0xff] }
  0x2d   :  { %v136_v41 = vld [vmem:[%s3387_s0 + $0x3d0] sm:$0xff] }
  0x2f   :  { %2013 = vmatmul.mubr.msk.f32.gmra.mxu0 %vm169_vm1, %v33_v42  ;;  %2121 = vmatmul.mubr.msk.f32.gmra.mxu1 %vm169_vm1, %v105_v43  ;;  %v65_v42 = vld [vmem:[%s3387_s0 + $0x198] sm:$0xff] }
  0x30   :  { %2015 = vmatprep.mubr.msk.f32.mxu0 %vm169_vm1, %v34_v44  ;;  %2123 = vmatprep.mubr.msk.f32.mxu1 %vm169_vm1, %v106_v45  ;;  %v137_v43 = vld [vmem:[%s3387_s0 + $0x3d8] sm:$0xff]  ;;  %v66_v44 = vld [vmem:[%s3387_s0 + $0x1a0] sm:$0xff] }
  0x31   :  { %v138_v45 = vld [vmem:[%s3387_s0 + $0x3e0] sm:$0xff] }
  0x33   :  { %2016 = vmatmul.mubr.msk.f32.gmra.mxu0 %vm169_vm1, %v35_v46  ;;  %2124 = vmatmul.mubr.msk.f32.gmra.mxu1 %vm169_vm1, %v107_v47  ;;  %v67_v46 = vld [vmem:[%s3387_s0 + $0x1a8] sm:$0xff] }
  0x34   :  { %2018 = vmatprep.mubr.msk.f32.mxu0 %vm169_vm1, %v36_v48  ;;  %2126 = vmatprep.mubr.msk.f32.mxu1 %vm169_vm1, %v108_v49  ;;  %v139_v47 = vld [vmem:[%s3387_s0 + $0x3e8] sm:$0xff]  ;;  %v68_v48 = vld [vmem:[%s3387_s0 + $0x1b0] sm:$0xff] }
  0x35   :  { %v140_v49 = vld [vmem:[%s3387_s0 + $0x3f0] sm:$0xff] }
  0x37   :  { %2019 = vmatmul.mubr.msk.f32.gmra.mxu0 %vm169_vm1, %v37_v50  ;;  %2127 = vmatmul.mubr.msk.f32.gmra.mxu1 %vm169_vm1, %v109_v51  ;;  %v69_v50 = vld [vmem:[%s3387_s0 + $0x1b8] sm:$0xff] }
  0x38   :  { %2021 = vmatprep.mubr.msk.f32.mxu0 %vm169_vm1, %v38_v52  ;;  %2129 = vmatprep.mubr.msk.f32.mxu1 %vm169_vm1, %v110_v53  ;;  %v141_v51 = vld [vmem:[%s3387_s0 + $0x3f8] sm:$0xff]  ;;  %v70_v52 = vld [vmem:[%s3387_s0 + $0x1c0] sm:$0xff] }
  0x39   :  { %v142_v53 = vld [vmem:[%s3387_s0 + $0x400] sm:$0xff] }
  0x3b   :  { %2022 = vmatmul.mubr.msk.f32.gmra.mxu0 %vm169_vm1, %v39_v54  ;;  %2130 = vmatmul.mubr.msk.f32.gmra.mxu1 %vm169_vm1, %v111_v55  ;;  %v71_v54 = vld [vmem:[%s3387_s0 + $0x1c8] sm:$0xff] }
  0x3c   :  { %2024 = vmatprep.mubr.msk.f32.mxu0 %vm169_vm1, %v40_v56  ;;  %2132 = vmatprep.mubr.msk.f32.mxu1 %vm169_vm1, %v112_v57  ;;  %v143_v55 = vld [vmem:[%s3387_s0 + $0x408] sm:$0xff]  ;;  %v72_v56 = vld [vmem:[%s3387_s0 + $0x1d0] sm:$0xff] }
  0x3d   :  { %v144_v57 = vld [vmem:[%s3387_s0 + $0x410] sm:$0xff] }
  0x3f   :  { %2025 = vmatmul.mubr.msk.f32.gmra.mxu0 %vm169_vm1, %v41_v58  ;;  %2133 = vmatmul.mubr.msk.f32.gmra.mxu1 %vm169_vm1, %v113_v59  ;;  %v73_v58 = vld [vmem:[%s3387_s0 + $0x1d8] sm:$0xff] }
  0x40   :  { %2027 = vmatprep.mubr.msk.f32.mxu0 %vm169_vm1, %v42_v60  ;;  %2135 = vmatprep.mubr.msk.f32.mxu1 %vm169_vm1, %v114_v61  ;;  %v145_v59 = vld [vmem:[%s3387_s0 + $0x418] sm:$0xff]  ;;  %v74_v60 = vld [vmem:[%s3387_s0 + $0x1e0] sm:$0xff] }
  0x41   :  { %v146_v61 = vld [vmem:[%s3387_s0 + $0x420] sm:$0xff] }
  0x43   :  { %2028 = vmatmul.mubr.msk.f32.gmra.mxu0 %vm169_vm1, %v43_v62  ;;  %2136 = vmatmul.mubr.msk.f32.gmra.mxu1 %vm169_vm1, %v115_v63  ;;  %v75_v62 = vld [vmem:[%s3387_s0 + $0x1e8] sm:$0xff] }
  0x44   :  { %2030 = vmatprep.mubr.msk.f32.mxu0 %vm169_vm1, %v44_v0  ;;  %2138 = vmatprep.mubr.msk.f32.mxu1 %vm169_vm1, %v116_v1  ;;  %v147_v63 = vld [vmem:[%s3387_s0 + $0x428] sm:$0xff]  ;;  %v76_v0 = vld [vmem:[%s3387_s0 + $0x1f0] sm:$0xff] }
  0x45   :  { %v148_v1 = vld [vmem:[%s3387_s0 + $0x430] sm:$0xff] }
  0x47   :  { %2031 = vmatmul.mubr.msk.f32.gmra.mxu0 %vm169_vm1, %v45_v2  ;;  %2139 = vmatmul.mubr.msk.f32.gmra.mxu1 %vm169_vm1, %v117_v3  ;;  %v77_v2 = vld [vmem:[%s3387_s0 + $0x1f8] sm:$0xff] }
  0x48   :  { %2033 = vmatprep.mubr.msk.f32.mxu0 %vm169_vm1, %v46_v4  ;;  %2141 = vmatprep.mubr.msk.f32.mxu1 %vm169_vm1, %v118_v5  ;;  %v149_v3 = vld [vmem:[%s3387_s0 + $0x438] sm:$0xff]  ;;  %v78_v4 = vld [vmem:[%s3387_s0 + $0x200] sm:$0xff] }
  0x49   :  { %v150_v5 = vld [vmem:[%s3387_s0 + $0x440] sm:$0xff] }
  0x4b   :  { %2034 = vmatmul.mubr.msk.f32.gmra.mxu0 %vm169_vm1, %v47_v6  ;;  %2142 = vmatmul.mubr.msk.f32.gmra.mxu1 %vm169_vm1, %v119_v7  ;;  %v79_v6 = vld [vmem:[%s3387_s0 + $0x208] sm:$0xff] }
  0x4c   :  { %2036 = vmatprep.mubr.msk.f32.mxu0 %vm169_vm1, %v48_v8  ;;  %2144 = vmatprep.mubr.msk.f32.mxu1 %vm169_vm1, %v120_v9  ;;  %v151_v7 = vld [vmem:[%s3387_s0 + $0x448] sm:$0xff]  ;;  %v80_v8 = vld [vmem:[%s3387_s0 + $0x210] sm:$0xff] }
  0x4d   :  { %v152_v9 = vld [vmem:[%s3387_s0 + $0x450] sm:$0xff] }
  0x4f   :  { %2037 = vmatmul.mubr.msk.f32.gmra.mxu0 %vm169_vm1, %v49_v10  ;;  %2145 = vmatmul.mubr.msk.f32.gmra.mxu1 %vm169_vm1, %v121_v11  ;;  %v81_v10 = vld [vmem:[%s3387_s0 + $0x218] sm:$0xff] }
  0x50   :  { %2039 = vmatprep.mubr.msk.f32.mxu0 %vm169_vm1, %v50_v12  ;;  %2147 = vmatprep.mubr.msk.f32.mxu1 %vm169_vm1, %v122_v13  ;;  %v153_v11 = vld [vmem:[%s3387_s0 + $0x458] sm:$0xff]  ;;  %v82_v12 = vld [vmem:[%s3387_s0 + $0x220] sm:$0xff] }
  0x51   :  { %v154_v13 = vld [vmem:[%s3387_s0 + $0x460] sm:$0xff] }
  0x53   :  { %2040 = vmatmul.mubr.msk.f32.gmra.mxu0 %vm169_vm1, %v51_v14  ;;  %2148 = vmatmul.mubr.msk.f32.gmra.mxu1 %vm169_vm1, %v123_v15  ;;  %v83_v14 = vld [vmem:[%s3387_s0 + $0x228] sm:$0xff] }
  0x54   :  { %2042 = vmatprep.mubr.msk.f32.mxu0 %vm169_vm1, %v52_v16  ;;  %2150 = vmatprep.mubr.msk.f32.mxu1 %vm169_vm1, %v124_v17  ;;  %v155_v15 = vld [vmem:[%s3387_s0 + $0x468] sm:$0xff]  ;;  %v84_v16 = vld [vmem:[%s3387_s0 + $0x230] sm:$0xff] }
  0x55   :  { %v156_v17 = vld [vmem:[%s3387_s0 + $0x470] sm:$0xff] }
  0x57   :  { %2043 = vmatmul.mubr.msk.f32.gmra.mxu0 %vm169_vm1, %v53_v18  ;;  %2151 = vmatmul.mubr.msk.f32.gmra.mxu1 %vm169_vm1, %v125_v19  ;;  %v85_v18 = vld [vmem:[%s3387_s0 + $0x238] sm:$0xff] }
  0x58   :  { %2045 = vmatprep.mubr.msk.f32.mxu0 %vm169_vm1, %v54_v20  ;;  %2153 = vmatprep.mubr.msk.f32.mxu1 %vm169_vm1, %v126_v21  ;;  %v157_v19 = vld [vmem:[%s3387_s0 + $0x478] sm:$0xff]  ;;  %v2821_v20 = vld [vmem:[%s3388_s2] ss:$0 sm:$0xff] }
  0x5b   :  { %2046 = vmatmul.mubr.msk.f32.gmra.mxu0 %vm169_vm1, %v55_v22  ;;  %2154 = vmatmul.mubr.msk.f32.gmra.mxu1 %vm169_vm1, %v127_v23 }
  0x5c   :  { %2048 = vmatprep.mubr.msk.f32.mxu0 %vm169_vm1, %v56_v24  ;;  %2156 = vmatprep.mubr.msk.f32.mxu1 %vm169_vm1, %v128_v25 }
  0x5f   :  { %2049 = vmatmul.mubr.msk.f32.gmra.mxu0 %vm169_vm1, %v57_v26  ;;  %2157 = vmatmul.mubr.msk.f32.gmra.mxu1 %vm169_vm1, %v129_v27 }
  0x60   :  { %2051 = vmatprep.mubr.msk.f32.mxu0 %vm169_vm1, %v58_v28  ;;  %2159 = vmatprep.mubr.msk.f32.mxu1 %vm169_vm1, %v130_v29 }
  0x63   :  { %2052 = vmatmul.mubr.msk.f32.gmra.mxu0 %vm169_vm1, %v59_v30  ;;  %2160 = vmatmul.mubr.msk.f32.gmra.mxu1 %vm169_vm1, %v131_v31 }
  0x64   :  { %2054 = vmatprep.mubr.msk.f32.mxu0 %vm169_vm1, %v60_v32  ;;  %2162 = vmatprep.mubr.msk.f32.mxu1 %vm169_vm1, %v132_v33 }
  0x67   :  { %2055 = vmatmul.mubr.msk.f32.gmra.mxu0 %vm169_vm1, %v61_v34  ;;  %2163 = vmatmul.mubr.msk.f32.gmra.mxu1 %vm169_vm1, %v133_v35 }
  0x68   :  { %2057 = vmatprep.mubr.msk.f32.mxu0 %vm169_vm1, %v62_v36  ;;  %2165 = vmatprep.mubr.msk.f32.mxu1 %vm169_vm1, %v134_v37 }
  0x6b   :  { %2058 = vmatmul.mubr.msk.f32.gmra.mxu0 %vm169_vm1, %v63_v38  ;;  %2166 = vmatmul.mubr.msk.f32.gmra.mxu1 %vm169_vm1, %v135_v39 }
  0x6c   :  { %2060 = vmatprep.mubr.msk.f32.mxu0 %vm169_vm1, %v64_v40  ;;  %2168 = vmatprep.mubr.msk.f32.mxu1 %vm169_vm1, %v136_v41 }
  0x6f   :  { %2061 = vmatmul.mubr.msk.f32.gmra.mxu0 %vm169_vm1, %v65_v42  ;;  %2169 = vmatmul.mubr.msk.f32.gmra.mxu1 %vm169_vm1, %v137_v43 }
  0x70   :  { %2063 = vmatprep.mubr.msk.f32.mxu0 %vm169_vm1, %v66_v44  ;;  %2171 = vmatprep.mubr.msk.f32.mxu1 %vm169_vm1, %v138_v45 }
  0x73   :  { %2064 = vmatmul.mubr.msk.f32.gmra.mxu0 %vm169_vm1, %v67_v46  ;;  %2172 = vmatmul.mubr.msk.f32.gmra.mxu1 %vm169_vm1, %v139_v47 }
  0x74   :  { %2066 = vmatprep.mubr.msk.f32.mxu0 %vm169_vm1, %v68_v48  ;;  %2174 = vmatprep.mubr.msk.f32.mxu1 %vm169_vm1, %v140_v49 }
  0x77   :  { %2067 = vmatmul.mubr.msk.f32.gmra.mxu0 %vm169_vm1, %v69_v50  ;;  %2175 = vmatmul.mubr.msk.f32.gmra.mxu1 %vm169_vm1, %v141_v51 }
  0x78   :  { %2069 = vmatprep.mubr.msk.f32.mxu0 %vm169_vm1, %v70_v52  ;;  %2177 = vmatprep.mubr.msk.f32.mxu1 %vm169_vm1, %v142_v53 }
  0x7b   :  { %2070 = vmatmul.mubr.msk.f32.gmra.mxu0 %vm169_vm1, %v71_v54  ;;  %2178 = vmatmul.mubr.msk.f32.gmra.mxu1 %vm169_vm1, %v143_v55 }
  0x7c   :  { %2072 = vmatprep.mubr.msk.f32.mxu0 %vm169_vm1, %v72_v56  ;;  %2180 = vmatprep.mubr.msk.f32.mxu1 %vm169_vm1, %v144_v57 }
  0x7f   :  { %2073 = vmatmul.mubr.msk.f32.gmra.mxu0 %vm169_vm1, %v73_v58  ;;  %2181 = vmatmul.mubr.msk.f32.gmra.mxu1 %vm169_vm1, %v145_v59 }
  0x80   :  { %2075 = vmatprep.mubr.msk.f32.mxu0 %vm169_vm1, %v74_v60  ;;  %2183 = vmatprep.mubr.msk.f32.mxu1 %vm169_vm1, %v146_v61 }
  0x83   :  { %2076 = vmatmul.mubr.msk.f32.gmra.mxu0 %vm169_vm1, %v75_v62  ;;  %2184 = vmatmul.mubr.msk.f32.gmra.mxu1 %vm169_vm1, %v147_v63 }
  0x84   :  { %2078 = vmatprep.mubr.msk.f32.mxu0 %vm169_vm1, %v76_v0  ;;  %2186 = vmatprep.mubr.msk.f32.mxu1 %vm169_vm1, %v148_v1 }
  0x87   :  { %2079 = vmatmul.mubr.msk.f32.gmra.mxu0 %vm169_vm1, %v77_v2  ;;  %2187 = vmatmul.mubr.msk.f32.gmra.mxu1 %vm169_vm1, %v149_v3 }
  0x88   :  { %2081 = vmatprep.mubr.msk.f32.mxu0 %vm169_vm1, %v78_v4  ;;  %2189 = vmatprep.mubr.msk.f32.mxu1 %vm169_vm1, %v150_v5 }
  0x8b   :  { %2082 = vmatmul.mubr.msk.f32.gmra.mxu0 %vm169_vm1, %v79_v6  ;;  %2190 = vmatmul.mubr.msk.f32.gmra.mxu1 %vm169_vm1, %v151_v7 }
  0x8c   :  { %2084 = vmatprep.mubr.msk.f32.mxu0 %vm169_vm1, %v80_v8  ;;  %2192 = vmatprep.mubr.msk.f32.mxu1 %vm169_vm1, %v152_v9 }
  0x8f   :  { %2085 = vmatmul.mubr.msk.f32.gmra.mxu0 %vm169_vm1, %v81_v10  ;;  %2193 = vmatmul.mubr.msk.f32.gmra.mxu1 %vm169_vm1, %v153_v11 }
  0x90   :  { %2087 = vmatprep.mubr.msk.f32.mxu0 %vm169_vm1, %v82_v12  ;;  %2195 = vmatprep.mubr.msk.f32.mxu1 %vm169_vm1, %v154_v13 }
  0x93   :  { %2088 = vmatmul.mubr.msk.f32.gmra.mxu0 %vm169_vm1, %v83_v14  ;;  %2196 = vmatmul.mubr.msk.f32.gmra.mxu1 %vm169_vm1, %v155_v15 }
  0x94   :  { %2090 = vmatprep.mubr.msk.f32.mxu0 %vm169_vm1, %v84_v16  ;;  %2198 = vmatprep.mubr.msk.f32.mxu1 %vm169_vm1, %v156_v17 }
  0x97   :  { %2091 = vmatmul.mubr.msk.f32.gmra.mxu0 %vm169_vm1, %v85_v18  ;;  %2199 = vmatmul.mubr.msk.f32.gmra.mxu1 %vm169_vm1, %v157_v19 }
  0xcb   :  { %v1987_v21 = vpop.f32.mrf.mxu0  ;;  %v2095_v22 = vpop.f32.mrf.mxu1 }
  0xcc   :  { %v678_v23 = vadd.f32 %v1987_v21, %v2821_v20  ;;  %v1038_v24 = vadd.f32 %v2095_v22, %v2821_v20 }
  0xcd   :  { %v672_v25 = vpop.f32.mrf.mxu0  ;;  %v1032_v26 = vpop.f32.mrf.mxu1 }
  0xce   :  { %v1392_v27 = vmax.f32 %v678_v23, 0.0  ;;  %v1464_v28 = vmax.f32 %v1038_v24, 0.0  ;;  %v673_v29 = vadd.f32 %v2821_v20, %v672_v25  ;;  %v1033_v30 = vadd.f32 %v2821_v20, %v1032_v26 }
  0xcf   :  { %v1990_v31 = vpop.f32.mrf.mxu0  ;;  %v2098_v32 = vpop.f32.mrf.mxu1 }
  0xd0   :  { %1536 = vst [vmem:[%s3389_s3 + $0x8] sm:$0xff] %v1392_v27  ;;  %1608 = vst [vmem:[%s3389_s3 + $0x248] sm:$0xff] %v1464_v28  ;;  %v1391_v33 = vmax.f32 %v673_v29, 0.0  ;;  %v1463_v34 = vmax.f32 %v1033_v30, 0.0  ;;  %v688_v35 = vadd.f32 %v1990_v31, %v2821_v20  ;;  %v1048_v36 = vadd.f32 %v2098_v32, %v2821_v20 }
  0xd1   :  { %v682_v37 = vpop.f32.mrf.mxu0  ;;  %v1042_v38 = vpop.f32.mrf.mxu1 }
  0xd2   :  { %1535 = vst [vmem:[%s3389_s3] sm:$0xff] %v1391_v33  ;;  %1607 = vst [vmem:[%s3389_s3 + $0x240] sm:$0xff] %v1463_v34  ;;  %v1394_v39 = vmax.f32 %v688_v35, 0.0  ;;  %v1466_v40 = vmax.f32 %v1048_v36, 0.0  ;;  %v683_v41 = vadd.f32 %v2821_v20, %v682_v37  ;;  %v1043_v42 = vadd.f32 %v2821_v20, %v1042_v38 }
  0xd3   :  { %v1993_v43 = vpop.f32.mrf.mxu0  ;;  %v2101_v44 = vpop.f32.mrf.mxu1 }
  0xd4   :  { %1538 = vst [vmem:[%s3389_s3 + $0x18] sm:$0xff] %v1394_v39  ;;  %1610 = vst [vmem:[%s3389_s3 + $0x258] sm:$0xff] %v1466_v40  ;;  %v1393_v45 = vmax.f32 %v683_v41, 0.0  ;;  %v1465_v46 = vmax.f32 %v1043_v42, 0.0  ;;  %v698_v47 = vadd.f32 %v1993_v43, %v2821_v20  ;;  %v1058_v48 = vadd.f32 %v2101_v44, %v2821_v20 }
  0xd5   :  { %v692_v49 = vpop.f32.mrf.mxu0  ;;  %v1052_v50 = vpop.f32.mrf.mxu1 }
  0xd6   :  { %1537 = vst [vmem:[%s3389_s3 + $0x10] sm:$0xff] %v1393_v45  ;;  %1609 = vst [vmem:[%s3389_s3 + $0x250] sm:$0xff] %v1465_v46  ;;  %v1396_v51 = vmax.f32 %v698_v47, 0.0  ;;  %v1468_v52 = vmax.f32 %v1058_v48, 0.0  ;;  %v693_v53 = vadd.f32 %v2821_v20, %v692_v49  ;;  %v1053_v54 = vadd.f32 %v2821_v20, %v1052_v50 }
  0xd7   :  { %v1996_v55 = vpop.f32.mrf.mxu0  ;;  %v2104_v56 = vpop.f32.mrf.mxu1 }
  0xd8   :  { %1540 = vst [vmem:[%s3389_s3 + $0x28] sm:$0xff] %v1396_v51  ;;  %1612 = vst [vmem:[%s3389_s3 + $0x268] sm:$0xff] %v1468_v52  ;;  %v1395_v57 = vmax.f32 %v693_v53, 0.0  ;;  %v1467_v58 = vmax.f32 %v1053_v54, 0.0  ;;  %v708_v59 = vadd.f32 %v1996_v55, %v2821_v20  ;;  %v1068_v60 = vadd.f32 %v2104_v56, %v2821_v20 }
  0xd9   :  { %v702_v61 = vpop.f32.mrf.mxu0  ;;  %v1062_v62 = vpop.f32.mrf.mxu1 }
  0xda   :  { %1539 = vst [vmem:[%s3389_s3 + $0x20] sm:$0xff] %v1395_v57  ;;  %1611 = vst [vmem:[%s3389_s3 + $0x260] sm:$0xff] %v1467_v58  ;;  %v1398_v63 = vmax.f32 %v708_v59, 0.0  ;;  %v1470_v0 = vmax.f32 %v1068_v60, 0.0  ;;  %v703_v1 = vadd.f32 %v2821_v20, %v702_v61  ;;  %v1063_v2 = vadd.f32 %v2821_v20, %v1062_v62 }
  0xdb   :  { %v1999_v3 = vpop.f32.mrf.mxu0  ;;  %v2107_v4 = vpop.f32.mrf.mxu1 }
  0xdc   :  { %1542 = vst [vmem:[%s3389_s3 + $0x38] sm:$0xff] %v1398_v63  ;;  %1614 = vst [vmem:[%s3389_s3 + $0x278] sm:$0xff] %v1470_v0  ;;  %v1397_v5 = vmax.f32 %v703_v1, 0.0  ;;  %v1469_v6 = vmax.f32 %v1063_v2, 0.0  ;;  %v718_v7 = vadd.f32 %v1999_v3, %v2821_v20  ;;  %v1078_v8 = vadd.f32 %v2107_v4, %v2821_v20 }
  0xdd   :  { %v712_v9 = vpop.f32.mrf.mxu0  ;;  %v1072_v10 = vpop.f32.mrf.mxu1 }
  0xde   :  { %1541 = vst [vmem:[%s3389_s3 + $0x30] sm:$0xff] %v1397_v5  ;;  %1613 = vst [vmem:[%s3389_s3 + $0x270] sm:$0xff] %v1469_v6  ;;  %v1400_v11 = vmax.f32 %v718_v7, 0.0  ;;  %v1472_v12 = vmax.f32 %v1078_v8, 0.0  ;;  %v713_v13 = vadd.f32 %v2821_v20, %v712_v9  ;;  %v1073_v14 = vadd.f32 %v2821_v20, %v1072_v10 }
  0xdf   :  { %v2002_v15 = vpop.f32.mrf.mxu0  ;;  %v2110_v16 = vpop.f32.mrf.mxu1 }
  0xe0   :  { %1544 = vst [vmem:[%s3389_s3 + $0x48] sm:$0xff] %v1400_v11  ;;  %1616 = vst [vmem:[%s3389_s3 + $0x288] sm:$0xff] %v1472_v12  ;;  %v1399_v17 = vmax.f32 %v713_v13, 0.0  ;;  %v1471_v18 = vmax.f32 %v1073_v14, 0.0  ;;  %v728_v19 = vadd.f32 %v2002_v15, %v2821_v20  ;;  %v1088_v21 = vadd.f32 %v2110_v16, %v2821_v20 }
  0xe1   :  { %v722_v22 = vpop.f32.mrf.mxu0  ;;  %v1082_v23 = vpop.f32.mrf.mxu1 }
  0xe2   :  { %1543 = vst [vmem:[%s3389_s3 + $0x40] sm:$0xff] %v1399_v17  ;;  %1615 = vst [vmem:[%s3389_s3 + $0x280] sm:$0xff] %v1471_v18  ;;  %v1402_v24 = vmax.f32 %v728_v19, 0.0  ;;  %v1474_v25 = vmax.f32 %v1088_v21, 0.0  ;;  %v723_v26 = vadd.f32 %v2821_v20, %v722_v22  ;;  %v1083_v27 = vadd.f32 %v2821_v20, %v1082_v23 }
  0xe3   :  { %v2005_v28 = vpop.f32.mrf.mxu0  ;;  %v2113_v29 = vpop.f32.mrf.mxu1 }
  0xe4   :  { %1546 = vst [vmem:[%s3389_s3 + $0x58] sm:$0xff] %v1402_v24  ;;  %1618 = vst [vmem:[%s3389_s3 + $0x298] sm:$0xff] %v1474_v25  ;;  %v1401_v30 = vmax.f32 %v723_v26, 0.0  ;;  %v1473_v31 = vmax.f32 %v1083_v27, 0.0  ;;  %v738_v32 = vadd.f32 %v2005_v28, %v2821_v20  ;;  %v1098_v33 = vadd.f32 %v2113_v29, %v2821_v20 }
  0xe5   :  { %v732_v34 = vpop.f32.mrf.mxu0  ;;  %v1092_v35 = vpop.f32.mrf.mxu1 }
  0xe6   :  { %1545 = vst [vmem:[%s3389_s3 + $0x50] sm:$0xff] %v1401_v30  ;;  %1617 = vst [vmem:[%s3389_s3 + $0x290] sm:$0xff] %v1473_v31  ;;  %v1404_v36 = vmax.f32 %v738_v32, 0.0  ;;  %v1476_v37 = vmax.f32 %v1098_v33, 0.0  ;;  %v733_v38 = vadd.f32 %v2821_v20, %v732_v34  ;;  %v1093_v39 = vadd.f32 %v2821_v20, %v1092_v35 }
  0xe7   :  { %v2008_v40 = vpop.f32.mrf.mxu0  ;;  %v2116_v41 = vpop.f32.mrf.mxu1 }
  0xe8   :  { %1548 = vst [vmem:[%s3389_s3 + $0x68] sm:$0xff] %v1404_v36  ;;  %1620 = vst [vmem:[%s3389_s3 + $0x2a8] sm:$0xff] %v1476_v37  ;;  %v1403_v42 = vmax.f32 %v733_v38, 0.0  ;;  %v1475_v43 = vmax.f32 %v1093_v39, 0.0  ;;  %v748_v44 = vadd.f32 %v2008_v40, %v2821_v20  ;;  %v1108_v45 = vadd.f32 %v2116_v41, %v2821_v20 }
  0xe9   :  { %v742_v46 = vpop.f32.mrf.mxu0  ;;  %v1102_v47 = vpop.f32.mrf.mxu1 }
  0xea   :  { %1547 = vst [vmem:[%s3389_s3 + $0x60] sm:$0xff] %v1403_v42  ;;  %1619 = vst [vmem:[%s3389_s3 + $0x2a0] sm:$0xff] %v1475_v43  ;;  %v1406_v48 = vmax.f32 %v748_v44, 0.0  ;;  %v1478_v49 = vmax.f32 %v1108_v45, 0.0  ;;  %v743_v50 = vadd.f32 %v2821_v20, %v742_v46  ;;  %v1103_v51 = vadd.f32 %v2821_v20, %v1102_v47 }
  0xeb   :  { %v2011_v52 = vpop.f32.mrf.mxu0  ;;  %v2119_v53 = vpop.f32.mrf.mxu1 }
  0xec   :  { %1550 = vst [vmem:[%s3389_s3 + $0x78] sm:$0xff] %v1406_v48  ;;  %1622 = vst [vmem:[%s3389_s3 + $0x2b8] sm:$0xff] %v1478_v49  ;;  %v1405_v54 = vmax.f32 %v743_v50, 0.0  ;;  %v1477_v55 = vmax.f32 %v1103_v51, 0.0  ;;  %v758_v56 = vadd.f32 %v2011_v52, %v2821_v20  ;;  %v1118_v57 = vadd.f32 %v2119_v53, %v2821_v20 }
  0xed   :  { %v752_v58 = vpop.f32.mrf.mxu0  ;;  %v1112_v59 = vpop.f32.mrf.mxu1 }
  0xee   :  { %1549 = vst [vmem:[%s3389_s3 + $0x70] sm:$0xff] %v1405_v54  ;;  %1621 = vst [vmem:[%s3389_s3 + $0x2b0] sm:$0xff] %v1477_v55  ;;  %v1408_v60 = vmax.f32 %v758_v56, 0.0  ;;  %v1480_v61 = vmax.f32 %v1118_v57, 0.0  ;;  %v753_v62 = vadd.f32 %v2821_v20, %v752_v58  ;;  %v1113_v63 = vadd.f32 %v2821_v20, %v1112_v59 }
  0xef   :  { %v2014_v0 = vpop.f32.mrf.mxu0  ;;  %v2122_v1 = vpop.f32.mrf.mxu1 }
  0xf0   :  { %1552 = vst [vmem:[%s3389_s3 + $0x88] sm:$0xff] %v1408_v60  ;;  %1624 = vst [vmem:[%s3389_s3 + $0x2c8] sm:$0xff] %v1480_v61  ;;  %v1407_v2 = vmax.f32 %v753_v62, 0.0  ;;  %v1479_v3 = vmax.f32 %v1113_v63, 0.0  ;;  %v768_v4 = vadd.f32 %v2014_v0, %v2821_v20  ;;  %v1128_v5 = vadd.f32 %v2122_v1, %v2821_v20 }
  0xf1   :  { %v762_v6 = vpop.f32.mrf.mxu0  ;;  %v1122_v7 = vpop.f32.mrf.mxu1 }
  0xf2   :  { %1551 = vst [vmem:[%s3389_s3 + $0x80] sm:$0xff] %v1407_v2  ;;  %1623 = vst [vmem:[%s3389_s3 + $0x2c0] sm:$0xff] %v1479_v3  ;;  %v1410_v8 = vmax.f32 %v768_v4, 0.0  ;;  %v1482_v9 = vmax.f32 %v1128_v5, 0.0  ;;  %v763_v10 = vadd.f32 %v2821_v20, %v762_v6  ;;  %v1123_v11 = vadd.f32 %v2821_v20, %v1122_v7 }
  0xf3   :  { %v2017_v12 = vpop.f32.mrf.mxu0  ;;  %v2125_v13 = vpop.f32.mrf.mxu1 }
  0xf4   :  { %1554 = vst [vmem:[%s3389_s3 + $0x98] sm:$0xff] %v1410_v8  ;;  %1626 = vst [vmem:[%s3389_s3 + $0x2d8] sm:$0xff] %v1482_v9  ;;  %v1409_v14 = vmax.f32 %v763_v10, 0.0  ;;  %v1481_v15 = vmax.f32 %v1123_v11, 0.0  ;;  %v778_v16 = vadd.f32 %v2017_v12, %v2821_v20  ;;  %v1138_v17 = vadd.f32 %v2125_v13, %v2821_v20 }
  0xf5   :  { %v772_v18 = vpop.f32.mrf.mxu0  ;;  %v1132_v19 = vpop.f32.mrf.mxu1 }
  0xf6   :  { %1553 = vst [vmem:[%s3389_s3 + $0x90] sm:$0xff] %v1409_v14  ;;  %1625 = vst [vmem:[%s3389_s3 + $0x2d0] sm:$0xff] %v1481_v15  ;;  %v1412_v21 = vmax.f32 %v778_v16, 0.0  ;;  %v1484_v22 = vmax.f32 %v1138_v17, 0.0  ;;  %v773_v23 = vadd.f32 %v2821_v20, %v772_v18  ;;  %v1133_v24 = vadd.f32 %v2821_v20, %v1132_v19 }
  0xf7   :  { %v2020_v25 = vpop.f32.mrf.mxu0  ;;  %v2128_v26 = vpop.f32.mrf.mxu1 }
  0xf8   :  { %1556 = vst [vmem:[%s3389_s3 + $0xa8] sm:$0xff] %v1412_v21  ;;  %1628 = vst [vmem:[%s3389_s3 + $0x2e8] sm:$0xff] %v1484_v22  ;;  %v1411_v27 = vmax.f32 %v773_v23, 0.0  ;;  %v1483_v28 = vmax.f32 %v1133_v24, 0.0  ;;  %v788_v29 = vadd.f32 %v2020_v25, %v2821_v20  ;;  %v1148_v30 = vadd.f32 %v2128_v26, %v2821_v20 }
  0xf9   :  { %v782_v31 = vpop.f32.mrf.mxu0  ;;  %v1142_v32 = vpop.f32.mrf.mxu1 }
  0xfa   :  { %1555 = vst [vmem:[%s3389_s3 + $0xa0] sm:$0xff] %v1411_v27  ;;  %1627 = vst [vmem:[%s3389_s3 + $0x2e0] sm:$0xff] %v1483_v28  ;;  %v1414_v33 = vmax.f32 %v788_v29, 0.0  ;;  %v1486_v34 = vmax.f32 %v1148_v30, 0.0  ;;  %v783_v35 = vadd.f32 %v2821_v20, %v782_v31  ;;  %v1143_v36 = vadd.f32 %v2821_v20, %v1142_v32 }
  0xfb   :  { %v2023_v37 = vpop.f32.mrf.mxu0  ;;  %v2131_v38 = vpop.f32.mrf.mxu1 }
  0xfc   :  { %1558 = vst [vmem:[%s3389_s3 + $0xb8] sm:$0xff] %v1414_v33  ;;  %1630 = vst [vmem:[%s3389_s3 + $0x2f8] sm:$0xff] %v1486_v34  ;;  %v1413_v39 = vmax.f32 %v783_v35, 0.0  ;;  %v1485_v40 = vmax.f32 %v1143_v36, 0.0  ;;  %v798_v41 = vadd.f32 %v2023_v37, %v2821_v20  ;;  %v1158_v42 = vadd.f32 %v2131_v38, %v2821_v20 }
  0xfd   :  { %v792_v43 = vpop.f32.mrf.mxu0  ;;  %v1152_v44 = vpop.f32.mrf.mxu1 }
  0xfe   :  { %1557 = vst [vmem:[%s3389_s3 + $0xb0] sm:$0xff] %v1413_v39  ;;  %1629 = vst [vmem:[%s3389_s3 + $0x2f0] sm:$0xff] %v1485_v40  ;;  %v1416_v45 = vmax.f32 %v798_v41, 0.0  ;;  %v1488_v46 = vmax.f32 %v1158_v42, 0.0  ;;  %v793_v47 = vadd.f32 %v2821_v20, %v792_v43  ;;  %v1153_v48 = vadd.f32 %v2821_v20, %v1152_v44 }
  0xff   :  { %v2026_v49 = vpop.f32.mrf.mxu0  ;;  %v2134_v50 = vpop.f32.mrf.mxu1 }
 0x100   :  { %1560 = vst [vmem:[%s3389_s3 + $0xc8] sm:$0xff] %v1416_v45  ;;  %1632 = vst [vmem:[%s3389_s3 + $0x308] sm:$0xff] %v1488_v46  ;;  %v1415_v51 = vmax.f32 %v793_v47, 0.0  ;;  %v1487_v52 = vmax.f32 %v1153_v48, 0.0  ;;  %v808_v53 = vadd.f32 %v2026_v49, %v2821_v20  ;;  %v1168_v54 = vadd.f32 %v2134_v50, %v2821_v20 }
 0x101   :  { %v802_v55 = vpop.f32.mrf.mxu0  ;;  %v1162_v56 = vpop.f32.mrf.mxu1 }
 0x102   :  { %1559 = vst [vmem:[%s3389_s3 + $0xc0] sm:$0xff] %v1415_v51  ;;  %1631 = vst [vmem:[%s3389_s3 + $0x300] sm:$0xff] %v1487_v52  ;;  %v1418_v57 = vmax.f32 %v808_v53, 0.0  ;;  %v1490_v58 = vmax.f32 %v1168_v54, 0.0  ;;  %v803_v59 = vadd.f32 %v2821_v20, %v802_v55  ;;  %v1163_v60 = vadd.f32 %v2821_v20, %v1162_v56 }
 0x103   :  { %v2029_v61 = vpop.f32.mrf.mxu0  ;;  %v2137_v62 = vpop.f32.mrf.mxu1 }
 0x104   :  { %1562 = vst [vmem:[%s3389_s3 + $0xd8] sm:$0xff] %v1418_v57  ;;  %1634 = vst [vmem:[%s3389_s3 + $0x318] sm:$0xff] %v1490_v58  ;;  %v1417_v63 = vmax.f32 %v803_v59, 0.0  ;;  %v1489_v0 = vmax.f32 %v1163_v60, 0.0  ;;  %v818_v1 = vadd.f32 %v2029_v61, %v2821_v20  ;;  %v1178_v2 = vadd.f32 %v2137_v62, %v2821_v20 }
 0x105   :  { %v812_v3 = vpop.f32.mrf.mxu0  ;;  %v1172_v4 = vpop.f32.mrf.mxu1 }
 0x106   :  { %1561 = vst [vmem:[%s3389_s3 + $0xd0] sm:$0xff] %v1417_v63  ;;  %1633 = vst [vmem:[%s3389_s3 + $0x310] sm:$0xff] %v1489_v0  ;;  %v1420_v5 = vmax.f32 %v818_v1, 0.0  ;;  %v1492_v6 = vmax.f32 %v1178_v2, 0.0  ;;  %v813_v7 = vadd.f32 %v2821_v20, %v812_v3  ;;  %v1173_v8 = vadd.f32 %v2821_v20, %v1172_v4 }
 0x107   :  { %v2032_v9 = vpop.f32.mrf.mxu0  ;;  %v2140_v10 = vpop.f32.mrf.mxu1 }
 0x108   :  { %1564 = vst [vmem:[%s3389_s3 + $0xe8] sm:$0xff] %v1420_v5  ;;  %1636 = vst [vmem:[%s3389_s3 + $0x328] sm:$0xff] %v1492_v6  ;;  %v1419_v11 = vmax.f32 %v813_v7, 0.0  ;;  %v1491_v12 = vmax.f32 %v1173_v8, 0.0  ;;  %v828_v13 = vadd.f32 %v2032_v9, %v2821_v20  ;;  %v1188_v14 = vadd.f32 %v2140_v10, %v2821_v20 }
 0x109   :  { %v822_v15 = vpop.f32.mrf.mxu0  ;;  %v1182_v16 = vpop.f32.mrf.mxu1 }
 0x10a   :  { %1563 = vst [vmem:[%s3389_s3 + $0xe0] sm:$0xff] %v1419_v11  ;;  %1635 = vst [vmem:[%s3389_s3 + $0x320] sm:$0xff] %v1491_v12  ;;  %v1422_v17 = vmax.f32 %v828_v13, 0.0  ;;  %v1494_v18 = vmax.f32 %v1188_v14, 0.0  ;;  %v823_v19 = vadd.f32 %v2821_v20, %v822_v15  ;;  %v1183_v21 = vadd.f32 %v2821_v20, %v1182_v16 }
 0x10b   :  { %v2035_v22 = vpop.f32.mrf.mxu0  ;;  %v2143_v23 = vpop.f32.mrf.mxu1 }
 0x10c   :  { %1566 = vst [vmem:[%s3389_s3 + $0xf8] sm:$0xff] %v1422_v17  ;;  %1638 = vst [vmem:[%s3389_s3 + $0x338] sm:$0xff] %v1494_v18  ;;  %v1421_v24 = vmax.f32 %v823_v19, 0.0  ;;  %v1493_v25 = vmax.f32 %v1183_v21, 0.0  ;;  %v838_v26 = vadd.f32 %v2035_v22, %v2821_v20  ;;  %v1198_v27 = vadd.f32 %v2143_v23, %v2821_v20 }
 0x10d   :  { %v832_v28 = vpop.f32.mrf.mxu0  ;;  %v1192_v29 = vpop.f32.mrf.mxu1 }
 0x10e   :  { %1565 = vst [vmem:[%s3389_s3 + $0xf0] sm:$0xff] %v1421_v24  ;;  %1637 = vst [vmem:[%s3389_s3 + $0x330] sm:$0xff] %v1493_v25  ;;  %v1424_v30 = vmax.f32 %v838_v26, 0.0  ;;  %v1496_v31 = vmax.f32 %v1198_v27, 0.0  ;;  %v833_v32 = vadd.f32 %v2821_v20, %v832_v28  ;;  %v1193_v33 = vadd.f32 %v2821_v20, %v1192_v29 }
 0x10f   :  { %v2038_v34 = vpop.f32.mrf.mxu0  ;;  %v2146_v35 = vpop.f32.mrf.mxu1 }
 0x110   :  { %1568 = vst [vmem:[%s3389_s3 + $0x108] sm:$0xff] %v1424_v30  ;;  %1640 = vst [vmem:[%s3389_s3 + $0x348] sm:$0xff] %v1496_v31  ;;  %v1423_v36 = vmax.f32 %v833_v32, 0.0  ;;  %v1495_v37 = vmax.f32 %v1193_v33, 0.0  ;;  %v848_v38 = vadd.f32 %v2038_v34, %v2821_v20  ;;  %v1208_v39 = vadd.f32 %v2146_v35, %v2821_v20 }
 0x111   :  { %v842_v40 = vpop.f32.mrf.mxu0  ;;  %v1202_v41 = vpop.f32.mrf.mxu1 }
 0x112   :  { %1567 = vst [vmem:[%s3389_s3 + $0x100] sm:$0xff] %v1423_v36  ;;  %1639 = vst [vmem:[%s3389_s3 + $0x340] sm:$0xff] %v1495_v37  ;;  %v1426_v42 = vmax.f32 %v848_v38, 0.0  ;;  %v1498_v43 = vmax.f32 %v1208_v39, 0.0  ;;  %v843_v44 = vadd.f32 %v2821_v20, %v842_v40  ;;  %v1203_v45 = vadd.f32 %v2821_v20, %v1202_v41 }
 0x113   :  { %v2041_v46 = vpop.f32.mrf.mxu0  ;;  %v2149_v47 = vpop.f32.mrf.mxu1 }
 0x114   :  { %1570 = vst [vmem:[%s3389_s3 + $0x118] sm:$0xff] %v1426_v42  ;;  %1642 = vst [vmem:[%s3389_s3 + $0x358] sm:$0xff] %v1498_v43  ;;  %v1425_v48 = vmax.f32 %v843_v44, 0.0  ;;  %v1497_v49 = vmax.f32 %v1203_v45, 0.0  ;;  %v858_v50 = vadd.f32 %v2041_v46, %v2821_v20  ;;  %v1218_v51 = vadd.f32 %v2149_v47, %v2821_v20 }
 0x115   :  { %v852_v52 = vpop.f32.mrf.mxu0  ;;  %v1212_v53 = vpop.f32.mrf.mxu1 }
 0x116   :  { %1569 = vst [vmem:[%s3389_s3 + $0x110] sm:$0xff] %v1425_v48  ;;  %1641 = vst [vmem:[%s3389_s3 + $0x350] sm:$0xff] %v1497_v49  ;;  %v1428_v54 = vmax.f32 %v858_v50, 0.0  ;;  %v1500_v55 = vmax.f32 %v1218_v51, 0.0  ;;  %v853_v56 = vadd.f32 %v2821_v20, %v852_v52  ;;  %v1213_v57 = vadd.f32 %v2821_v20, %v1212_v53 }
 0x117   :  { %v2044_v58 = vpop.f32.mrf.mxu0  ;;  %v2152_v59 = vpop.f32.mrf.mxu1 }
 0x118   :  { %1572 = vst [vmem:[%s3389_s3 + $0x128] sm:$0xff] %v1428_v54  ;;  %1644 = vst [vmem:[%s3389_s3 + $0x368] sm:$0xff] %v1500_v55  ;;  %v1427_v60 = vmax.f32 %v853_v56, 0.0  ;;  %v1499_v61 = vmax.f32 %v1213_v57, 0.0  ;;  %v868_v62 = vadd.f32 %v2044_v58, %v2821_v20  ;;  %v1228_v63 = vadd.f32 %v2152_v59, %v2821_v20 }
 0x119   :  { %v862_v0 = vpop.f32.mrf.mxu0  ;;  %v1222_v1 = vpop.f32.mrf.mxu1 }
 0x11a   :  { %1571 = vst [vmem:[%s3389_s3 + $0x120] sm:$0xff] %v1427_v60  ;;  %1643 = vst [vmem:[%s3389_s3 + $0x360] sm:$0xff] %v1499_v61  ;;  %v1430_v2 = vmax.f32 %v868_v62, 0.0  ;;  %v1502_v3 = vmax.f32 %v1228_v63, 0.0  ;;  %v863_v4 = vadd.f32 %v2821_v20, %v862_v0  ;;  %v1223_v5 = vadd.f32 %v2821_v20, %v1222_v1 }
 0x11b   :  { %v2047_v6 = vpop.f32.mrf.mxu0  ;;  %v2155_v7 = vpop.f32.mrf.mxu1 }
 0x11c   :  { %1574 = vst [vmem:[%s3389_s3 + $0x138] sm:$0xff] %v1430_v2  ;;  %1646 = vst [vmem:[%s3389_s3 + $0x378] sm:$0xff] %v1502_v3  ;;  %v1429_v8 = vmax.f32 %v863_v4, 0.0  ;;  %v1501_v9 = vmax.f32 %v1223_v5, 0.0  ;;  %v878_v10 = vadd.f32 %v2047_v6, %v2821_v20  ;;  %v1238_v11 = vadd.f32 %v2155_v7, %v2821_v20 }
 0x11d   :  { %v872_v12 = vpop.f32.mrf.mxu0  ;;  %v1232_v13 = vpop.f32.mrf.mxu1 }
 0x11e   :  { %1573 = vst [vmem:[%s3389_s3 + $0x130] sm:$0xff] %v1429_v8  ;;  %1645 = vst [vmem:[%s3389_s3 + $0x370] sm:$0xff] %v1501_v9  ;;  %v1432_v14 = vmax.f32 %v878_v10, 0.0  ;;  %v1504_v15 = vmax.f32 %v1238_v11, 0.0  ;;  %v873_v16 = vadd.f32 %v2821_v20, %v872_v12  ;;  %v1233_v17 = vadd.f32 %v2821_v20, %v1232_v13 }
 0x11f   :  { %v2050_v18 = vpop.f32.mrf.mxu0  ;;  %v2158_v19 = vpop.f32.mrf.mxu1 }
 0x120   :  { %1576 = vst [vmem:[%s3389_s3 + $0x148] sm:$0xff] %v1432_v14  ;;  %1648 = vst [vmem:[%s3389_s3 + $0x388] sm:$0xff] %v1504_v15  ;;  %v1431_v21 = vmax.f32 %v873_v16, 0.0  ;;  %v1503_v22 = vmax.f32 %v1233_v17, 0.0  ;;  %v888_v23 = vadd.f32 %v2050_v18, %v2821_v20  ;;  %v1248_v24 = vadd.f32 %v2158_v19, %v2821_v20 }
 0x121   :  { %v882_v25 = vpop.f32.mrf.mxu0  ;;  %v1242_v26 = vpop.f32.mrf.mxu1 }
 0x122   :  { %1575 = vst [vmem:[%s3389_s3 + $0x140] sm:$0xff] %v1431_v21  ;;  %1647 = vst [vmem:[%s3389_s3 + $0x380] sm:$0xff] %v1503_v22  ;;  %v1434_v27 = vmax.f32 %v888_v23, 0.0  ;;  %v1506_v28 = vmax.f32 %v1248_v24, 0.0  ;;  %v883_v29 = vadd.f32 %v2821_v20, %v882_v25  ;;  %v1243_v30 = vadd.f32 %v2821_v20, %v1242_v26 }
 0x123   :  { %v2053_v31 = vpop.f32.mrf.mxu0  ;;  %v2161_v32 = vpop.f32.mrf.mxu1 }
 0x124   :  { %1578 = vst [vmem:[%s3389_s3 + $0x158] sm:$0xff] %v1434_v27  ;;  %1650 = vst [vmem:[%s3389_s3 + $0x398] sm:$0xff] %v1506_v28  ;;  %v1433_v33 = vmax.f32 %v883_v29, 0.0  ;;  %v1505_v34 = vmax.f32 %v1243_v30, 0.0  ;;  %v898_v35 = vadd.f32 %v2053_v31, %v2821_v20  ;;  %v1258_v36 = vadd.f32 %v2161_v32, %v2821_v20 }
 0x125   :  { %v892_v37 = vpop.f32.mrf.mxu0  ;;  %v1252_v38 = vpop.f32.mrf.mxu1 }
 0x126   :  { %1577 = vst [vmem:[%s3389_s3 + $0x150] sm:$0xff] %v1433_v33  ;;  %1649 = vst [vmem:[%s3389_s3 + $0x390] sm:$0xff] %v1505_v34  ;;  %v1436_v39 = vmax.f32 %v898_v35, 0.0  ;;  %v1508_v40 = vmax.f32 %v1258_v36, 0.0  ;;  %v893_v41 = vadd.f32 %v2821_v20, %v892_v37  ;;  %v1253_v42 = vadd.f32 %v2821_v20, %v1252_v38 }
 0x127   :  { %v2056_v43 = vpop.f32.mrf.mxu0  ;;  %v2164_v44 = vpop.f32.mrf.mxu1 }
 0x128   :  { %1580 = vst [vmem:[%s3389_s3 + $0x168] sm:$0xff] %v1436_v39  ;;  %1652 = vst [vmem:[%s3389_s3 + $0x3a8] sm:$0xff] %v1508_v40  ;;  %v1435_v45 = vmax.f32 %v893_v41, 0.0  ;;  %v1507_v46 = vmax.f32 %v1253_v42, 0.0  ;;  %v908_v47 = vadd.f32 %v2056_v43, %v2821_v20  ;;  %v1268_v48 = vadd.f32 %v2164_v44, %v2821_v20 }
 0x129   :  { %v902_v49 = vpop.f32.mrf.mxu0  ;;  %v1262_v50 = vpop.f32.mrf.mxu1 }
 0x12a   :  { %1579 = vst [vmem:[%s3389_s3 + $0x160] sm:$0xff] %v1435_v45  ;;  %1651 = vst [vmem:[%s3389_s3 + $0x3a0] sm:$0xff] %v1507_v46  ;;  %v1438_v51 = vmax.f32 %v908_v47, 0.0  ;;  %v1510_v52 = vmax.f32 %v1268_v48, 0.0  ;;  %v903_v53 = vadd.f32 %v2821_v20, %v902_v49  ;;  %v1263_v54 = vadd.f32 %v2821_v20, %v1262_v50 }
 0x12b   :  { %v2059_v55 = vpop.f32.mrf.mxu0  ;;  %v2167_v56 = vpop.f32.mrf.mxu1 }
 0x12c   :  { %1582 = vst [vmem:[%s3389_s3 + $0x178] sm:$0xff] %v1438_v51  ;;  %1654 = vst [vmem:[%s3389_s3 + $0x3b8] sm:$0xff] %v1510_v52  ;;  %v1437_v57 = vmax.f32 %v903_v53, 0.0  ;;  %v1509_v58 = vmax.f32 %v1263_v54, 0.0  ;;  %v918_v59 = vadd.f32 %v2059_v55, %v2821_v20  ;;  %v1278_v60 = vadd.f32 %v2167_v56, %v2821_v20 }
 0x12d   :  { %v912_v61 = vpop.f32.mrf.mxu0  ;;  %v1272_v62 = vpop.f32.mrf.mxu1 }
 0x12e   :  { %1581 = vst [vmem:[%s3389_s3 + $0x170] sm:$0xff] %v1437_v57  ;;  %1653 = vst [vmem:[%s3389_s3 + $0x3b0] sm:$0xff] %v1509_v58  ;;  %v1440_v63 = vmax.f32 %v918_v59, 0.0  ;;  %v1512_v0 = vmax.f32 %v1278_v60, 0.0  ;;  %v913_v1 = vadd.f32 %v2821_v20, %v912_v61  ;;  %v1273_v2 = vadd.f32 %v2821_v20, %v1272_v62 }
 0x12f   :  { %v2062_v3 = vpop.f32.mrf.mxu0  ;;  %v2170_v4 = vpop.f32.mrf.mxu1 }
 0x130   :  { %1584 = vst [vmem:[%s3389_s3 + $0x188] sm:$0xff] %v1440_v63  ;;  %1656 = vst [vmem:[%s3389_s3 + $0x3c8] sm:$0xff] %v1512_v0  ;;  %v1439_v5 = vmax.f32 %v913_v1, 0.0  ;;  %v1511_v6 = vmax.f32 %v1273_v2, 0.0  ;;  %v928_v7 = vadd.f32 %v2062_v3, %v2821_v20  ;;  %v1288_v8 = vadd.f32 %v2170_v4, %v2821_v20 }
 0x131   :  { %v922_v9 = vpop.f32.mrf.mxu0  ;;  %v1282_v10 = vpop.f32.mrf.mxu1 }
 0x132   :  { %1583 = vst [vmem:[%s3389_s3 + $0x180] sm:$0xff] %v1439_v5  ;;  %1655 = vst [vmem:[%s3389_s3 + $0x3c0] sm:$0xff] %v1511_v6  ;;  %v1442_v11 = vmax.f32 %v928_v7, 0.0  ;;  %v1514_v12 = vmax.f32 %v1288_v8, 0.0  ;;  %v923_v13 = vadd.f32 %v2821_v20, %v922_v9  ;;  %v1283_v14 = vadd.f32 %v2821_v20, %v1282_v10 }
 0x133   :  { %v2065_v15 = vpop.f32.mrf.mxu0  ;;  %v2173_v16 = vpop.f32.mrf.mxu1 }
 0x134   :  { %1586 = vst [vmem:[%s3389_s3 + $0x198] sm:$0xff] %v1442_v11  ;;  %1658 = vst [vmem:[%s3389_s3 + $0x3d8] sm:$0xff] %v1514_v12  ;;  %v1441_v17 = vmax.f32 %v923_v13, 0.0  ;;  %v1513_v18 = vmax.f32 %v1283_v14, 0.0  ;;  %v938_v19 = vadd.f32 %v2065_v15, %v2821_v20  ;;  %v1298_v21 = vadd.f32 %v2173_v16, %v2821_v20 }
 0x135   :  { %v932_v22 = vpop.f32.mrf.mxu0  ;;  %v1292_v23 = vpop.f32.mrf.mxu1 }
 0x136   :  { %1585 = vst [vmem:[%s3389_s3 + $0x190] sm:$0xff] %v1441_v17  ;;  %1657 = vst [vmem:[%s3389_s3 + $0x3d0] sm:$0xff] %v1513_v18  ;;  %v1444_v24 = vmax.f32 %v938_v19, 0.0  ;;  %v1516_v25 = vmax.f32 %v1298_v21, 0.0  ;;  %v933_v26 = vadd.f32 %v2821_v20, %v932_v22  ;;  %v1293_v27 = vadd.f32 %v2821_v20, %v1292_v23 }
 0x137   :  { %v2068_v28 = vpop.f32.mrf.mxu0  ;;  %v2176_v29 = vpop.f32.mrf.mxu1 }
 0x138   :  { %1588 = vst [vmem:[%s3389_s3 + $0x1a8] sm:$0xff] %v1444_v24  ;;  %1660 = vst [vmem:[%s3389_s3 + $0x3e8] sm:$0xff] %v1516_v25  ;;  %v1443_v30 = vmax.f32 %v933_v26, 0.0  ;;  %v1515_v31 = vmax.f32 %v1293_v27, 0.0  ;;  %v948_v32 = vadd.f32 %v2068_v28, %v2821_v20  ;;  %v1308_v33 = vadd.f32 %v2176_v29, %v2821_v20  ;;  %v2209_v29 = vld [vmem:[%s3388_s2] ss:$0 sm:$0xff] }
 0x139   :  { %v942_v34 = vpop.f32.mrf.mxu0  ;;  %v1302_v35 = vpop.f32.mrf.mxu1 }
 0x13a   :  { %1587 = vst [vmem:[%s3389_s3 + $0x1a0] sm:$0xff] %v1443_v30  ;;  %1659 = vst [vmem:[%s3389_s3 + $0x3e0] sm:$0xff] %v1515_v31  ;;  %v1446_v36 = vmax.f32 %v948_v32, 0.0  ;;  %v1518_v37 = vmax.f32 %v1308_v33, 0.0  ;;  %v943_v38 = vadd.f32 %v2821_v20, %v942_v34  ;;  %v1303_v39 = vadd.f32 %v2821_v20, %v1302_v35 }
 0x13b   :  { %v2071_v40 = vpop.f32.mrf.mxu0  ;;  %v2179_v41 = vpop.f32.mrf.mxu1 }
 0x13c   :  { %1590 = vst [vmem:[%s3389_s3 + $0x1b8] sm:$0xff] %v1446_v36  ;;  %1662 = vst [vmem:[%s3389_s3 + $0x3f8] sm:$0xff] %v1518_v37  ;;  %v1445_v42 = vmax.f32 %v943_v38, 0.0  ;;  %v1517_v43 = vmax.f32 %v1303_v39, 0.0  ;;  %v958_v44 = vadd.f32 %v2071_v40, %v2821_v20  ;;  %v1318_v45 = vadd.f32 %v2179_v41, %v2821_v20 }
 0x13d   :  { %v952_v46 = vpop.f32.mrf.mxu0  ;;  %v1312_v47 = vpop.f32.mrf.mxu1 }
 0x13e   :  { %1589 = vst [vmem:[%s3389_s3 + $0x1b0] sm:$0xff] %v1445_v42  ;;  %1661 = vst [vmem:[%s3389_s3 + $0x3f0] sm:$0xff] %v1517_v43  ;;  %v1448_v48 = vmax.f32 %v958_v44, 0.0  ;;  %v1520_v49 = vmax.f32 %v1318_v45, 0.0  ;;  %v953_v50 = vadd.f32 %v2821_v20, %v952_v46  ;;  %v1313_v51 = vadd.f32 %v2821_v20, %v1312_v47 }
 0x13f   :  { %v2074_v52 = vpop.f32.mrf.mxu0  ;;  %v2182_v53 = vpop.f32.mrf.mxu1 }
 0x140   :  { %1592 = vst [vmem:[%s3389_s3 + $0x1c8] sm:$0xff] %v1448_v48  ;;  %1664 = vst [vmem:[%s3389_s3 + $0x408] sm:$0xff] %v1520_v49  ;;  %v1447_v54 = vmax.f32 %v953_v50, 0.0  ;;  %v1519_v55 = vmax.f32 %v1313_v51, 0.0  ;;  %v968_v56 = vadd.f32 %v2074_v52, %v2821_v20  ;;  %v1328_v57 = vadd.f32 %v2182_v53, %v2821_v20 }
 0x141   :  { %v962_v58 = vpop.f32.mrf.mxu0  ;;  %v1322_v59 = vpop.f32.mrf.mxu1 }
 0x142   :  { %1591 = vst [vmem:[%s3389_s3 + $0x1c0] sm:$0xff] %v1447_v54  ;;  %1663 = vst [vmem:[%s3389_s3 + $0x400] sm:$0xff] %v1519_v55  ;;  %v1450_v60 = vmax.f32 %v968_v56, 0.0  ;;  %v1522_v61 = vmax.f32 %v1328_v57, 0.0  ;;  %v963_v62 = vadd.f32 %v2821_v20, %v962_v58  ;;  %v1323_v63 = vadd.f32 %v2821_v20, %v1322_v59 }
 0x143   :  { %v2077_v0 = vpop.f32.mrf.mxu0  ;;  %v2185_v1 = vpop.f32.mrf.mxu1 }
 0x144   :  { %1594 = vst [vmem:[%s3389_s3 + $0x1d8] sm:$0xff] %v1450_v60  ;;  %1666 = vst [vmem:[%s3389_s3 + $0x418] sm:$0xff] %v1522_v61  ;;  %v1449_v2 = vmax.f32 %v963_v62, 0.0  ;;  %v1521_v3 = vmax.f32 %v1323_v63, 0.0  ;;  %v978_v4 = vadd.f32 %v2077_v0, %v2821_v20  ;;  %v1338_v5 = vadd.f32 %v2185_v1, %v2821_v20 }
 0x145   :  { %v972_v6 = vpop.f32.mrf.mxu0  ;;  %v1332_v7 = vpop.f32.mrf.mxu1 }
 0x146   :  { %1593 = vst [vmem:[%s3389_s3 + $0x1d0] sm:$0xff] %v1449_v2  ;;  %1665 = vst [vmem:[%s3389_s3 + $0x410] sm:$0xff] %v1521_v3  ;;  %v1452_v8 = vmax.f32 %v978_v4, 0.0  ;;  %v1524_v9 = vmax.f32 %v1338_v5, 0.0  ;;  %v973_v10 = vadd.f32 %v2821_v20, %v972_v6  ;;  %v1333_v11 = vadd.f32 %v2821_v20, %v1332_v7 }
 0x147   :  { %v2080_v12 = vpop.f32.mrf.mxu0  ;;  %v2188_v13 = vpop.f32.mrf.mxu1 }
 0x148   :  { %1596 = vst [vmem:[%s3389_s3 + $0x1e8] sm:$0xff] %v1452_v8  ;;  %1668 = vst [vmem:[%s3389_s3 + $0x428] sm:$0xff] %v1524_v9  ;;  %v1451_v14 = vmax.f32 %v973_v10, 0.0  ;;  %v1523_v15 = vmax.f32 %v1333_v11, 0.0  ;;  %v988_v16 = vadd.f32 %v2080_v12, %v2821_v20  ;;  %v1348_v17 = vadd.f32 %v2188_v13, %v2821_v20 }
 0x149   :  { %v982_v18 = vpop.f32.mrf.mxu0  ;;  %v1342_v19 = vpop.f32.mrf.mxu1 }
 0x14a   :  { %1595 = vst [vmem:[%s3389_s3 + $0x1e0] sm:$0xff] %v1451_v14  ;;  %1667 = vst [vmem:[%s3389_s3 + $0x420] sm:$0xff] %v1523_v15  ;;  %v1454_v21 = vmax.f32 %v988_v16, 0.0  ;;  %v1526_v22 = vmax.f32 %v1348_v17, 0.0  ;;  %v983_v23 = vadd.f32 %v2821_v20, %v982_v18  ;;  %v1343_v24 = vadd.f32 %v2821_v20, %v1342_v19 }
 0x14b   :  { %v2083_v25 = vpop.f32.mrf.mxu0  ;;  %v2191_v26 = vpop.f32.mrf.mxu1 }
 0x14c   :  { %1598 = vst [vmem:[%s3389_s3 + $0x1f8] sm:$0xff] %v1454_v21  ;;  %1670 = vst [vmem:[%s3389_s3 + $0x438] sm:$0xff] %v1526_v22  ;;  %v1453_v27 = vmax.f32 %v983_v23, 0.0  ;;  %v1525_v28 = vmax.f32 %v1343_v24, 0.0  ;;  %v998_v30 = vadd.f32 %v2209_v29, %v2083_v25  ;;  %v1358_v31 = vadd.f32 %v2209_v29, %v2191_v26 }
 0x14d   :  { %v992_v32 = vpop.f32.mrf.mxu0  ;;  %v1352_v20 = vpop.f32.mrf.mxu1 }
 0x14e   :  { %1597 = vst [vmem:[%s3389_s3 + $0x1f0] sm:$0xff] %v1453_v27  ;;  %1669 = vst [vmem:[%s3389_s3 + $0x430] sm:$0xff] %v1525_v28  ;;  %v1456_v33 = vmax.f32 %v998_v30, 0.0  ;;  %v1528_v34 = vmax.f32 %v1358_v31, 0.0  ;;  %v993_v35 = vadd.f32 %v2209_v29, %v992_v32  ;;  %v1353_v36 = vadd.f32 %v2209_v29, %v1352_v20 }
 0x14f   :  { %v2086_v37 = vpop.f32.mrf.mxu0  ;;  %v2194_v38 = vpop.f32.mrf.mxu1 }
 0x150   :  { %1600 = vst [vmem:[%s3389_s3 + $0x208] sm:$0xff] %v1456_v33  ;;  %1672 = vst [vmem:[%s3389_s3 + $0x448] sm:$0xff] %v1528_v34  ;;  %v1455_v39 = vmax.f32 %v993_v35, 0.0  ;;  %v1527_v40 = vmax.f32 %v1353_v36, 0.0  ;;  %v1008_v41 = vadd.f32 %v2209_v29, %v2086_v37  ;;  %v1368_v42 = vadd.f32 %v2209_v29, %v2194_v38 }
 0x151   :  { %v1002_v43 = vpop.f32.mrf.mxu0  ;;  %v1362_v44 = vpop.f32.mrf.mxu1 }
 0x152   :  { %1599 = vst [vmem:[%s3389_s3 + $0x200] sm:$0xff] %v1455_v39  ;;  %1671 = vst [vmem:[%s3389_s3 + $0x440] sm:$0xff] %v1527_v40  ;;  %v1458_v45 = vmax.f32 %v1008_v41, 0.0  ;;  %v1530_v46 = vmax.f32 %v1368_v42, 0.0  ;;  %v1003_v47 = vadd.f32 %v2209_v29, %v1002_v43  ;;  %v1363_v48 = vadd.f32 %v2209_v29, %v1362_v44 }
 0x153   :  { %v2089_v49 = vpop.f32.mrf.mxu0  ;;  %v2197_v50 = vpop.f32.mrf.mxu1 }
 0x154   :  { %1602 = vst [vmem:[%s3389_s3 + $0x218] sm:$0xff] %v1458_v45  ;;  %1674 = vst [vmem:[%s3389_s3 + $0x458] sm:$0xff] %v1530_v46  ;;  %v1457_v51 = vmax.f32 %v1003_v47, 0.0  ;;  %v1529_v52 = vmax.f32 %v1363_v48, 0.0  ;;  %v1018_v53 = vadd.f32 %v2209_v29, %v2089_v49  ;;  %v1378_v54 = vadd.f32 %v2209_v29, %v2197_v50 }
 0x155   :  { %v1012_v55 = vpop.f32.mrf.mxu0  ;;  %v1372_v56 = vpop.f32.mrf.mxu1 }
 0x156   :  { %1601 = vst [vmem:[%s3389_s3 + $0x210] sm:$0xff] %v1457_v51  ;;  %1673 = vst [vmem:[%s3389_s3 + $0x450] sm:$0xff] %v1529_v52  ;;  %v1460_v57 = vmax.f32 %v1018_v53, 0.0  ;;  %v1532_v58 = vmax.f32 %v1378_v54, 0.0  ;;  %v1013_v59 = vadd.f32 %v2209_v29, %v1012_v55  ;;  %v1373_v60 = vadd.f32 %v2209_v29, %v1372_v56 }
 0x157   :  { %v2092_v61 = vpop.f32.mrf.mxu0  ;;  %v2200_v62 = vpop.f32.mrf.mxu1 }
 0x158   :  { %1604 = vst [vmem:[%s3389_s3 + $0x228] sm:$0xff] %v1460_v57  ;;  %1676 = vst [vmem:[%s3389_s3 + $0x468] sm:$0xff] %v1532_v58  ;;  %v1459_v63 = vmax.f32 %v1013_v59, 0.0  ;;  %v1531_v0 = vmax.f32 %v1373_v60, 0.0  ;;  %v1028_v1 = vadd.f32 %v2209_v29, %v2092_v61  ;;  %v1388_v2 = vadd.f32 %v2209_v29, %v2200_v62 }
 0x159   :  { %v1022_v3 = vpop.f32.mrf.mxu0  ;;  %v1382_v4 = vpop.f32.mrf.mxu1 }
 0x15a   :  { %1603 = vst [vmem:[%s3389_s3 + $0x220] sm:$0xff] %v1459_v63  ;;  %1675 = vst [vmem:[%s3389_s3 + $0x460] sm:$0xff] %v1531_v0  ;;  %v1462_v5 = vmax.f32 %v1028_v1, 0.0  ;;  %v1534_v6 = vmax.f32 %v1388_v2, 0.0  ;;  %v1023_v7 = vadd.f32 %v2209_v29, %v1022_v3  ;;  %v1383_v8 = vadd.f32 %v2209_v29, %v1382_v4 }
 0x15c   :  { %1606 = vst [vmem:[%s3389_s3 + $0x238] sm:$0xff] %v1462_v5  ;;  %1678 = vst [vmem:[%s3389_s3 + $0x478] sm:$0xff] %v1534_v6  ;;  %v1461_v9 = vmax.f32 %v1023_v7, 0.0  ;;  %v1533_v10 = vmax.f32 %v1383_v8, 0.0 }
 0x15e   :  { %1605 = vst [vmem:[%s3389_s3 + $0x230] sm:$0xff] %v1461_v9  ;;  %1677 = vst [vmem:[%s3389_s3 + $0x470] sm:$0xff] %v1533_v10 }

// kernel: lenet5_forward.4
= control target key start
LH: loop header
LB: loop body
LE: loop exit
PB: predicated region body
PF: predicated region fallthrough
CT: control target
= control target key end

     0   :  { %v688_v0 = vmov 0.0   ;;  %vm197_vm0 = vcmask 1043456   ;;  %vm148_vm1 = vcmask 949248   ;;  %s1381_s1 = inlined_call_operand.vmem [shape: f32[500,128], index: 1, kind: input, shape index: {}]   ;;  %s1382_s0 = inlined_call_operand.vmem [shape: f32[128,500], index: 0, kind: input, shape index: {}]   ;;  %s1383_s2 = inlined_call_operand.vmem [shape: f32[1,128], index: 2, kind: input, shape index: {}]   ;;  %s1384_s3 = inlined_call_operand.vmem [shape: f32[128,128], index: 3, kind: output, shape index: {}]  }
   0x1   :  { %625 = vmatprep.subr.mxu1 %v688_v0  ;;  %v109_v1 = vld [vmem:[%s1381_s1 + $0xf8] sm:$0xff]  ;;  %v108_v4 = vld [vmem:[%s1381_s1 + $0xf0] sm:$0xff]  ;;  %v107_v7 = vld [vmem:[%s1381_s1 + $0xe8] sm:$0xff] }
   0x2   :  { %v716_v2 = vld [vmem:[%s1381_s1 + $0x178] sm:$0xff]  ;;  %545 = vmatprep.subr.mxu0 %v109_v1  ;;  %v728_v5 = vld [vmem:[%s1381_s1 + $0x170] sm:$0xff]  ;;  %v740_v8 = vld [vmem:[%s1381_s1 + $0x168] sm:$0xff] }
   0x3   :  { %v93_v3 = vld [vmem:[%s1381_s1 + $0x78] sm:$0xff]  ;;  %656 = vmatpush1.msra.mxu1 %v716_v2  ;;  %v92_v6 = vld [vmem:[%s1381_s1 + $0x70] sm:$0xff]  ;;  %v91_v9 = vld [vmem:[%s1381_s1 + $0x68] sm:$0xff] }
   0x4   :  { %546 = vmatpush3.msra.mxu0 %v93_v3  ;;  %626 = vmatprep.subr.mxu1 %v688_v0  ;;  %v106_v10 = vld [vmem:[%s1381_s1 + $0xe0] sm:$0xff]  ;;  %v105_v13 = vld [vmem:[%s1381_s1 + $0xd8] sm:$0xff]  ;;  %v104_v16 = vld [vmem:[%s1381_s1 + $0xd0] sm:$0xff] }
   0x5   :  { %547 = vmatprep.subr.mxu0 %v108_v4  ;;  %657 = vmatpush1.msra.mxu1 %v728_v5  ;;  %v753_v11 = vld [vmem:[%s1381_s1 + $0x160] sm:$0xff]  ;;  %v766_v14 = vld [vmem:[%s1381_s1 + $0x158] sm:$0xff]  ;;  %v779_v17 = vld [vmem:[%s1381_s1 + $0x150] sm:$0xff] }
   0x6   :  { %548 = vmatpush3.msra.mxu0 %v92_v6  ;;  %627 = vmatprep.subr.mxu1 %v688_v0  ;;  %v90_v12 = vld [vmem:[%s1381_s1 + $0x60] sm:$0xff]  ;;  %v89_v15 = vld [vmem:[%s1381_s1 + $0x58] sm:$0xff]  ;;  %v88_v18 = vld [vmem:[%s1381_s1 + $0x50] sm:$0xff] }
   0x7   :  { %549 = vmatprep.subr.mxu0 %v107_v7  ;;  %658 = vmatpush1.msra.mxu1 %v740_v8  ;;  %v103_v19 = vld [vmem:[%s1381_s1 + $0xc8] sm:$0xff]  ;;  %v102_v22 = vld [vmem:[%s1381_s1 + $0xc0] sm:$0xff]  ;;  %v101_v25 = vld [vmem:[%s1381_s1 + $0xb8] sm:$0xff] }
   0x8   :  { %550 = vmatpush3.msra.mxu0 %v91_v9  ;;  %628 = vmatprep.subr.mxu1 %v688_v0  ;;  %v792_v20 = vld [vmem:[%s1381_s1 + $0x148] sm:$0xff]  ;;  %v805_v23 = vld [vmem:[%s1381_s1 + $0x140] sm:$0xff]  ;;  %v818_v26 = vld [vmem:[%s1381_s1 + $0x138] sm:$0xff] }
   0x9   :  { %551 = vmatprep.subr.mxu0 %v106_v10  ;;  %659 = vmatpush1.msra.mxu1 %v753_v11  ;;  %v87_v21 = vld [vmem:[%s1381_s1 + $0x48] sm:$0xff]  ;;  %v86_v24 = vld [vmem:[%s1381_s1 + $0x40] sm:$0xff]  ;;  %v85_v27 = vld [vmem:[%s1381_s1 + $0x38] sm:$0xff] }
   0xa   :  { %552 = vmatpush3.msra.mxu0 %v90_v12  ;;  %629 = vmatprep.subr.mxu1 %v688_v0  ;;  %v100_v28 = vld [vmem:[%s1381_s1 + $0xb0] sm:$0xff]  ;;  %v99_v31 = vld [vmem:[%s1381_s1 + $0xa8] sm:$0xff]  ;;  %v98_v34 = vld [vmem:[%s1381_s1 + $0xa0] sm:$0xff] }
   0xb   :  { %553 = vmatprep.subr.mxu0 %v105_v13  ;;  %660 = vmatpush1.msra.mxu1 %v766_v14  ;;  %v831_v29 = vld [vmem:[%s1381_s1 + $0x130] sm:$0xff]  ;;  %v844_v32 = vld [vmem:[%s1381_s1 + $0x128] sm:$0xff]  ;;  %v857_v35 = vld [vmem:[%s1381_s1 + $0x120] sm:$0xff] }
   0xc   :  { %554 = vmatpush3.msra.mxu0 %v89_v15  ;;  %630 = vmatprep.subr.mxu1 %v688_v0  ;;  %v84_v30 = vld [vmem:[%s1381_s1 + $0x30] sm:$0xff]  ;;  %v83_v33 = vld [vmem:[%s1381_s1 + $0x28] sm:$0xff]  ;;  %v82_v36 = vld [vmem:[%s1381_s1 + $0x20] sm:$0xff] }
   0xd   :  { %555 = vmatprep.subr.mxu0 %v104_v16  ;;  %661 = vmatpush1.msra.mxu1 %v779_v17  ;;  %v97_v37 = vld [vmem:[%s1381_s1 + $0x98] sm:$0xff]  ;;  %v96_v40 = vld [vmem:[%s1381_s1 + $0x90] sm:$0xff]  ;;  %v95_v43 = vld [vmem:[%s1381_s1 + $0x88] sm:$0xff] }
   0xe   :  { %556 = vmatpush3.msra.mxu0 %v88_v18  ;;  %631 = vmatprep.subr.mxu1 %v688_v0  ;;  %v870_v38 = vld [vmem:[%s1381_s1 + $0x118] sm:$0xff]  ;;  %v883_v41 = vld [vmem:[%s1381_s1 + $0x110] sm:$0xff]  ;;  %v896_v44 = vld [vmem:[%s1381_s1 + $0x108] sm:$0xff] }
   0xf   :  { %557 = vmatprep.subr.mxu0 %v103_v19  ;;  %662 = vmatpush1.msra.mxu1 %v792_v20  ;;  %v81_v39 = vld [vmem:[%s1381_s1 + $0x18] sm:$0xff]  ;;  %v80_v42 = vld [vmem:[%s1381_s1 + $0x10] sm:$0xff]  ;;  %v79_v45 = vld [vmem:[%s1381_s1 + $0x8] sm:$0xff] }
  0x10   :  { %558 = vmatpush3.msra.mxu0 %v87_v21  ;;  %632 = vmatprep.subr.mxu1 %v688_v0  ;;  %v94_v46 = vld [vmem:[%s1381_s1 + $0x80] sm:$0xff]  ;;  %v15_v49 = vld [vmem:[%s1382_s0 + $0x8] sm:$0xff]  ;;  %v926_v51 = vld [vmem:[%s1381_s1 + $0x1f0] sm:$0xf] }
  0x11   :  { %559 = vmatprep.subr.mxu0 %v102_v22  ;;  %663 = vmatpush1.msra.mxu1 %v805_v23  ;;  %v909_v47 = vld [vmem:[%s1381_s1 + $0x100] sm:$0xff]  ;;  %v19_v52 = vld [vmem:[%s1382_s0 + $0x28] sm:$0xff]  ;;  %v955_v56 = vld [vmem:[%s1381_s1 + $0x1d8] sm:$0xff] }
  0x12   :  { %560 = vmatpush3.msra.mxu0 %v86_v24  ;;  %633 = vmatprep.subr.mxu1 %v688_v0  ;;  %v78_v48 = vld [vmem:[%s1381_s1] sm:$0xff]  ;;  %v935_v53 = vld [vmem:[%s1381_s1 + $0x1e8] sm:$0xff]  ;;  %v972_v59 = vld [vmem:[%s1381_s1 + $0x1d0] sm:$0xff] }
  0x13   :  { %561 = vmatprep.subr.mxu0 %v101_v25  ;;  %664 = vmatpush1.msra.mxu1 %v818_v26  ;;  %v14_v50 = vld [vmem:[%s1382_s0] sm:$0xff]  ;;  %v23_v57 = vld [vmem:[%s1382_s0 + $0x48] sm:$0xff]  ;;  %v1003_v1 = vld [vmem:[%s1381_s1 + $0x1b8] sm:$0xff] }
  0x14   :  { %562 = vmatpush3.msra.mxu0 %v85_v27  ;;  %634 = vmatprep.subr.mxu1 %v688_v0  ;;  %v18_v54 = vld [vmem:[%s1382_s0 + $0x20] sm:$0xff]  ;;  %v979_v60 = vld [vmem:[%s1381_s1 + $0x1c8] sm:$0xff]  ;;  %v1020_v4 = vld [vmem:[%s1381_s1 + $0x1b0] sm:$0xff] }
  0x15   :  { %563 = vmatprep.subr.mxu0 %v100_v28  ;;  %665 = vmatpush1.msra.mxu1 %v831_v29  ;;  %v947_v55 = vld [vmem:[%s1381_s1 + $0x1e0] sm:$0xff]  ;;  %v27_v61 = vld [vmem:[%s1382_s0 + $0x68] sm:$0xff]  ;;  %v1051_v9 = vld [vmem:[%s1381_s1 + $0x198] sm:$0xff] }
  0x16   :  { %564 = vmatpush3.msra.mxu0 %v84_v30  ;;  %635 = vmatprep.subr.mxu1 %v688_v0  ;;  %v22_v58 = vld [vmem:[%s1382_s0 + $0x40] sm:$0xff]  ;;  %v35_v6 = vld [vmem:[%s1382_s0 + $0xa8] sm:$0xff]  ;;  %v1068_v12 = vld [vmem:[%s1381_s1 + $0x190] sm:$0xff] }
  0x17   :  { %565 = vmatprep.subr.mxu0 %v99_v31  ;;  %666 = vmatpush1.msra.mxu1 %v844_v32  ;;  %v26_v62 = vld [vmem:[%s1382_s0 + $0x60] sm:$0xff]  ;;  %v39_v10 = vld [vmem:[%s1382_s0 + $0xc8] sm:$0xff]  ;;  %v28_v18 = vld [vmem:[%s1382_s0 + $0x70] sm:$0xff] }
  0x18   :  { %566 = vmatpush3.msra.mxu0 %v83_v33  ;;  %636 = vmatprep.subr.mxu1 %v688_v0  ;;  %v996_v63 = vld [vmem:[%s1381_s1 + $0x1c0] sm:$0xff]  ;;  %v1075_v13 = vld [vmem:[%s1381_s1 + $0x188] sm:$0xff]  ;;  %v33_v21 = vld [vmem:[%s1382_s0 + $0x98] sm:$0xff] }
  0x19   :  { %567 = vmatprep.subr.mxu0 %v98_v34  ;;  %667 = vmatpush1.msra.mxu1 %v857_v35  ;;  %v30_v3 = vld [vmem:[%s1382_s0 + $0x80] sm:$0xff]  ;;  %v47_v19 = vld [vmem:[%s1382_s0 + $0x108] sm:$0xff]  ;;  %v32_v22 = vld [vmem:[%s1382_s0 + $0x90] sm:$0xff] }
  0x1a   :  { %568 = vmatpush3.msra.mxu0 %v82_v36  ;;  %637 = vmatprep.subr.mxu1 %v688_v0  ;;  %v34_v7 = vld [vmem:[%s1382_s0 + $0xa0] sm:$0xff]  ;;  %v37_v25 = vld [vmem:[%s1382_s0 + $0xb8] sm:$0xff]  ;;  %v55_v27 = vld [vmem:[%s1382_s0 + $0x148] sm:$0xff] }
  0x1b   :  { %569 = vmatprep.subr.mxu0 %v97_v37  ;;  %668 = vmatpush1.msra.mxu1 %v870_v38  ;;  %v42_v15 = vld [vmem:[%s1382_s0 + $0xe0] sm:$0xff]  ;;  %v40_v30 = vld [vmem:[%s1382_s0 + $0xd0] sm:$0xff]  ;;  %v59_v31 = vld [vmem:[%s1382_s0 + $0x168] sm:$0xff] }
  0x1c   :  { %570 = vmatpush3.msra.mxu0 %v81_v39  ;;  %638 = vmatprep.subr.mxu1 %v688_v0  ;;  %v1092_v16 = vld [vmem:[%s1381_s1 + $0x180] sm:$0xff]  ;;  %v45_v33 = vld [vmem:[%s1382_s0 + $0xf8] sm:$0xff]  ;;  %v44_v34 = vld [vmem:[%s1382_s0 + $0xf0] sm:$0xff] }
  0x1d   :  { %571 = vmatprep.subr.mxu0 %v96_v40  ;;  %669 = vmatpush1.msra.mxu1 %v883_v41  ;;  %v50_v24 = vld [vmem:[%s1382_s0 + $0x120] sm:$0xff]  ;;  %v49_v37 = vld [vmem:[%s1382_s0 + $0x118] sm:$0xff]  ;;  %v67_v39 = vld [vmem:[%s1382_s0 + $0x1a8] sm:$0xff] }
  0x1e   :  { %572 = vmatpush3.msra.mxu0 %v80_v42  ;;  %639 = vmatprep.subr.mxu1 %v688_v0  ;;  %v54_v28 = vld [vmem:[%s1382_s0 + $0x140] sm:$0xff]  ;;  %v52_v42 = vld [vmem:[%s1382_s0 + $0x130] sm:$0xff] }
  0x1f   :  { %573 = vmatprep.subr.mxu0 %v95_v43  ;;  %670 = vmatpush1.msra.mxu1 %v896_v44  ;;  %v62_v36 = vld [vmem:[%s1382_s0 + $0x180] sm:$0xff]  ;;  %v71_v43 = vld [vmem:[%s1382_s0 + $0x1c8] sm:$0xff] }
  0x20   :  { %574 = vmatpush3.msra.mxu0 %v79_v45  ;;  %640 = vmatprep.subr.mxu1 %v688_v0  ;;  %v66_v40 = vld [vmem:[%s1382_s0 + $0x1a0] sm:$0xff]  ;;  %v57_v45 = vld [vmem:[%s1382_s0 + $0x158] sm:$0xff] }
  0x21   :  { %575 = vmatprep.subr.mxu0 %v94_v46  ;;  %671 = vmatpush1.msra.mxu1 %v909_v47  ;;  %v56_v46 = vld [vmem:[%s1382_s0 + $0x150] sm:$0xff] }
  0x22   :  { %576 = vmatpush3.msra.mxu0 %v78_v48  ;;  %265 = vmatprep.mubr.f32.mxu0 %v15_v49  ;;  %v74_v48 = vld [vmem:[%s1382_s0 + $0x1e0] sm:$0xff]  ;;  %v61_v49 = vld [vmem:[%s1382_s0 + $0x178] sm:$0xff] }
  0x23   :  { %641 = vmatprep.subr.mxu1 %v688_v0  ;;  %266 = vmatmul.mubr.f32.vlgmr.msra.gmra.mxu0 %v14_v50  ;;  %v60_v50 = vld [vmem:[%s1382_s0 + $0x170] sm:$0xff] }
  0x24   :  { %672 = vmatpush2.msk.msra.mxu1 %vm197_vm0, %v926_v51  ;;  %346 = vmatprep.subr.mxu0 %v688_v0 }
  0x25   :  { %642 = vmatprep.subr.mxu1 %v688_v0  ;;  %270 = vmatprep.mubr.f32.mxu0 %v19_v52  ;;  %v16_v52 = vld [vmem:[%s1382_s0 + $0x10] sm:$0xff] }
  0x26   :  { %673 = vmatpush2.msra.mxu1 %v935_v53  ;;  %347 = vmatpush1.msra.mxu0 %v716_v2  ;;  %v31_v2 = vld [vmem:[%s1382_s0 + $0x88] sm:$0xff] }
  0x27   :  { %643 = vmatprep.subr.mxu1 %v688_v0  ;;  %271 = vmatmul.mubr.f32.gmra.mxu0 %v18_v54  ;;  %v21_v54 = vld [vmem:[%s1382_s0 + $0x38] sm:$0xff] }
  0x28   :  { %348 = vmatprep.subr.mxu0 %v688_v0  ;;  %674 = vmatpush2.msra.mxu1 %v947_v55 }
  0x29   :  { %349 = vmatpush1.msra.mxu0 %v728_v5  ;;  %644 = vmatprep.subr.mxu1 %v688_v0  ;;  %v1027_v5 = vld [vmem:[%s1381_s1 + $0x1a8] sm:$0xff] }
  0x2a   :  { %350 = vmatprep.subr.mxu0 %v688_v0  ;;  %675 = vmatpush2.msra.mxu1 %v955_v56 }
  0x2b   :  { %275 = vmatprep.mubr.f32.mxu0 %v23_v57  ;;  %351 = vmatpush1.msra.mxu0 %v740_v8  ;;  %v1044_v8 = vld [vmem:[%s1381_s1 + $0x1a0] sm:$0xff]  ;;  %v25_v57 = vld [vmem:[%s1382_s0 + $0x58] sm:$0xff] }
  0x2c   :  { %645 = vmatprep.subr.mxu1 %v688_v0  ;;  %276 = vmatmul.mubr.f32.gmra.mxu0 %v22_v58  ;;  %v68_v58 = vld [vmem:[%s1382_s0 + $0x1b0] sm:$0xff] }
  0x2d   :  { %352 = vmatprep.subr.mxu0 %v688_v0  ;;  %676 = vmatpush2.msra.mxu1 %v972_v59 }
  0x2e   :  { %353 = vmatpush1.msra.mxu0 %v753_v11  ;;  %646 = vmatprep.subr.mxu1 %v688_v0  ;;  %v38_v11 = vld [vmem:[%s1382_s0 + $0xc0] sm:$0xff] }
  0x2f   :  { %354 = vmatprep.subr.mxu0 %v688_v0  ;;  %677 = vmatpush2.msra.mxu1 %v979_v60 }
  0x30   :  { %280 = vmatprep.mubr.f32.mxu0 %v27_v61  ;;  %355 = vmatpush1.msra.mxu0 %v766_v14  ;;  %v43_v14 = vld [vmem:[%s1382_s0 + $0xe8] sm:$0xff]  ;;  %v72_v61 = vld [vmem:[%s1382_s0 + $0x1d0] sm:$0xff] }
  0x31   :  { %647 = vmatprep.subr.mxu1 %v688_v0  ;;  %281 = vmatmul.mubr.f32.gmra.mxu0 %v26_v62  ;;  %v77_v62 = vld [vmem:[%s1382_s0 + $0x1f8] sm:$0xff] }
  0x32   :  { %356 = vmatprep.subr.mxu0 %v688_v0  ;;  %678 = vmatpush2.msra.mxu1 %v996_v63 }
  0x33   :  { %357 = vmatpush1.msra.mxu0 %v779_v17  ;;  %648 = vmatprep.subr.mxu1 %v688_v0  ;;  %v29_v17 = vld [vmem:[%s1382_s0 + $0x78] sm:$0xff] }
  0x34   :  { %358 = vmatprep.subr.mxu0 %v688_v0  ;;  %679 = vmatpush2.msra.mxu1 %v1003_v1 }
  0x35   :  { %285 = vmatprep.mubr.f32.mxu0 %v31_v2  ;;  %359 = vmatpush1.msra.mxu0 %v792_v20  ;;  %v46_v20 = vld [vmem:[%s1382_s0 + $0x100] sm:$0xff] }
  0x36   :  { %649 = vmatprep.subr.mxu1 %v688_v0  ;;  %286 = vmatmul.mubr.f32.gmra.mxu0 %v30_v3 }
  0x37   :  { %360 = vmatprep.subr.mxu0 %v688_v0  ;;  %680 = vmatpush2.msra.mxu1 %v1020_v4 }
  0x38   :  { %361 = vmatpush1.msra.mxu0 %v805_v23  ;;  %650 = vmatprep.subr.mxu1 %v688_v0  ;;  %v51_v23 = vld [vmem:[%s1382_s0 + $0x128] sm:$0xff] }
  0x39   :  { %362 = vmatprep.subr.mxu0 %v688_v0  ;;  %681 = vmatpush2.msra.mxu1 %v1027_v5 }
  0x3a   :  { %290 = vmatprep.mubr.f32.mxu0 %v35_v6  ;;  %363 = vmatpush1.msra.mxu0 %v818_v26  ;;  %v36_v26 = vld [vmem:[%s1382_s0 + $0xb0] sm:$0xff] }
  0x3b   :  { %651 = vmatprep.subr.mxu1 %v688_v0  ;;  %291 = vmatmul.mubr.f32.gmra.mxu0 %v34_v7 }
  0x3c   :  { %364 = vmatprep.subr.mxu0 %v688_v0  ;;  %682 = vmatpush2.msra.mxu1 %v1044_v8 }
  0x3d   :  { %365 = vmatpush1.msra.mxu0 %v831_v29  ;;  %652 = vmatprep.subr.mxu1 %v688_v0  ;;  %v41_v29 = vld [vmem:[%s1382_s0 + $0xd8] sm:$0xff] }
  0x3e   :  { %366 = vmatprep.subr.mxu0 %v688_v0  ;;  %683 = vmatpush2.msra.mxu1 %v1051_v9 }
  0x3f   :  { %295 = vmatprep.mubr.f32.mxu0 %v39_v10  ;;  %367 = vmatpush1.msra.mxu0 %v844_v32  ;;  %v58_v32 = vld [vmem:[%s1382_s0 + $0x160] sm:$0xff] }
  0x40   :  { %653 = vmatprep.subr.mxu1 %v688_v0  ;;  %296 = vmatmul.mubr.f32.gmra.mxu0 %v38_v11 }
  0x41   :  { %368 = vmatprep.subr.mxu0 %v688_v0  ;;  %684 = vmatpush2.msra.mxu1 %v1068_v12 }
  0x42   :  { %369 = vmatpush1.msra.mxu0 %v857_v35  ;;  %654 = vmatprep.subr.mxu1 %v688_v0  ;;  %v63_v35 = vld [vmem:[%s1382_s0 + $0x188] sm:$0xff] }
  0x43   :  { %370 = vmatprep.subr.mxu0 %v688_v0  ;;  %685 = vmatpush2.msra.mxu1 %v1075_v13 }
  0x44   :  { %300 = vmatprep.mubr.f32.mxu0 %v43_v14  ;;  %371 = vmatpush1.msra.mxu0 %v870_v38  ;;  %v48_v38 = vld [vmem:[%s1382_s0 + $0x110] sm:$0xff] }
  0x45   :  { %655 = vmatprep.subr.mxu1 %v688_v0  ;;  %301 = vmatmul.mubr.f32.gmra.mxu0 %v42_v15 }
  0x46   :  { %372 = vmatprep.subr.mxu0 %v688_v0  ;;  %686 = vmatpush2.msra.mxu1 %v1092_v16 }
  0x47   :  { %532 = vmatprep.mubr.msk.f32.mxu1 %vm148_vm1, %v29_v17  ;;  %373 = vmatpush1.msra.mxu0 %v883_v41  ;;  %v53_v41 = vld [vmem:[%s1382_s0 + $0x138] sm:$0xff]  ;;  %v1309_v17 = vld [vmem:[%s1383_s2] ss:$0 sm:$0xff] }
  0x48   :  { %426 = vmatmul.mubr.f32.vlgmr.msra.gmra.mxu1 %v28_v18  ;;  %374 = vmatprep.subr.mxu0 %v688_v0 }
  0x49   :  { %305 = vmatprep.mubr.f32.mxu0 %v47_v19  ;;  %375 = vmatpush1.msra.mxu0 %v896_v44  ;;  %v70_v44 = vld [vmem:[%s1382_s0 + $0x1c0] sm:$0xff] }
  0x4a   :  { %306 = vmatmul.mubr.f32.gmra.mxu0 %v46_v20  ;;  %376 = vmatprep.subr.mxu0 %v688_v0 }
  0x4b   :  { %533 = vmatprep.mubr.msk.f32.mxu1 %vm148_vm1, %v33_v21  ;;  %377 = vmatpush1.msra.mxu0 %v909_v47  ;;  %v75_v47 = vld [vmem:[%s1382_s0 + $0x1e8] sm:$0xff] }
  0x4c   :  { %431 = vmatmul.mubr.f32.gmra.mxu1 %v32_v22  ;;  %380 = vmatprep.subr.mxu0 %v688_v0 }
  0x4d   :  { %310 = vmatprep.mubr.f32.mxu0 %v51_v23  ;;  %528 = vmatpush2.msk.msra.mxu0 %vm197_vm0, %v926_v51  ;;  %v17_v51 = vld [vmem:[%s1382_s0 + $0x18] sm:$0xff] }
  0x4e   :  { %311 = vmatmul.mubr.f32.gmra.mxu0 %v50_v24  ;;  %382 = vmatprep.subr.mxu0 %v688_v0 }
  0x4f   :  { %534 = vmatprep.mubr.msk.f32.mxu1 %vm148_vm1, %v37_v25  ;;  %383 = vmatpush2.msra.mxu0 %v935_v53  ;;  %v65_v53 = vld [vmem:[%s1382_s0 + $0x198] sm:$0xff] }
  0x50   :  { %436 = vmatmul.mubr.f32.gmra.mxu1 %v36_v26  ;;  %384 = vmatprep.subr.mxu0 %v688_v0 }
  0x51   :  { %315 = vmatprep.mubr.f32.mxu0 %v55_v27  ;;  %385 = vmatpush2.msra.mxu0 %v947_v55  ;;  %v64_v55 = vld [vmem:[%s1382_s0 + $0x190] sm:$0xff] }
  0x52   :  { %316 = vmatmul.mubr.f32.gmra.mxu0 %v54_v28  ;;  %386 = vmatprep.subr.mxu0 %v688_v0 }
  0x53   :  { %535 = vmatprep.mubr.msk.f32.mxu1 %vm148_vm1, %v41_v29  ;;  %387 = vmatpush2.msra.mxu0 %v955_v56  ;;  %v69_v56 = vld [vmem:[%s1382_s0 + $0x1b8] sm:$0xff] }
  0x54   :  { %441 = vmatmul.mubr.f32.gmra.mxu1 %v40_v30  ;;  %388 = vmatprep.subr.mxu0 %v688_v0 }
  0x55   :  { %320 = vmatprep.mubr.f32.mxu0 %v59_v31  ;;  %389 = vmatpush2.msra.mxu0 %v972_v59  ;;  %v73_v59 = vld [vmem:[%s1382_s0 + $0x1d8] sm:$0xff] }
  0x56   :  { %321 = vmatmul.mubr.f32.gmra.mxu0 %v58_v32  ;;  %390 = vmatprep.subr.mxu0 %v688_v0 }
  0x57   :  { %536 = vmatprep.mubr.msk.f32.mxu1 %vm148_vm1, %v45_v33  ;;  %391 = vmatpush2.msra.mxu0 %v979_v60  ;;  %v24_v60 = vld [vmem:[%s1382_s0 + $0x50] sm:$0xff] }
  0x58   :  { %446 = vmatmul.mubr.f32.gmra.mxu1 %v44_v34  ;;  %392 = vmatprep.subr.mxu0 %v688_v0 }
  0x59   :  { %325 = vmatprep.mubr.f32.mxu0 %v63_v35  ;;  %393 = vmatpush2.msra.mxu0 %v996_v63  ;;  %v76_v63 = vld [vmem:[%s1382_s0 + $0x1f0] sm:$0xff] }
  0x5a   :  { %326 = vmatmul.mubr.f32.gmra.mxu0 %v62_v36  ;;  %394 = vmatprep.subr.mxu0 %v688_v0 }
  0x5b   :  { %537 = vmatprep.mubr.msk.f32.mxu1 %vm148_vm1, %v49_v37  ;;  %395 = vmatpush2.msra.mxu0 %v1003_v1 }
  0x5c   :  { %451 = vmatmul.mubr.f32.gmra.mxu1 %v48_v38  ;;  %396 = vmatprep.subr.mxu0 %v688_v0 }
  0x5d   :  { %330 = vmatprep.mubr.f32.mxu0 %v67_v39  ;;  %397 = vmatpush2.msra.mxu0 %v1020_v4 }
  0x5e   :  { %331 = vmatmul.mubr.f32.gmra.mxu0 %v66_v40  ;;  %398 = vmatprep.subr.mxu0 %v688_v0 }
  0x5f   :  { %538 = vmatprep.mubr.msk.f32.mxu1 %vm148_vm1, %v53_v41  ;;  %399 = vmatpush2.msra.mxu0 %v1027_v5 }
  0x60   :  { %456 = vmatmul.mubr.f32.gmra.mxu1 %v52_v42  ;;  %400 = vmatprep.subr.mxu0 %v688_v0 }
  0x61   :  { %335 = vmatprep.mubr.f32.mxu0 %v71_v43  ;;  %401 = vmatpush2.msra.mxu0 %v1044_v8 }
  0x62   :  { %336 = vmatmul.mubr.f32.gmra.mxu0 %v70_v44  ;;  %402 = vmatprep.subr.mxu0 %v688_v0 }
  0x63   :  { %539 = vmatprep.mubr.msk.f32.mxu1 %vm148_vm1, %v57_v45  ;;  %403 = vmatpush2.msra.mxu0 %v1051_v9 }
  0x64   :  { %461 = vmatmul.mubr.f32.gmra.mxu1 %v56_v46  ;;  %404 = vmatprep.subr.mxu0 %v688_v0 }
  0x65   :  { %340 = vmatprep.mubr.f32.mxu0 %v75_v47  ;;  %405 = vmatpush2.msra.mxu0 %v1068_v12 }
  0x66   :  { %341 = vmatmul.mubr.f32.gmra.mxu0 %v74_v48  ;;  %406 = vmatprep.subr.mxu0 %v688_v0 }
  0x67   :  { %540 = vmatprep.mubr.msk.f32.mxu1 %vm148_vm1, %v61_v49  ;;  %407 = vmatpush2.msra.mxu0 %v1075_v13 }
  0x68   :  { %466 = vmatmul.mubr.f32.gmra.mxu1 %v60_v50  ;;  %408 = vmatprep.subr.mxu0 %v688_v0  ;;  %v20_v0 = vld [vmem:[%s1382_s0 + $0x30] sm:$0xff] }
  0x69   :  { %409 = vmatpush2.msra.mxu0 %v1092_v16  ;;  %529 = vmatprep.mubr.msk.f32.mxu0 %vm148_vm1, %v17_v51 }
  0x6a   :  { %411 = vmatmul.mubr.f32.vlgmr.msra.gmra.mxu0 %v16_v52  ;;  %541 = vmatprep.mubr.msk.f32.mxu1 %vm148_vm1, %v65_v53 }
  0x6b   :  { %530 = vmatprep.mubr.msk.f32.mxu0 %vm148_vm1, %v21_v54 }
  0x6c   :  { %471 = vmatmul.mubr.f32.gmra.mxu1 %v64_v55 }
  0x6d   :  { %542 = vmatprep.mubr.msk.f32.mxu1 %vm148_vm1, %v69_v56 }
  0x6e   :  { %416 = vmatmul.mubr.f32.gmra.mxu0 %v20_v0 }
  0x6f   :  { %531 = vmatprep.mubr.msk.f32.mxu0 %vm148_vm1, %v25_v57 }
  0x70   :  { %476 = vmatmul.mubr.f32.gmra.mxu1 %v68_v58 }
  0x71   :  { %543 = vmatprep.mubr.msk.f32.mxu1 %vm148_vm1, %v73_v59 }
  0x72   :  { %421 = vmatmul.mubr.f32.gmra.mxu0 %v24_v60 }
  0x74   :  { %481 = vmatmul.mubr.f32.gmra.mxu1 %v72_v61 }
  0x75   :  { %544 = vmatprep.mubr.msk.f32.mxu1 %vm148_vm1, %v77_v62 }
  0x78   :  { %486 = vmatmul.mubr.f32.gmra.mxu1 %v76_v63 }
  0xe3   :  { %v1294_v1 = vpop.f32.mrf.mxu0 }
  0xe5   :  { %v1296_v2 = vpop.f32.mrf.mxu0 }
  0xe7   :  { %v1298_v3 = vpop.f32.mrf.mxu0 }
  0xe9   :  { %v1300_v4 = vpop.f32.mrf.mxu0 }
  0xec   :  { %v1302_v5 = vpop.f32.mrf.mxu0 }
  0xee   :  { %v1304_v6 = vpop.f32.mrf.mxu0 }
  0xf1   :  { %v586_v7 = vpop.f32.mrf.mxu0 }
  0xf3   :  { %v587_v8 = vpop.f32.mrf.mxu0 }
  0xf4   :  { %v588_v15 = vadd.f32 %v587_v8, %v586_v7 }
  0xf6   :  { %v589_v9 = vpop.f32.mrf.mxu0  ;;  %v283_v19 = vadd.f32 %v588_v15, %v1309_v17 }
  0xf8   :  { %v590_v10 = vpop.f32.mrf.mxu0 }
  0xf9   :  { %v591_v18 = vadd.f32 %v590_v10, %v589_v9 }
  0xfb   :  { %v592_v11 = vpop.f32.mrf.mxu0  ;;  %v288_v27 = vadd.f32 %v591_v18, %v1309_v17 }
  0xfd   :  { %v593_v12 = vpop.f32.mrf.mxu0 }
  0xfe   :  { %v594_v25 = vadd.f32 %v593_v12, %v592_v11 }
 0x100   :  { %v595_v13 = vpop.f32.mrf.mxu0  ;;  %v293_v35 = vadd.f32 %v594_v25, %v1309_v17 }
 0x102   :  { %v596_v14 = vpop.f32.mrf.mxu0 }
 0x103   :  { %v597_v33 = vadd.f32 %v596_v14, %v595_v13 }
 0x105   :  { %v598_v16 = vpop.f32.mrf.mxu0  ;;  %v298_v43 = vadd.f32 %v597_v33, %v1309_v17 }
 0x107   :  { %v599_v20 = vpop.f32.mrf.mxu0 }
 0x108   :  { %v427_v21 = vpop.f32.mrf.mxu1  ;;  %v600_v41 = vadd.f32 %v599_v20, %v598_v16 }
 0x109   :  { %v428_v22 = vadd.f32 %v427_v21, %v283_v19  ;;  %v579_v21 = vadd.f32 %v1296_v2, %v1294_v1 }
 0x10a   :  { %v429_v23 = vpop.f32.mrf.mxu1  ;;  %v601_v24 = vpop.f32.mrf.mxu0  ;;  %v303_v51 = vadd.f32 %v600_v41, %v1309_v17 }
 0x10b   :  { %v494_v26 = vmax.f32 %v428_v22, 0.0  ;;  %v268_v2 = vadd.f32 %v579_v21, %v1309_v17 }
 0x10c   :  { %v432_v28 = vpop.f32.mrf.mxu1  ;;  %v602_v29 = vpop.f32.mrf.mxu0 }
 0x10d   :  { %510 = vst [vmem:[%s1384_s3 + $0x18] sm:$0xff] %v494_v26  ;;  %v433_v30 = vadd.f32 %v432_v28, %v288_v27  ;;  %v603_v49 = vadd.f32 %v602_v29, %v601_v24 }
 0x10e   :  { %v434_v31 = vpop.f32.mrf.mxu1  ;;  %v604_v32 = vpop.f32.mrf.mxu0 }
 0x10f   :  { %v495_v34 = vmax.f32 %v433_v30, 0.0  ;;  %v308_v58 = vadd.f32 %v603_v49, %v1309_v17  ;;  %v582_v30 = vadd.f32 %v1300_v4, %v1298_v3 }
 0x110   :  { %v437_v36 = vpop.f32.mrf.mxu1  ;;  %v605_v37 = vpop.f32.mrf.mxu0 }
 0x111   :  { %511 = vst [vmem:[%s1384_s3 + $0x20] sm:$0xff] %v495_v34  ;;  %v438_v38 = vadd.f32 %v437_v36, %v293_v35  ;;  %v606_v0 = vadd.f32 %v605_v37, %v604_v32 }
 0x112   :  { %v439_v39 = vpop.f32.mrf.mxu1  ;;  %v607_v40 = vpop.f32.mrf.mxu0 }
 0x113   :  { %v496_v42 = vmax.f32 %v438_v38, 0.0  ;;  %v313_v9 = vadd.f32 %v606_v0, %v1309_v17  ;;  %v585_v39 = vadd.f32 %v1304_v6, %v1302_v5 }
 0x114   :  { %v442_v44 = vpop.f32.mrf.mxu1  ;;  %v608_v45 = vpop.f32.mrf.mxu0 }
 0x115   :  { %512 = vst [vmem:[%s1384_s3 + $0x28] sm:$0xff] %v496_v42  ;;  %v443_v46 = vadd.f32 %v442_v44, %v298_v43  ;;  %v609_v7 = vadd.f32 %v608_v45, %v607_v40  ;;  %v273_v40 = vadd.f32 %v582_v30, %v1309_v17  ;;  %v278_v49 = vadd.f32 %v585_v39, %v1309_v17 }
 0x116   :  { %v444_v47 = vpop.f32.mrf.mxu1  ;;  %v610_v48 = vpop.f32.mrf.mxu0 }
 0x117   :  { %v497_v50 = vmax.f32 %v443_v46, 0.0  ;;  %v318_v18 = vadd.f32 %v609_v7, %v1309_v17 }
 0x118   :  { %v447_v52 = vpop.f32.mrf.mxu1  ;;  %v611_v53 = vpop.f32.mrf.mxu0 }
 0x119   :  { %513 = vst [vmem:[%s1384_s3 + $0x30] sm:$0xff] %v497_v50  ;;  %v448_v54 = vadd.f32 %v447_v52, %v303_v51  ;;  %v612_v15 = vadd.f32 %v611_v53, %v610_v48 }
 0x11a   :  { %v449_v55 = vpop.f32.mrf.mxu1  ;;  %v613_v56 = vpop.f32.mrf.mxu0 }
 0x11b   :  { %v498_v57 = vmax.f32 %v448_v54, 0.0  ;;  %v323_v27 = vadd.f32 %v612_v15, %v1309_v17 }
 0x11c   :  { %v452_v59 = vpop.f32.mrf.mxu1  ;;  %v614_v60 = vpop.f32.mrf.mxu0 }
 0x11d   :  { %514 = vst [vmem:[%s1384_s3 + $0x38] sm:$0xff] %v498_v57  ;;  %v453_v61 = vadd.f32 %v452_v59, %v308_v58  ;;  %v615_v25 = vadd.f32 %v614_v60, %v613_v56 }
 0x11e   :  { %v454_v62 = vpop.f32.mrf.mxu1  ;;  %v616_v63 = vpop.f32.mrf.mxu0 }
 0x11f   :  { %v499_v8 = vmax.f32 %v453_v61, 0.0  ;;  %v328_v36 = vadd.f32 %v615_v25, %v1309_v17 }
 0x120   :  { %v457_v10 = vpop.f32.mrf.mxu1  ;;  %v617_v11 = vpop.f32.mrf.mxu0 }
 0x121   :  { %515 = vst [vmem:[%s1384_s3 + $0x40] sm:$0xff] %v499_v8  ;;  %v458_v12 = vadd.f32 %v457_v10, %v313_v9  ;;  %v618_v33 = vadd.f32 %v617_v11, %v616_v63 }
 0x122   :  { %v459_v13 = vpop.f32.mrf.mxu1  ;;  %v619_v14 = vpop.f32.mrf.mxu0 }
 0x123   :  { %v500_v16 = vmax.f32 %v458_v12, 0.0  ;;  %v333_v46 = vadd.f32 %v618_v33, %v1309_v17 }
 0x124   :  { %v462_v19 = vpop.f32.mrf.mxu1  ;;  %v620_v20 = vpop.f32.mrf.mxu0 }
 0x125   :  { %516 = vst [vmem:[%s1384_s3 + $0x48] sm:$0xff] %v500_v16  ;;  %v463_v22 = vadd.f32 %v462_v19, %v318_v18  ;;  %v621_v43 = vadd.f32 %v620_v20, %v619_v14 }
 0x126   :  { %v464_v23 = vpop.f32.mrf.mxu1  ;;  %v622_v24 = vpop.f32.mrf.mxu0 }
 0x127   :  { %v501_v26 = vmax.f32 %v463_v22, 0.0  ;;  %v338_v55 = vadd.f32 %v621_v43, %v1309_v17 }
 0x128   :  { %v467_v28 = vpop.f32.mrf.mxu1  ;;  %v623_v29 = vpop.f32.mrf.mxu0 }
 0x129   :  { %517 = vst [vmem:[%s1384_s3 + $0x50] sm:$0xff] %v501_v26  ;;  %v468_v1 = vadd.f32 %v467_v28, %v323_v27  ;;  %v624_v52 = vadd.f32 %v623_v29, %v622_v24 }
 0x12a   :  { %v469_v31 = vpop.f32.mrf.mxu1  ;;  %v412_v32 = vpop.f32.mrf.mxu0 }
 0x12b   :  { %v502_v34 = vmax.f32 %v468_v1, 0.0  ;;  %v413_v35 = vadd.f32 %v412_v32, %v268_v2  ;;  %v343_v61 = vadd.f32 %v624_v52, %v1309_v17 }
 0x12c   :  { %v472_v37 = vpop.f32.mrf.mxu1  ;;  %v414_v38 = vpop.f32.mrf.mxu0 }
 0x12d   :  { %518 = vst [vmem:[%s1384_s3 + $0x58] sm:$0xff] %v502_v34  ;;  %v491_v3 = vmax.f32 %v413_v35, 0.0  ;;  %v473_v4 = vadd.f32 %v472_v37, %v328_v36 }
 0x12e   :  { %v474_v41 = vpop.f32.mrf.mxu1  ;;  %v417_v42 = vpop.f32.mrf.mxu0 }
 0x12f   :  { %507 = vst [vmem:[%s1384_s3] sm:$0xff] %v491_v3  ;;  %v503_v44 = vmax.f32 %v473_v4, 0.0  ;;  %v418_v45 = vadd.f32 %v417_v42, %v273_v40 }
 0x130   :  { %v477_v5 = vpop.f32.mrf.mxu1  ;;  %v419_v6 = vpop.f32.mrf.mxu0 }
 0x131   :  { %519 = vst [vmem:[%s1384_s3 + $0x60] sm:$0xff] %v503_v44  ;;  %v492_v47 = vmax.f32 %v418_v45, 0.0  ;;  %v478_v48 = vadd.f32 %v477_v5, %v333_v46 }
 0x132   :  { %v479_v50 = vpop.f32.mrf.mxu1  ;;  %v422_v51 = vpop.f32.mrf.mxu0 }
 0x133   :  { %508 = vst [vmem:[%s1384_s3 + $0x8] sm:$0xff] %v492_v47  ;;  %v504_v53 = vmax.f32 %v478_v48, 0.0  ;;  %v423_v54 = vadd.f32 %v422_v51, %v278_v49 }
 0x134   :  { %v482_v56 = vpop.f32.mrf.mxu1  ;;  %v424_v0 = vpop.f32.mrf.mxu0 }
 0x135   :  { %520 = vst [vmem:[%s1384_s3 + $0x68] sm:$0xff] %v504_v53  ;;  %v493_v57 = vmax.f32 %v423_v54, 0.0  ;;  %v483_v58 = vadd.f32 %v482_v56, %v338_v55 }
 0x136   :  { %v484_v59 = vpop.f32.mrf.mxu1 }
 0x137   :  { %509 = vst [vmem:[%s1384_s3 + $0x10] sm:$0xff] %v493_v57  ;;  %v505_v60 = vmax.f32 %v483_v58, 0.0 }
 0x138   :  { %v487_v62 = vpop.f32.mrf.mxu1 }
 0x139   :  { %521 = vst [vmem:[%s1384_s3 + $0x70] sm:$0xff] %v505_v60  ;;  %v488_v63 = vadd.f32 %v487_v62, %v343_v61 }
 0x13a   :  { %v489_v7 = vpop.f32.mrf.mxu1 }
 0x13b   :  { %v506_v8 = vmax.f32 %v488_v63, 0.0 }
 0x13d   :  { %522 = vst [vmem:[%s1384_s3 + $0x78] sm:$0xff] %v506_v8 }

// kernel: lenet5_forward.5
= control target key start
LH: loop header
LB: loop body
LE: loop exit
PB: predicated region body
PF: predicated region fallthrough
CT: control target
= control target key end

     0   :  { %vm449_vm0 = vcmask 261120   ;;  %s2820_s1 = inlined_call_operand.vmem [shape: f32[800,512], index: 1, kind: input, shape index: {}]   ;;  %s2821_s0 = inlined_call_operand.vmem [shape: f32[8,800], index: 0, kind: input, shape index: {}]   ;;  %s2822_s3 = inlined_call_operand.vmem [shape: f32[512,128], index: 3, kind: input, shape index: {}]   ;;  %s2823_s2 = inlined_call_operand.vmem [shape: f32[1,512], index: 2, kind: input, shape index: {}]   ;;  %s2824_s4 = inlined_call_operand.vmem [shape: f32[1,128], index: 4, kind: input, shape index: {}]   ;;  %s2825_s5 = inlined_call_operand.vmem [shape: f32[8,128], index: 5, kind: output, shape index: {}]  }
   0x1   :  { %v88_v0 = vld [vmem:[%s2820_s1 + $0x1e8] sm:$0xff]  ;;  %v87_v2 = vld [vmem:[%s2820_s1 + $0x1e0] sm:$0xff] }
   0x2   :  { %v216_v1 = vld [vmem:[%s2820_s1 + $0x5e8] sm:$0xff]  ;;  %453 = vmatprep.subr.mxu0 %v88_v0  ;;  %v215_v3 = vld [vmem:[%s2820_s1 + $0x5e0] sm:$0xff] }
   0x3   :  { %524 = vmatprep.subr.mxu1 %v216_v1  ;;  %v84_v4 = vld [vmem:[%s2820_s1 + $0x1c8] sm:$0xff]  ;;  %454 = vmatpush1.msra.mxu0 %v87_v2  ;;  %v83_v6 = vld [vmem:[%s2820_s1 + $0x1c0] sm:$0xff] }
   0x4   :  { %v212_v5 = vld [vmem:[%s2820_s1 + $0x5c8] sm:$0xff]  ;;  %525 = vmatpush1.msra.mxu1 %v215_v3  ;;  %v211_v7 = vld [vmem:[%s2820_s1 + $0x5c0] sm:$0xff]  ;;  %455 = vmatprep.subr.mxu0 %v84_v4 }
   0x5   :  { %v80_v8 = vld [vmem:[%s2820_s1 + $0x1a8] sm:$0xff]  ;;  %526 = vmatprep.subr.mxu1 %v212_v5  ;;  %v79_v10 = vld [vmem:[%s2820_s1 + $0x1a0] sm:$0xff]  ;;  %456 = vmatpush1.msra.mxu0 %v83_v6 }
   0x6   :  { %v208_v9 = vld [vmem:[%s2820_s1 + $0x5a8] sm:$0xff]  ;;  %v207_v11 = vld [vmem:[%s2820_s1 + $0x5a0] sm:$0xff]  ;;  %527 = vmatpush1.msra.mxu1 %v211_v7  ;;  %457 = vmatprep.subr.mxu0 %v80_v8 }
   0x7   :  { %v76_v12 = vld [vmem:[%s2820_s1 + $0x188] sm:$0xff]  ;;  %528 = vmatprep.subr.mxu1 %v208_v9  ;;  %v75_v14 = vld [vmem:[%s2820_s1 + $0x180] sm:$0xff]  ;;  %458 = vmatpush1.msra.mxu0 %v79_v10 }
   0x8   :  { %v204_v13 = vld [vmem:[%s2820_s1 + $0x588] sm:$0xff]  ;;  %v203_v15 = vld [vmem:[%s2820_s1 + $0x580] sm:$0xff]  ;;  %529 = vmatpush1.msra.mxu1 %v207_v11  ;;  %459 = vmatprep.subr.mxu0 %v76_v12 }
   0x9   :  { %v72_v16 = vld [vmem:[%s2820_s1 + $0x168] sm:$0xff]  ;;  %530 = vmatprep.subr.mxu1 %v204_v13  ;;  %v71_v18 = vld [vmem:[%s2820_s1 + $0x160] sm:$0xff]  ;;  %460 = vmatpush1.msra.mxu0 %v75_v14 }
   0xa   :  { %v200_v17 = vld [vmem:[%s2820_s1 + $0x568] sm:$0xff]  ;;  %v199_v19 = vld [vmem:[%s2820_s1 + $0x560] sm:$0xff]  ;;  %531 = vmatpush1.msra.mxu1 %v203_v15  ;;  %461 = vmatprep.subr.mxu0 %v72_v16 }
   0xb   :  { %v68_v20 = vld [vmem:[%s2820_s1 + $0x148] sm:$0xff]  ;;  %532 = vmatprep.subr.mxu1 %v200_v17  ;;  %v67_v22 = vld [vmem:[%s2820_s1 + $0x140] sm:$0xff]  ;;  %462 = vmatpush1.msra.mxu0 %v71_v18 }
   0xc   :  { %v196_v21 = vld [vmem:[%s2820_s1 + $0x548] sm:$0xff]  ;;  %v195_v23 = vld [vmem:[%s2820_s1 + $0x540] sm:$0xff]  ;;  %533 = vmatpush1.msra.mxu1 %v199_v19  ;;  %463 = vmatprep.subr.mxu0 %v68_v20 }
   0xd   :  { %v64_v24 = vld [vmem:[%s2820_s1 + $0x128] sm:$0xff]  ;;  %534 = vmatprep.subr.mxu1 %v196_v21  ;;  %v63_v26 = vld [vmem:[%s2820_s1 + $0x120] sm:$0xff]  ;;  %464 = vmatpush1.msra.mxu0 %v67_v22 }
   0xe   :  { %v192_v25 = vld [vmem:[%s2820_s1 + $0x528] sm:$0xff]  ;;  %v191_v27 = vld [vmem:[%s2820_s1 + $0x520] sm:$0xff]  ;;  %535 = vmatpush1.msra.mxu1 %v195_v23  ;;  %465 = vmatprep.subr.mxu0 %v64_v24 }
   0xf   :  { %v60_v28 = vld [vmem:[%s2820_s1 + $0x108] sm:$0xff]  ;;  %536 = vmatprep.subr.mxu1 %v192_v25  ;;  %v59_v30 = vld [vmem:[%s2820_s1 + $0x100] sm:$0xff]  ;;  %466 = vmatpush1.msra.mxu0 %v63_v26 }
  0x10   :  { %v188_v29 = vld [vmem:[%s2820_s1 + $0x508] sm:$0xff]  ;;  %v187_v31 = vld [vmem:[%s2820_s1 + $0x500] sm:$0xff]  ;;  %537 = vmatpush1.msra.mxu1 %v191_v27  ;;  %467 = vmatprep.subr.mxu0 %v60_v28 }
  0x11   :  { %v56_v32 = vld [vmem:[%s2820_s1 + $0xe8] sm:$0xff]  ;;  %538 = vmatprep.subr.mxu1 %v188_v29  ;;  %v55_v34 = vld [vmem:[%s2820_s1 + $0xe0] sm:$0xff]  ;;  %468 = vmatpush1.msra.mxu0 %v59_v30 }
  0x12   :  { %v184_v33 = vld [vmem:[%s2820_s1 + $0x4e8] sm:$0xff]  ;;  %v183_v35 = vld [vmem:[%s2820_s1 + $0x4e0] sm:$0xff]  ;;  %539 = vmatpush1.msra.mxu1 %v187_v31  ;;  %469 = vmatprep.subr.mxu0 %v56_v32 }
  0x13   :  { %v52_v36 = vld [vmem:[%s2820_s1 + $0xc8] sm:$0xff]  ;;  %540 = vmatprep.subr.mxu1 %v184_v33  ;;  %v51_v38 = vld [vmem:[%s2820_s1 + $0xc0] sm:$0xff]  ;;  %470 = vmatpush1.msra.mxu0 %v55_v34 }
  0x14   :  { %v180_v37 = vld [vmem:[%s2820_s1 + $0x4c8] sm:$0xff]  ;;  %v179_v39 = vld [vmem:[%s2820_s1 + $0x4c0] sm:$0xff]  ;;  %541 = vmatpush1.msra.mxu1 %v183_v35  ;;  %471 = vmatprep.subr.mxu0 %v52_v36 }
  0x15   :  { %v48_v40 = vld [vmem:[%s2820_s1 + $0xa8] sm:$0xff]  ;;  %542 = vmatprep.subr.mxu1 %v180_v37  ;;  %v47_v42 = vld [vmem:[%s2820_s1 + $0xa0] sm:$0xff]  ;;  %472 = vmatpush1.msra.mxu0 %v51_v38 }
  0x16   :  { %v176_v41 = vld [vmem:[%s2820_s1 + $0x4a8] sm:$0xff]  ;;  %v175_v43 = vld [vmem:[%s2820_s1 + $0x4a0] sm:$0xff]  ;;  %543 = vmatpush1.msra.mxu1 %v179_v39  ;;  %473 = vmatprep.subr.mxu0 %v48_v40 }
  0x17   :  { %v44_v44 = vld [vmem:[%s2820_s1 + $0x88] sm:$0xff]  ;;  %544 = vmatprep.subr.mxu1 %v176_v41  ;;  %v43_v46 = vld [vmem:[%s2820_s1 + $0x80] sm:$0xff]  ;;  %474 = vmatpush1.msra.mxu0 %v47_v42 }
  0x18   :  { %v172_v45 = vld [vmem:[%s2820_s1 + $0x488] sm:$0xff]  ;;  %v171_v47 = vld [vmem:[%s2820_s1 + $0x480] sm:$0xff]  ;;  %545 = vmatpush1.msra.mxu1 %v175_v43  ;;  %475 = vmatprep.subr.mxu0 %v44_v44 }
  0x19   :  { %v40_v48 = vld [vmem:[%s2820_s1 + $0x68] sm:$0xff]  ;;  %546 = vmatprep.subr.mxu1 %v172_v45  ;;  %v39_v50 = vld [vmem:[%s2820_s1 + $0x60] sm:$0xff]  ;;  %476 = vmatpush1.msra.mxu0 %v43_v46 }
  0x1a   :  { %v168_v49 = vld [vmem:[%s2820_s1 + $0x468] sm:$0xff]  ;;  %v167_v51 = vld [vmem:[%s2820_s1 + $0x460] sm:$0xff]  ;;  %547 = vmatpush1.msra.mxu1 %v171_v47  ;;  %477 = vmatprep.subr.mxu0 %v40_v48 }
  0x1b   :  { %v36_v52 = vld [vmem:[%s2820_s1 + $0x48] sm:$0xff]  ;;  %548 = vmatprep.subr.mxu1 %v168_v49  ;;  %v35_v54 = vld [vmem:[%s2820_s1 + $0x40] sm:$0xff]  ;;  %478 = vmatpush1.msra.mxu0 %v39_v50 }
  0x1c   :  { %v164_v53 = vld [vmem:[%s2820_s1 + $0x448] sm:$0xff]  ;;  %v163_v55 = vld [vmem:[%s2820_s1 + $0x440] sm:$0xff]  ;;  %549 = vmatpush1.msra.mxu1 %v167_v51  ;;  %479 = vmatprep.subr.mxu0 %v36_v52 }
  0x1d   :  { %v32_v56 = vld [vmem:[%s2820_s1 + $0x28] sm:$0xff]  ;;  %550 = vmatprep.subr.mxu1 %v164_v53  ;;  %v31_v58 = vld [vmem:[%s2820_s1 + $0x20] sm:$0xff]  ;;  %480 = vmatpush1.msra.mxu0 %v35_v54 }
  0x1e   :  { %v160_v57 = vld [vmem:[%s2820_s1 + $0x428] sm:$0xff]  ;;  %v159_v59 = vld [vmem:[%s2820_s1 + $0x420] sm:$0xff]  ;;  %551 = vmatpush1.msra.mxu1 %v163_v55  ;;  %481 = vmatprep.subr.mxu0 %v32_v56 }
  0x1f   :  { %v28_v60 = vld [vmem:[%s2820_s1 + $0x8] sm:$0xff]  ;;  %552 = vmatprep.subr.mxu1 %v160_v57  ;;  %v27_v62 = vld [vmem:[%s2820_s1] sm:$0xff]  ;;  %482 = vmatpush1.msra.mxu0 %v31_v58 }
  0x20   :  { %v156_v61 = vld [vmem:[%s2820_s1 + $0x408] sm:$0xff]  ;;  %v155_v63 = vld [vmem:[%s2820_s1 + $0x400] sm:$0xff]  ;;  %553 = vmatpush1.msra.mxu1 %v159_v59  ;;  %483 = vmatprep.subr.mxu0 %v28_v60 }
  0x21   :  { %v152_v0 = vld [vmem:[%s2820_s1 + $0x3e8] sm:$0xff]  ;;  %554 = vmatprep.subr.mxu1 %v156_v61  ;;  %v151_v2 = vld [vmem:[%s2820_s1 + $0x3e0] sm:$0xff]  ;;  %484 = vmatpush1.msra.mxu0 %v27_v62 }
  0x22   :  { %v280_v1 = vld [vmem:[%s2820_s1 + $0x7e8] sm:$0xff]  ;;  %v279_v3 = vld [vmem:[%s2820_s1 + $0x7e0] sm:$0xff]  ;;  %555 = vmatpush1.msra.mxu1 %v155_v63  ;;  %485 = vmatprep.subr.mxu0 %v152_v0 }
  0x23   :  { %v148_v4 = vld [vmem:[%s2820_s1 + $0x3c8] sm:$0xff]  ;;  %556 = vmatprep.subr.mxu1 %v280_v1  ;;  %v147_v6 = vld [vmem:[%s2820_s1 + $0x3c0] sm:$0xff]  ;;  %486 = vmatpush2.msra.mxu0 %v151_v2  ;;  %v23_v1 = vld [vmem:[%s2821_s0 + $0x18] sm:$0xff] }
  0x24   :  { %v276_v5 = vld [vmem:[%s2820_s1 + $0x7c8] sm:$0xff]  ;;  %v275_v7 = vld [vmem:[%s2820_s1 + $0x7c0] sm:$0xff]  ;;  %557 = vmatpush2.msra.mxu1 %v279_v3  ;;  %487 = vmatprep.subr.mxu0 %v148_v4  ;;  %v22_v3 = vld [vmem:[%s2821_s0 + $0x10] sm:$0xff] }
  0x25   :  { %v144_v8 = vld [vmem:[%s2820_s1 + $0x3a8] sm:$0xff]  ;;  %558 = vmatprep.subr.mxu1 %v276_v5  ;;  %v143_v10 = vld [vmem:[%s2820_s1 + $0x3a0] sm:$0xff]  ;;  %488 = vmatpush2.msra.mxu0 %v147_v6 }
  0x26   :  { %v272_v9 = vld [vmem:[%s2820_s1 + $0x7a8] sm:$0xff]  ;;  %v271_v11 = vld [vmem:[%s2820_s1 + $0x7a0] sm:$0xff]  ;;  %559 = vmatpush2.msra.mxu1 %v275_v7  ;;  %489 = vmatprep.subr.mxu0 %v144_v8 }
  0x27   :  { %v140_v12 = vld [vmem:[%s2820_s1 + $0x388] sm:$0xff]  ;;  %560 = vmatprep.subr.mxu1 %v272_v9  ;;  %v139_v14 = vld [vmem:[%s2820_s1 + $0x380] sm:$0xff]  ;;  %490 = vmatpush2.msra.mxu0 %v143_v10 }
  0x28   :  { %v268_v13 = vld [vmem:[%s2820_s1 + $0x788] sm:$0xff]  ;;  %v267_v15 = vld [vmem:[%s2820_s1 + $0x780] sm:$0xff]  ;;  %561 = vmatpush2.msra.mxu1 %v271_v11  ;;  %491 = vmatprep.subr.mxu0 %v140_v12 }
  0x29   :  { %v136_v16 = vld [vmem:[%s2820_s1 + $0x368] sm:$0xff]  ;;  %562 = vmatprep.subr.mxu1 %v268_v13  ;;  %v135_v18 = vld [vmem:[%s2820_s1 + $0x360] sm:$0xff]  ;;  %492 = vmatpush2.msra.mxu0 %v139_v14 }
  0x2a   :  { %v264_v17 = vld [vmem:[%s2820_s1 + $0x768] sm:$0xff]  ;;  %v263_v19 = vld [vmem:[%s2820_s1 + $0x760] sm:$0xff]  ;;  %563 = vmatpush2.msra.mxu1 %v267_v15  ;;  %493 = vmatprep.subr.mxu0 %v136_v16 }
  0x2b   :  { %v132_v20 = vld [vmem:[%s2820_s1 + $0x348] sm:$0xff]  ;;  %564 = vmatprep.subr.mxu1 %v264_v17  ;;  %v131_v22 = vld [vmem:[%s2820_s1 + $0x340] sm:$0xff]  ;;  %494 = vmatpush2.msra.mxu0 %v135_v18 }
  0x2c   :  { %v260_v21 = vld [vmem:[%s2820_s1 + $0x748] sm:$0xff]  ;;  %v259_v23 = vld [vmem:[%s2820_s1 + $0x740] sm:$0xff]  ;;  %565 = vmatpush2.msra.mxu1 %v263_v19  ;;  %495 = vmatprep.subr.mxu0 %v132_v20 }
  0x2d   :  { %v128_v24 = vld [vmem:[%s2820_s1 + $0x328] sm:$0xff]  ;;  %566 = vmatprep.subr.mxu1 %v260_v21  ;;  %v127_v26 = vld [vmem:[%s2820_s1 + $0x320] sm:$0xff]  ;;  %496 = vmatpush2.msra.mxu0 %v131_v22  ;;  %v26_v21 = vld [vmem:[%s2821_s0 + $0x30] sm:$0xff] }
  0x2e   :  { %v256_v25 = vld [vmem:[%s2820_s1 + $0x728] sm:$0xff]  ;;  %v255_v27 = vld [vmem:[%s2820_s1 + $0x720] sm:$0xff]  ;;  %567 = vmatpush2.msra.mxu1 %v259_v23  ;;  %497 = vmatprep.subr.mxu0 %v128_v24  ;;  %v90_v22 = vld [vmem:[%s2820_s1 + $0x1f8] sm:$0xff] }
  0x2f   :  { %v124_v28 = vld [vmem:[%s2820_s1 + $0x308] sm:$0xff]  ;;  %568 = vmatprep.subr.mxu1 %v256_v25  ;;  %v123_v30 = vld [vmem:[%s2820_s1 + $0x300] sm:$0xff]  ;;  %498 = vmatpush2.msra.mxu0 %v127_v26  ;;  %v89_v24 = vld [vmem:[%s2820_s1 + $0x1f0] sm:$0xff]  ;;  %v1338_v25 = vmov 0.0  }
  0x30   :  { %v252_v29 = vld [vmem:[%s2820_s1 + $0x708] sm:$0xff]  ;;  %v251_v31 = vld [vmem:[%s2820_s1 + $0x700] sm:$0xff]  ;;  %569 = vmatpush2.msra.mxu1 %v255_v27  ;;  %499 = vmatprep.subr.mxu0 %v124_v28  ;;  %v86_v27 = vld [vmem:[%s2820_s1 + $0x1d8] sm:$0xff] }
  0x31   :  { %v120_v32 = vld [vmem:[%s2820_s1 + $0x2e8] sm:$0xff]  ;;  %570 = vmatprep.subr.mxu1 %v252_v29  ;;  %v119_v34 = vld [vmem:[%s2820_s1 + $0x2e0] sm:$0xff]  ;;  %500 = vmatpush2.msra.mxu0 %v123_v30  ;;  %v85_v29 = vld [vmem:[%s2820_s1 + $0x1d0] sm:$0xff] }
  0x32   :  { %v248_v33 = vld [vmem:[%s2820_s1 + $0x6e8] sm:$0xff]  ;;  %v247_v35 = vld [vmem:[%s2820_s1 + $0x6e0] sm:$0xff]  ;;  %571 = vmatpush2.msra.mxu1 %v251_v31  ;;  %501 = vmatprep.subr.mxu0 %v120_v32  ;;  %v82_v31 = vld [vmem:[%s2820_s1 + $0x1b8] sm:$0xff] }
  0x33   :  { %v116_v36 = vld [vmem:[%s2820_s1 + $0x2c8] sm:$0xff]  ;;  %572 = vmatprep.subr.mxu1 %v248_v33  ;;  %v115_v38 = vld [vmem:[%s2820_s1 + $0x2c0] sm:$0xff]  ;;  %502 = vmatpush2.msra.mxu0 %v119_v34  ;;  %v81_v33 = vld [vmem:[%s2820_s1 + $0x1b0] sm:$0xff] }
  0x34   :  { %v244_v37 = vld [vmem:[%s2820_s1 + $0x6c8] sm:$0xff]  ;;  %v243_v39 = vld [vmem:[%s2820_s1 + $0x6c0] sm:$0xff]  ;;  %573 = vmatpush2.msra.mxu1 %v247_v35  ;;  %503 = vmatprep.subr.mxu0 %v116_v36  ;;  %v78_v35 = vld [vmem:[%s2820_s1 + $0x198] sm:$0xff] }
  0x35   :  { %v112_v40 = vld [vmem:[%s2820_s1 + $0x2a8] sm:$0xff]  ;;  %574 = vmatprep.subr.mxu1 %v244_v37  ;;  %v111_v42 = vld [vmem:[%s2820_s1 + $0x2a0] sm:$0xff]  ;;  %504 = vmatpush2.msra.mxu0 %v115_v38  ;;  %v77_v37 = vld [vmem:[%s2820_s1 + $0x190] sm:$0xff] }
  0x36   :  { %v240_v41 = vld [vmem:[%s2820_s1 + $0x6a8] sm:$0xff]  ;;  %v239_v43 = vld [vmem:[%s2820_s1 + $0x6a0] sm:$0xff]  ;;  %575 = vmatpush2.msra.mxu1 %v243_v39  ;;  %505 = vmatprep.subr.mxu0 %v112_v40  ;;  %v74_v39 = vld [vmem:[%s2820_s1 + $0x178] sm:$0xff] }
  0x37   :  { %v108_v44 = vld [vmem:[%s2820_s1 + $0x288] sm:$0xff]  ;;  %576 = vmatprep.subr.mxu1 %v240_v41  ;;  %v107_v46 = vld [vmem:[%s2820_s1 + $0x280] sm:$0xff]  ;;  %506 = vmatpush2.msra.mxu0 %v111_v42  ;;  %v73_v41 = vld [vmem:[%s2820_s1 + $0x170] sm:$0xff] }
  0x38   :  { %v236_v45 = vld [vmem:[%s2820_s1 + $0x688] sm:$0xff]  ;;  %v235_v47 = vld [vmem:[%s2820_s1 + $0x680] sm:$0xff]  ;;  %577 = vmatpush2.msra.mxu1 %v239_v43  ;;  %507 = vmatprep.subr.mxu0 %v108_v44  ;;  %v70_v43 = vld [vmem:[%s2820_s1 + $0x158] sm:$0xff] }
  0x39   :  { %v104_v48 = vld [vmem:[%s2820_s1 + $0x268] sm:$0xff]  ;;  %578 = vmatprep.subr.mxu1 %v236_v45  ;;  %v103_v50 = vld [vmem:[%s2820_s1 + $0x260] sm:$0xff]  ;;  %508 = vmatpush2.msra.mxu0 %v107_v46  ;;  %v69_v45 = vld [vmem:[%s2820_s1 + $0x150] sm:$0xff] }
  0x3a   :  { %v232_v49 = vld [vmem:[%s2820_s1 + $0x668] sm:$0xff]  ;;  %v231_v51 = vld [vmem:[%s2820_s1 + $0x660] sm:$0xff]  ;;  %579 = vmatpush2.msra.mxu1 %v235_v47  ;;  %509 = vmatprep.subr.mxu0 %v104_v48  ;;  %v66_v47 = vld [vmem:[%s2820_s1 + $0x138] sm:$0xff] }
  0x3b   :  { %v100_v52 = vld [vmem:[%s2820_s1 + $0x248] sm:$0xff]  ;;  %580 = vmatprep.subr.mxu1 %v232_v49  ;;  %v99_v54 = vld [vmem:[%s2820_s1 + $0x240] sm:$0xff]  ;;  %510 = vmatpush2.msra.mxu0 %v103_v50  ;;  %v65_v49 = vld [vmem:[%s2820_s1 + $0x130] sm:$0xff] }
  0x3c   :  { %v228_v53 = vld [vmem:[%s2820_s1 + $0x648] sm:$0xff]  ;;  %v227_v55 = vld [vmem:[%s2820_s1 + $0x640] sm:$0xff]  ;;  %581 = vmatpush2.msra.mxu1 %v231_v51  ;;  %511 = vmatprep.subr.mxu0 %v100_v52  ;;  %v62_v51 = vld [vmem:[%s2820_s1 + $0x118] sm:$0xff] }
  0x3d   :  { %v96_v56 = vld [vmem:[%s2820_s1 + $0x228] sm:$0xff]  ;;  %582 = vmatprep.subr.mxu1 %v228_v53  ;;  %v95_v58 = vld [vmem:[%s2820_s1 + $0x220] sm:$0xff]  ;;  %512 = vmatpush2.msra.mxu0 %v99_v54  ;;  %v61_v53 = vld [vmem:[%s2820_s1 + $0x110] sm:$0xff] }
  0x3e   :  { %v224_v57 = vld [vmem:[%s2820_s1 + $0x628] sm:$0xff]  ;;  %v223_v59 = vld [vmem:[%s2820_s1 + $0x620] sm:$0xff]  ;;  %583 = vmatpush2.msra.mxu1 %v227_v55  ;;  %513 = vmatprep.subr.mxu0 %v96_v56  ;;  %v58_v55 = vld [vmem:[%s2820_s1 + $0xf8] sm:$0xff] }
  0x3f   :  { %v92_v60 = vld [vmem:[%s2820_s1 + $0x208] sm:$0xff]  ;;  %584 = vmatprep.subr.mxu1 %v224_v57  ;;  %v91_v62 = vld [vmem:[%s2820_s1 + $0x200] sm:$0xff]  ;;  %514 = vmatpush2.msra.mxu0 %v95_v58  ;;  %v57_v57 = vld [vmem:[%s2820_s1 + $0xf0] sm:$0xff] }
  0x40   :  { %v220_v61 = vld [vmem:[%s2820_s1 + $0x608] sm:$0xff]  ;;  %585 = vmatpush2.msra.mxu1 %v223_v59  ;;  %v219_v0 = vld [vmem:[%s2820_s1 + $0x600] sm:$0xff]  ;;  %515 = vmatprep.subr.mxu0 %v92_v60  ;;  %v54_v59 = vld [vmem:[%s2820_s1 + $0xd8] sm:$0xff] }
  0x41   :  { %v1753_v63 = vld [vmem:[%s2821_s0 + $0x8] sm:$0xff]  ;;  %586 = vmatprep.subr.mxu1 %v220_v61  ;;  %v1764_v2 = vld [vmem:[%s2821_s0] sm:$0xff]  ;;  %516 = vmatpush2.msra.mxu0 %v91_v62  ;;  %v53_v61 = vld [vmem:[%s2820_s1 + $0xd0] sm:$0xff] }
  0x42   :  { %517 = vmatprep.mubr.f32.mxu0 %v1753_v63  ;;  %v344_v4 = vld [vmem:[%s2820_s1 + $0x9e8] sm:$0xff]  ;;  %587 = vmatpush2.msra.mxu1 %v219_v0  ;;  %v343_v6 = vld [vmem:[%s2820_s1 + $0x9e0] sm:$0xff]  ;;  %v50_v0 = vld [vmem:[%s2820_s1 + $0xb8] sm:$0xff] }
  0x43   :  { %v424_v5 = vld [vmem:[%s2820_s1 + $0xc68] sm:$0xff]  ;;  %588 = vmatprep.mubr.f32.mxu1 %v23_v1  ;;  %v423_v7 = vld [vmem:[%s2820_s1 + $0xc60] sm:$0xff]  ;;  %518 = vmatmul.mubr.f32.vlgmr.msra.gmra.mxu0 %v1764_v2 }
  0x44   :  { %589 = vmatmul.mubr.f32.vlgmr.msra.gmra.mxu1 %v22_v3  ;;  %v340_v8 = vld [vmem:[%s2820_s1 + $0x9c8] sm:$0xff]  ;;  %595 = vmatprep.subr.mxu0 %v344_v4  ;;  %v339_v10 = vld [vmem:[%s2820_s1 + $0x9c0] sm:$0xff]  ;;  %v49_v3 = vld [vmem:[%s2820_s1 + $0xb0] sm:$0xff] }
  0x45   :  { %v420_v9 = vld [vmem:[%s2820_s1 + $0xc48] sm:$0xff]  ;;  %690 = vmatprep.subr.mxu1 %v424_v5  ;;  %v419_v11 = vld [vmem:[%s2820_s1 + $0xc40] sm:$0xff]  ;;  %596 = vmatpush1.msra.mxu0 %v343_v6  ;;  %v46_v5 = vld [vmem:[%s2820_s1 + $0x98] sm:$0xff] }
  0x46   :  { %691 = vmatpush1.msra.mxu1 %v423_v7  ;;  %v336_v12 = vld [vmem:[%s2820_s1 + $0x9a8] sm:$0xff]  ;;  %597 = vmatprep.subr.mxu0 %v340_v8  ;;  %v335_v14 = vld [vmem:[%s2820_s1 + $0x9a0] sm:$0xff]  ;;  %v45_v7 = vld [vmem:[%s2820_s1 + $0x90] sm:$0xff] }
  0x47   :  { %v416_v13 = vld [vmem:[%s2820_s1 + $0xc28] sm:$0xff]  ;;  %692 = vmatprep.subr.mxu1 %v420_v9  ;;  %v415_v15 = vld [vmem:[%s2820_s1 + $0xc20] sm:$0xff]  ;;  %598 = vmatpush1.msra.mxu0 %v339_v10  ;;  %v42_v9 = vld [vmem:[%s2820_s1 + $0x78] sm:$0xff] }
  0x48   :  { %693 = vmatpush1.msra.mxu1 %v419_v11  ;;  %v332_v16 = vld [vmem:[%s2820_s1 + $0x988] sm:$0xff]  ;;  %599 = vmatprep.subr.mxu0 %v336_v12  ;;  %v331_v18 = vld [vmem:[%s2820_s1 + $0x980] sm:$0xff]  ;;  %v41_v11 = vld [vmem:[%s2820_s1 + $0x70] sm:$0xff] }
  0x49   :  { %v412_v17 = vld [vmem:[%s2820_s1 + $0xc08] sm:$0xff]  ;;  %694 = vmatprep.subr.mxu1 %v416_v13  ;;  %v411_v19 = vld [vmem:[%s2820_s1 + $0xc00] sm:$0xff]  ;;  %600 = vmatpush1.msra.mxu0 %v335_v14  ;;  %v38_v13 = vld [vmem:[%s2820_s1 + $0x58] sm:$0xff] }
  0x4a   :  { %695 = vmatpush1.msra.mxu1 %v415_v15  ;;  %v328_v20 = vld [vmem:[%s2820_s1 + $0x968] sm:$0xff]  ;;  %601 = vmatprep.subr.mxu0 %v332_v16  ;;  %v327_v23 = vld [vmem:[%s2820_s1 + $0x960] sm:$0xff]  ;;  %v37_v15 = vld [vmem:[%s2820_s1 + $0x50] sm:$0xff] }
  0x4b   :  { %696 = vmatprep.subr.mxu1 %v412_v17  ;;  %602 = vmatpush1.msra.mxu0 %v331_v18  ;;  %v324_v26 = vld [vmem:[%s2820_s1 + $0x948] sm:$0xff]  ;;  %v323_v28 = vld [vmem:[%s2820_s1 + $0x940] sm:$0xff]  ;;  %v34_v17 = vld [vmem:[%s2820_s1 + $0x38] sm:$0xff] }
  0x4c   :  { %697 = vmatpush1.msra.mxu1 %v411_v19  ;;  %730 = vmatprep.mubr.f32.mxu1 %v1338_v25  ;;  %v320_v30 = vld [vmem:[%s2820_s1 + $0x928] sm:$0xff]  ;;  %v319_v32 = vld [vmem:[%s2820_s1 + $0x920] sm:$0xff]  ;;  %v33_v19 = vld [vmem:[%s2820_s1 + $0x30] sm:$0xff] }
  0x4d   :  { %603 = vmatprep.subr.mxu0 %v328_v20  ;;  %1257 = vmatmul.mubr.msk.f32.vlgmr.msra.gmra.mxu1 %vm449_vm0, %v26_v21  ;;  %v316_v34 = vld [vmem:[%s2820_s1 + $0x908] sm:$0xff]  ;;  %v315_v36 = vld [vmem:[%s2820_s1 + $0x900] sm:$0xff]  ;;  %v30_v21 = vld [vmem:[%s2820_s1 + $0x18] sm:$0xff] }
  0x4e   :  { %737 = vmatprep.subr.mxu1 %v90_v22  ;;  %604 = vmatpush1.msra.mxu0 %v327_v23  ;;  %v312_v38 = vld [vmem:[%s2820_s1 + $0x8e8] sm:$0xff]  ;;  %v311_v40 = vld [vmem:[%s2820_s1 + $0x8e0] sm:$0xff]  ;;  %v29_v23 = vld [vmem:[%s2820_s1 + $0x10] sm:$0xff] }
  0x4f   :  { %738 = vmatpush1.msra.mxu1 %v89_v24  ;;  %605 = vmatprep.subr.mxu0 %v324_v26  ;;  %v308_v42 = vld [vmem:[%s2820_s1 + $0x8c8] sm:$0xff]  ;;  %v307_v44 = vld [vmem:[%s2820_s1 + $0x8c0] sm:$0xff]  ;;  %v154_v26 = vld [vmem:[%s2820_s1 + $0x3f8] sm:$0xff] }
  0x50   :  { %739 = vmatprep.subr.mxu1 %v86_v27  ;;  %606 = vmatpush1.msra.mxu0 %v323_v28  ;;  %v304_v46 = vld [vmem:[%s2820_s1 + $0x8a8] sm:$0xff]  ;;  %v303_v48 = vld [vmem:[%s2820_s1 + $0x8a0] sm:$0xff]  ;;  %v153_v28 = vld [vmem:[%s2820_s1 + $0x3f0] sm:$0xff] }
  0x51   :  { %740 = vmatpush1.msra.mxu1 %v85_v29  ;;  %607 = vmatprep.subr.mxu0 %v320_v30  ;;  %v300_v50 = vld [vmem:[%s2820_s1 + $0x888] sm:$0xff]  ;;  %v299_v52 = vld [vmem:[%s2820_s1 + $0x880] sm:$0xff]  ;;  %v150_v30 = vld [vmem:[%s2820_s1 + $0x3d8] sm:$0xff] }
  0x52   :  { %741 = vmatprep.subr.mxu1 %v82_v31  ;;  %608 = vmatpush1.msra.mxu0 %v319_v32  ;;  %v296_v54 = vld [vmem:[%s2820_s1 + $0x868] sm:$0xff]  ;;  %v295_v56 = vld [vmem:[%s2820_s1 + $0x860] sm:$0xff]  ;;  %v149_v32 = vld [vmem:[%s2820_s1 + $0x3d0] sm:$0xff] }
  0x53   :  { %742 = vmatpush1.msra.mxu1 %v81_v33  ;;  %609 = vmatprep.subr.mxu0 %v316_v34  ;;  %v292_v58 = vld [vmem:[%s2820_s1 + $0x848] sm:$0xff]  ;;  %v291_v60 = vld [vmem:[%s2820_s1 + $0x840] sm:$0xff]  ;;  %v146_v34 = vld [vmem:[%s2820_s1 + $0x3b8] sm:$0xff] }
  0x54   :  { %743 = vmatprep.subr.mxu1 %v78_v35  ;;  %610 = vmatpush1.msra.mxu0 %v315_v36  ;;  %v288_v62 = vld [vmem:[%s2820_s1 + $0x828] sm:$0xff]  ;;  %v287_v1 = vld [vmem:[%s2820_s1 + $0x820] sm:$0xff]  ;;  %v145_v36 = vld [vmem:[%s2820_s1 + $0x3b0] sm:$0xff] }
  0x55   :  { %744 = vmatpush1.msra.mxu1 %v77_v37  ;;  %611 = vmatprep.subr.mxu0 %v312_v38  ;;  %v284_v4 = vld [vmem:[%s2820_s1 + $0x808] sm:$0xff]  ;;  %v283_v6 = vld [vmem:[%s2820_s1 + $0x800] sm:$0xff]  ;;  %v142_v38 = vld [vmem:[%s2820_s1 + $0x398] sm:$0xff] }
  0x56   :  { %745 = vmatprep.subr.mxu1 %v74_v39  ;;  %612 = vmatpush1.msra.mxu0 %v311_v40  ;;  %v408_v8 = vld [vmem:[%s2820_s1 + $0xbe8] sm:$0xff]  ;;  %v407_v10 = vld [vmem:[%s2820_s1 + $0xbe0] sm:$0xff]  ;;  %v141_v40 = vld [vmem:[%s2820_s1 + $0x390] sm:$0xff] }
  0x57   :  { %746 = vmatpush1.msra.mxu1 %v73_v41  ;;  %613 = vmatprep.subr.mxu0 %v308_v42  ;;  %v404_v12 = vld [vmem:[%s2820_s1 + $0xbc8] sm:$0xff]  ;;  %v403_v14 = vld [vmem:[%s2820_s1 + $0xbc0] sm:$0xff]  ;;  %v138_v42 = vld [vmem:[%s2820_s1 + $0x378] sm:$0xff] }
  0x58   :  { %747 = vmatprep.subr.mxu1 %v70_v43  ;;  %614 = vmatpush1.msra.mxu0 %v307_v44  ;;  %v400_v16 = vld [vmem:[%s2820_s1 + $0xba8] sm:$0xff]  ;;  %v399_v18 = vld [vmem:[%s2820_s1 + $0xba0] sm:$0xff]  ;;  %v137_v44 = vld [vmem:[%s2820_s1 + $0x370] sm:$0xff] }
  0x59   :  { %748 = vmatpush1.msra.mxu1 %v69_v45  ;;  %615 = vmatprep.subr.mxu0 %v304_v46  ;;  %v396_v20 = vld [vmem:[%s2820_s1 + $0xb88] sm:$0xff]  ;;  %v395_v22 = vld [vmem:[%s2820_s1 + $0xb80] sm:$0xff]  ;;  %v134_v46 = vld [vmem:[%s2820_s1 + $0x358] sm:$0xff] }
  0x5a   :  { %749 = vmatprep.subr.mxu1 %v66_v47  ;;  %616 = vmatpush1.msra.mxu0 %v303_v48  ;;  %v392_v24 = vld [vmem:[%s2820_s1 + $0xb68] sm:$0xff]  ;;  %v391_v27 = vld [vmem:[%s2820_s1 + $0xb60] sm:$0xff]  ;;  %v133_v48 = vld [vmem:[%s2820_s1 + $0x350] sm:$0xff] }
  0x5b   :  { %750 = vmatpush1.msra.mxu1 %v65_v49  ;;  %617 = vmatprep.subr.mxu0 %v300_v50  ;;  %v388_v29 = vld [vmem:[%s2820_s1 + $0xb48] sm:$0xff]  ;;  %v387_v31 = vld [vmem:[%s2820_s1 + $0xb40] sm:$0xff]  ;;  %v130_v50 = vld [vmem:[%s2820_s1 + $0x338] sm:$0xff] }
  0x5c   :  { %751 = vmatprep.subr.mxu1 %v62_v51  ;;  %618 = vmatpush1.msra.mxu0 %v299_v52  ;;  %v384_v33 = vld [vmem:[%s2820_s1 + $0xb28] sm:$0xff]  ;;  %v383_v35 = vld [vmem:[%s2820_s1 + $0xb20] sm:$0xff]  ;;  %v129_v52 = vld [vmem:[%s2820_s1 + $0x330] sm:$0xff] }
  0x5d   :  { %752 = vmatpush1.msra.mxu1 %v61_v53  ;;  %619 = vmatprep.subr.mxu0 %v296_v54  ;;  %v380_v37 = vld [vmem:[%s2820_s1 + $0xb08] sm:$0xff]  ;;  %v379_v39 = vld [vmem:[%s2820_s1 + $0xb00] sm:$0xff]  ;;  %v126_v54 = vld [vmem:[%s2820_s1 + $0x318] sm:$0xff] }
  0x5e   :  { %753 = vmatprep.subr.mxu1 %v58_v55  ;;  %620 = vmatpush1.msra.mxu0 %v295_v56  ;;  %v376_v41 = vld [vmem:[%s2820_s1 + $0xae8] sm:$0xff]  ;;  %v375_v43 = vld [vmem:[%s2820_s1 + $0xae0] sm:$0xff]  ;;  %v125_v56 = vld [vmem:[%s2820_s1 + $0x310] sm:$0xff] }
  0x5f   :  { %754 = vmatpush1.msra.mxu1 %v57_v57  ;;  %621 = vmatprep.subr.mxu0 %v292_v58  ;;  %v372_v45 = vld [vmem:[%s2820_s1 + $0xac8] sm:$0xff]  ;;  %v371_v47 = vld [vmem:[%s2820_s1 + $0xac0] sm:$0xff]  ;;  %v122_v58 = vld [vmem:[%s2820_s1 + $0x2f8] sm:$0xff] }
  0x60   :  { %755 = vmatprep.subr.mxu1 %v54_v59  ;;  %622 = vmatpush1.msra.mxu0 %v291_v60  ;;  %v368_v49 = vld [vmem:[%s2820_s1 + $0xaa8] sm:$0xff]  ;;  %v367_v51 = vld [vmem:[%s2820_s1 + $0xaa0] sm:$0xff]  ;;  %v121_v60 = vld [vmem:[%s2820_s1 + $0x2f0] sm:$0xff] }
  0x61   :  { %756 = vmatpush1.msra.mxu1 %v53_v61  ;;  %623 = vmatprep.subr.mxu0 %v288_v62  ;;  %v364_v53 = vld [vmem:[%s2820_s1 + $0xa88] sm:$0xff]  ;;  %v363_v55 = vld [vmem:[%s2820_s1 + $0xa80] sm:$0xff]  ;;  %v118_v62 = vld [vmem:[%s2820_s1 + $0x2d8] sm:$0xff] }
  0x62   :  { %757 = vmatprep.subr.mxu1 %v50_v0  ;;  %624 = vmatpush1.msra.mxu0 %v287_v1  ;;  %v360_v57 = vld [vmem:[%s2820_s1 + $0xa68] sm:$0xff]  ;;  %v359_v59 = vld [vmem:[%s2820_s1 + $0xa60] sm:$0xff]  ;;  %v117_v1 = vld [vmem:[%s2820_s1 + $0x2d0] sm:$0xff] }
  0x63   :  { %758 = vmatpush1.msra.mxu1 %v49_v3  ;;  %625 = vmatprep.subr.mxu0 %v284_v4  ;;  %v356_v61 = vld [vmem:[%s2820_s1 + $0xa48] sm:$0xff]  ;;  %v355_v0 = vld [vmem:[%s2820_s1 + $0xa40] sm:$0xff]  ;;  %v114_v4 = vld [vmem:[%s2820_s1 + $0x2b8] sm:$0xff] }
  0x64   :  { %759 = vmatprep.subr.mxu1 %v46_v5  ;;  %626 = vmatpush1.msra.mxu0 %v283_v6  ;;  %v352_v3 = vld [vmem:[%s2820_s1 + $0xa28] sm:$0xff]  ;;  %v351_v5 = vld [vmem:[%s2820_s1 + $0xa20] sm:$0xff]  ;;  %v113_v6 = vld [vmem:[%s2820_s1 + $0x2b0] sm:$0xff] }
  0x65   :  { %760 = vmatpush1.msra.mxu1 %v45_v7  ;;  %627 = vmatprep.subr.mxu0 %v408_v8  ;;  %v348_v7 = vld [vmem:[%s2820_s1 + $0xa08] sm:$0xff]  ;;  %v110_v8 = vld [vmem:[%s2820_s1 + $0x298] sm:$0xff] }
  0x66   :  { %761 = vmatprep.subr.mxu1 %v42_v9  ;;  %628 = vmatpush2.msra.mxu0 %v407_v10  ;;  %v347_v9 = vld [vmem:[%s2820_s1 + $0xa00] sm:$0xff]  ;;  %v2160_v10 = vld [vmem:[%s2821_s0 + $0x28] sm:$0xff] }
  0x67   :  { %762 = vmatpush1.msra.mxu1 %v41_v11  ;;  %629 = vmatprep.subr.mxu0 %v404_v12  ;;  %v109_v11 = vld [vmem:[%s2820_s1 + $0x290] sm:$0xff]  ;;  %v2168_v12 = vld [vmem:[%s2821_s0 + $0x20] sm:$0xff] }
  0x68   :  { %763 = vmatprep.subr.mxu1 %v38_v13  ;;  %630 = vmatpush2.msra.mxu0 %v403_v14  ;;  %v106_v13 = vld [vmem:[%s2820_s1 + $0x278] sm:$0xff] }
  0x69   :  { %764 = vmatpush1.msra.mxu1 %v37_v15  ;;  %631 = vmatprep.subr.mxu0 %v400_v16  ;;  %v218_v14 = vld [vmem:[%s2820_s1 + $0x5f8] sm:$0xff]  ;;  %v105_v15 = vld [vmem:[%s2820_s1 + $0x270] sm:$0xff] }
  0x6a   :  { %765 = vmatprep.subr.mxu1 %v34_v17  ;;  %632 = vmatpush2.msra.mxu0 %v399_v18  ;;  %v217_v16 = vld [vmem:[%s2820_s1 + $0x5f0] sm:$0xff]  ;;  %v102_v17 = vld [vmem:[%s2820_s1 + $0x258] sm:$0xff] }
  0x6b   :  { %766 = vmatpush1.msra.mxu1 %v33_v19  ;;  %633 = vmatprep.subr.mxu0 %v396_v20  ;;  %v214_v18 = vld [vmem:[%s2820_s1 + $0x5d8] sm:$0xff]  ;;  %v101_v19 = vld [vmem:[%s2820_s1 + $0x250] sm:$0xff] }
  0x6c   :  { %767 = vmatprep.subr.mxu1 %v30_v21  ;;  %634 = vmatpush2.msra.mxu0 %v395_v22  ;;  %v213_v20 = vld [vmem:[%s2820_s1 + $0x5d0] sm:$0xff]  ;;  %v98_v21 = vld [vmem:[%s2820_s1 + $0x238] sm:$0xff] }
  0x6d   :  { %768 = vmatpush1.msra.mxu1 %v29_v23  ;;  %635 = vmatprep.subr.mxu0 %v392_v24  ;;  %v210_v22 = vld [vmem:[%s2820_s1 + $0x5b8] sm:$0xff]  ;;  %v97_v23 = vld [vmem:[%s2820_s1 + $0x230] sm:$0xff] }
  0x6e   :  { %769 = vmatprep.subr.mxu1 %v154_v26  ;;  %636 = vmatpush2.msra.mxu0 %v391_v27  ;;  %v209_v24 = vld [vmem:[%s2820_s1 + $0x5b0] sm:$0xff]  ;;  %v94_v26 = vld [vmem:[%s2820_s1 + $0x218] sm:$0xff] }
  0x6f   :  { %770 = vmatpush2.msra.mxu1 %v153_v28  ;;  %637 = vmatprep.subr.mxu0 %v388_v29  ;;  %v206_v27 = vld [vmem:[%s2820_s1 + $0x598] sm:$0xff]  ;;  %v93_v28 = vld [vmem:[%s2820_s1 + $0x210] sm:$0xff] }
  0x70   :  { %771 = vmatprep.subr.mxu1 %v150_v30  ;;  %638 = vmatpush2.msra.mxu0 %v387_v31  ;;  %v205_v29 = vld [vmem:[%s2820_s1 + $0x590] sm:$0xff]  ;;  %v202_v30 = vld [vmem:[%s2820_s1 + $0x578] sm:$0xff] }
  0x71   :  { %772 = vmatpush2.msra.mxu1 %v149_v32  ;;  %639 = vmatprep.subr.mxu0 %v384_v33  ;;  %v346_v31 = vld [vmem:[%s2820_s1 + $0x9f8] sm:$0xff]  ;;  %v201_v32 = vld [vmem:[%s2820_s1 + $0x570] sm:$0xff] }
  0x72   :  { %773 = vmatprep.subr.mxu1 %v146_v34  ;;  %640 = vmatpush2.msra.mxu0 %v383_v35  ;;  %v345_v33 = vld [vmem:[%s2820_s1 + $0x9f0] sm:$0xff]  ;;  %v198_v34 = vld [vmem:[%s2820_s1 + $0x558] sm:$0xff] }
  0x73   :  { %774 = vmatpush2.msra.mxu1 %v145_v36  ;;  %641 = vmatprep.subr.mxu0 %v380_v37  ;;  %v342_v35 = vld [vmem:[%s2820_s1 + $0x9d8] sm:$0xff]  ;;  %v341_v36 = vld [vmem:[%s2820_s1 + $0x9d0] sm:$0xff] }
  0x74   :  { %775 = vmatprep.subr.mxu1 %v142_v38  ;;  %642 = vmatpush2.msra.mxu0 %v379_v39  ;;  %v338_v37 = vld [vmem:[%s2820_s1 + $0x9b8] sm:$0xff]  ;;  %v193_v38 = vld [vmem:[%s2820_s1 + $0x530] sm:$0xff] }
  0x75   :  { %776 = vmatpush2.msra.mxu1 %v141_v40  ;;  %643 = vmatprep.subr.mxu0 %v376_v41  ;;  %v337_v39 = vld [vmem:[%s2820_s1 + $0x9b0] sm:$0xff]  ;;  %v190_v40 = vld [vmem:[%s2820_s1 + $0x518] sm:$0xff] }
  0x76   :  { %777 = vmatprep.subr.mxu1 %v138_v42  ;;  %644 = vmatpush2.msra.mxu0 %v375_v43  ;;  %v334_v41 = vld [vmem:[%s2820_s1 + $0x998] sm:$0xff]  ;;  %v189_v42 = vld [vmem:[%s2820_s1 + $0x510] sm:$0xff] }
  0x77   :  { %778 = vmatpush2.msra.mxu1 %v137_v44  ;;  %645 = vmatprep.subr.mxu0 %v372_v45  ;;  %v333_v43 = vld [vmem:[%s2820_s1 + $0x990] sm:$0xff]  ;;  %v186_v44 = vld [vmem:[%s2820_s1 + $0x4f8] sm:$0xff] }
  0x78   :  { %779 = vmatprep.subr.mxu1 %v134_v46  ;;  %646 = vmatpush2.msra.mxu0 %v371_v47  ;;  %v330_v45 = vld [vmem:[%s2820_s1 + $0x978] sm:$0xff]  ;;  %v185_v46 = vld [vmem:[%s2820_s1 + $0x4f0] sm:$0xff] }
  0x79   :  { %780 = vmatpush2.msra.mxu1 %v133_v48  ;;  %647 = vmatprep.subr.mxu0 %v368_v49  ;;  %v329_v47 = vld [vmem:[%s2820_s1 + $0x970] sm:$0xff]  ;;  %v182_v48 = vld [vmem:[%s2820_s1 + $0x4d8] sm:$0xff] }
  0x7a   :  { %781 = vmatprep.subr.mxu1 %v130_v50  ;;  %648 = vmatpush2.msra.mxu0 %v367_v51  ;;  %v326_v49 = vld [vmem:[%s2820_s1 + $0x958] sm:$0xff]  ;;  %v181_v50 = vld [vmem:[%s2820_s1 + $0x4d0] sm:$0xff] }
  0x7b   :  { %782 = vmatpush2.msra.mxu1 %v129_v52  ;;  %649 = vmatprep.subr.mxu0 %v364_v53  ;;  %v325_v51 = vld [vmem:[%s2820_s1 + $0x950] sm:$0xff]  ;;  %v178_v52 = vld [vmem:[%s2820_s1 + $0x4b8] sm:$0xff] }
  0x7c   :  { %783 = vmatprep.subr.mxu1 %v126_v54  ;;  %650 = vmatpush2.msra.mxu0 %v363_v55  ;;  %v322_v53 = vld [vmem:[%s2820_s1 + $0x938] sm:$0xff]  ;;  %v177_v54 = vld [vmem:[%s2820_s1 + $0x4b0] sm:$0xff] }
  0x7d   :  { %784 = vmatpush2.msra.mxu1 %v125_v56  ;;  %651 = vmatprep.subr.mxu0 %v360_v57  ;;  %v321_v55 = vld [vmem:[%s2820_s1 + $0x930] sm:$0xff]  ;;  %v174_v56 = vld [vmem:[%s2820_s1 + $0x498] sm:$0xff] }
  0x7e   :  { %785 = vmatprep.subr.mxu1 %v122_v58  ;;  %652 = vmatpush2.msra.mxu0 %v359_v59  ;;  %v318_v57 = vld [vmem:[%s2820_s1 + $0x918] sm:$0xff]  ;;  %v173_v58 = vld [vmem:[%s2820_s1 + $0x490] sm:$0xff] }
  0x7f   :  { %786 = vmatpush2.msra.mxu1 %v121_v60  ;;  %653 = vmatprep.subr.mxu0 %v356_v61  ;;  %v317_v59 = vld [vmem:[%s2820_s1 + $0x910] sm:$0xff]  ;;  %v170_v60 = vld [vmem:[%s2820_s1 + $0x478] sm:$0xff] }
  0x80   :  { %787 = vmatprep.subr.mxu1 %v118_v62  ;;  %654 = vmatpush2.msra.mxu0 %v355_v0  ;;  %v314_v61 = vld [vmem:[%s2820_s1 + $0x8f8] sm:$0xff]  ;;  %v169_v62 = vld [vmem:[%s2820_s1 + $0x470] sm:$0xff] }
  0x81   :  { %788 = vmatpush2.msra.mxu1 %v117_v1  ;;  %655 = vmatprep.subr.mxu0 %v352_v3  ;;  %v313_v0 = vld [vmem:[%s2820_s1 + $0x8f0] sm:$0xff]  ;;  %v166_v1 = vld [vmem:[%s2820_s1 + $0x458] sm:$0xff] }
  0x82   :  { %789 = vmatprep.subr.mxu1 %v114_v4  ;;  %656 = vmatpush2.msra.mxu0 %v351_v5  ;;  %v310_v3 = vld [vmem:[%s2820_s1 + $0x8d8] sm:$0xff]  ;;  %v165_v4 = vld [vmem:[%s2820_s1 + $0x450] sm:$0xff] }
  0x83   :  { %790 = vmatpush2.msra.mxu1 %v113_v6  ;;  %657 = vmatprep.subr.mxu0 %v348_v7  ;;  %v309_v5 = vld [vmem:[%s2820_s1 + $0x8d0] sm:$0xff]  ;;  %v162_v6 = vld [vmem:[%s2820_s1 + $0x438] sm:$0xff] }
  0x84   :  { %791 = vmatprep.subr.mxu1 %v110_v8  ;;  %658 = vmatpush2.msra.mxu0 %v347_v9  ;;  %v306_v7 = vld [vmem:[%s2820_s1 + $0x8b8] sm:$0xff]  ;;  %v161_v8 = vld [vmem:[%s2820_s1 + $0x430] sm:$0xff] }
  0x85   :  { %659 = vmatprep.mubr.f32.mxu0 %v2160_v10  ;;  %792 = vmatpush2.msra.mxu1 %v109_v11  ;;  %v305_v9 = vld [vmem:[%s2820_s1 + $0x8b0] sm:$0xff]  ;;  %v158_v11 = vld [vmem:[%s2820_s1 + $0x418] sm:$0xff] }
  0x86   :  { %660 = vmatmul.mubr.f32.vlgmr.msra.gmra.mxu0 %v2168_v12  ;;  %793 = vmatprep.subr.mxu1 %v106_v13  ;;  %v302_v13 = vld [vmem:[%s2820_s1 + $0x898] sm:$0xff] }
  0x87   :  { %808 = vmatprep.subr.mxu0 %v218_v14  ;;  %794 = vmatpush2.msra.mxu1 %v105_v15  ;;  %v157_v14 = vld [vmem:[%s2820_s1 + $0x410] sm:$0xff] }
  0x88   :  { %809 = vmatpush1.msra.mxu0 %v217_v16  ;;  %795 = vmatprep.subr.mxu1 %v102_v17  ;;  %v301_v15 = vld [vmem:[%s2820_s1 + $0x890] sm:$0xff]  ;;  %v282_v16 = vld [vmem:[%s2820_s1 + $0x7f8] sm:$0xff] }
  0x89   :  { %810 = vmatprep.subr.mxu0 %v214_v18  ;;  %796 = vmatpush2.msra.mxu1 %v101_v19  ;;  %v298_v17 = vld [vmem:[%s2820_s1 + $0x878] sm:$0xff]  ;;  %v281_v18 = vld [vmem:[%s2820_s1 + $0x7f0] sm:$0xff] }
  0x8a   :  { %811 = vmatpush1.msra.mxu0 %v213_v20  ;;  %797 = vmatprep.subr.mxu1 %v98_v21  ;;  %v297_v19 = vld [vmem:[%s2820_s1 + $0x870] sm:$0xff]  ;;  %v278_v20 = vld [vmem:[%s2820_s1 + $0x7d8] sm:$0xff] }
  0x8b   :  { %812 = vmatprep.subr.mxu0 %v210_v22  ;;  %798 = vmatpush2.msra.mxu1 %v97_v23  ;;  %v294_v21 = vld [vmem:[%s2820_s1 + $0x858] sm:$0xff]  ;;  %v277_v22 = vld [vmem:[%s2820_s1 + $0x7d0] sm:$0xff] }
  0x8c   :  { %813 = vmatpush1.msra.mxu0 %v209_v24  ;;  %799 = vmatprep.subr.mxu1 %v94_v26  ;;  %v293_v23 = vld [vmem:[%s2820_s1 + $0x850] sm:$0xff]  ;;  %v274_v24 = vld [vmem:[%s2820_s1 + $0x7b8] sm:$0xff] }
  0x8d   :  { %814 = vmatprep.subr.mxu0 %v206_v27  ;;  %800 = vmatpush2.msra.mxu1 %v93_v28  ;;  %v290_v26 = vld [vmem:[%s2820_s1 + $0x838] sm:$0xff]  ;;  %v273_v27 = vld [vmem:[%s2820_s1 + $0x7b0] sm:$0xff] }
  0x8e   :  { %801 = vmatprep.mubr.f32.mxu1 %v1753_v63  ;;  %815 = vmatpush1.msra.mxu0 %v205_v29  ;;  %v197_v63 = vld [vmem:[%s2820_s1 + $0x550] sm:$0xff]  ;;  %v270_v29 = vld [vmem:[%s2820_s1 + $0x798] sm:$0xff] }
  0x8f   :  { %802 = vmatmul.mubr.f32.vlgmr.msra.gmra.mxu1 %v1764_v2  ;;  %816 = vmatprep.subr.mxu0 %v202_v30  ;;  %v194_v2 = vld [vmem:[%s2820_s1 + $0x538] sm:$0xff]  ;;  %v289_v28 = vld [vmem:[%s2820_s1 + $0x830] sm:$0xff] }
  0x90   :  { %879 = vmatprep.subr.mxu1 %v346_v31  ;;  %817 = vmatpush1.msra.mxu0 %v201_v32  ;;  %v286_v30 = vld [vmem:[%s2820_s1 + $0x818] sm:$0xff]  ;;  %v269_v31 = vld [vmem:[%s2820_s1 + $0x790] sm:$0xff] }
  0x91   :  { %880 = vmatpush1.msra.mxu1 %v345_v33  ;;  %818 = vmatprep.subr.mxu0 %v198_v34  ;;  %v285_v32 = vld [vmem:[%s2820_s1 + $0x810] sm:$0xff]  ;;  %v266_v33 = vld [vmem:[%s2820_s1 + $0x778] sm:$0xff] }
  0x92   :  { %881 = vmatprep.subr.mxu1 %v342_v35  ;;  %819 = vmatpush1.msra.mxu0 %v197_v63  ;;  %v410_v34 = vld [vmem:[%s2820_s1 + $0xbf8] sm:$0xff]  ;;  %v265_v35 = vld [vmem:[%s2820_s1 + $0x770] sm:$0xff] }
  0x93   :  { %882 = vmatpush1.msra.mxu1 %v341_v36  ;;  %820 = vmatprep.subr.mxu0 %v194_v2  ;;  %v409_v63 = vld [vmem:[%s2820_s1 + $0xbf0] sm:$0xff]  ;;  %v262_v36 = vld [vmem:[%s2820_s1 + $0x758] sm:$0xff] }
  0x94   :  { %883 = vmatprep.subr.mxu1 %v338_v37  ;;  %821 = vmatpush1.msra.mxu0 %v193_v38  ;;  %v406_v2 = vld [vmem:[%s2820_s1 + $0xbd8] sm:$0xff]  ;;  %v261_v37 = vld [vmem:[%s2820_s1 + $0x750] sm:$0xff] }
  0x95   :  { %884 = vmatpush1.msra.mxu1 %v337_v39  ;;  %822 = vmatprep.subr.mxu0 %v190_v40  ;;  %v405_v38 = vld [vmem:[%s2820_s1 + $0xbd0] sm:$0xff]  ;;  %v258_v39 = vld [vmem:[%s2820_s1 + $0x738] sm:$0xff] }
  0x96   :  { %885 = vmatprep.subr.mxu1 %v334_v41  ;;  %823 = vmatpush1.msra.mxu0 %v189_v42  ;;  %v402_v40 = vld [vmem:[%s2820_s1 + $0xbb8] sm:$0xff]  ;;  %v257_v41 = vld [vmem:[%s2820_s1 + $0x730] sm:$0xff] }
  0x97   :  { %886 = vmatpush1.msra.mxu1 %v333_v43  ;;  %824 = vmatprep.subr.mxu0 %v186_v44  ;;  %v401_v42 = vld [vmem:[%s2820_s1 + $0xbb0] sm:$0xff]  ;;  %v254_v43 = vld [vmem:[%s2820_s1 + $0x718] sm:$0xff] }
  0x98   :  { %887 = vmatprep.subr.mxu1 %v330_v45  ;;  %825 = vmatpush1.msra.mxu0 %v185_v46  ;;  %v398_v44 = vld [vmem:[%s2820_s1 + $0xb98] sm:$0xff]  ;;  %v253_v45 = vld [vmem:[%s2820_s1 + $0x710] sm:$0xff] }
  0x99   :  { %888 = vmatpush1.msra.mxu1 %v329_v47  ;;  %826 = vmatprep.subr.mxu0 %v182_v48  ;;  %v397_v46 = vld [vmem:[%s2820_s1 + $0xb90] sm:$0xff]  ;;  %v250_v47 = vld [vmem:[%s2820_s1 + $0x6f8] sm:$0xff] }
  0x9a   :  { %889 = vmatprep.subr.mxu1 %v326_v49  ;;  %827 = vmatpush1.msra.mxu0 %v181_v50  ;;  %v394_v48 = vld [vmem:[%s2820_s1 + $0xb78] sm:$0xff]  ;;  %v249_v49 = vld [vmem:[%s2820_s1 + $0x6f0] sm:$0xff] }
  0x9b   :  { %890 = vmatpush1.msra.mxu1 %v325_v51  ;;  %828 = vmatprep.subr.mxu0 %v178_v52  ;;  %v393_v50 = vld [vmem:[%s2820_s1 + $0xb70] sm:$0xff]  ;;  %v246_v51 = vld [vmem:[%s2820_s1 + $0x6d8] sm:$0xff] }
  0x9c   :  { %891 = vmatprep.subr.mxu1 %v322_v53  ;;  %829 = vmatpush1.msra.mxu0 %v177_v54  ;;  %v390_v52 = vld [vmem:[%s2820_s1 + $0xb58] sm:$0xff]  ;;  %v245_v53 = vld [vmem:[%s2820_s1 + $0x6d0] sm:$0xff] }
  0x9d   :  { %892 = vmatpush1.msra.mxu1 %v321_v55  ;;  %830 = vmatprep.subr.mxu0 %v174_v56  ;;  %v389_v54 = vld [vmem:[%s2820_s1 + $0xb50] sm:$0xff]  ;;  %v242_v55 = vld [vmem:[%s2820_s1 + $0x6b8] sm:$0xff] }
  0x9e   :  { %893 = vmatprep.subr.mxu1 %v318_v57  ;;  %831 = vmatpush1.msra.mxu0 %v173_v58  ;;  %v386_v56 = vld [vmem:[%s2820_s1 + $0xb38] sm:$0xff]  ;;  %v241_v57 = vld [vmem:[%s2820_s1 + $0x6b0] sm:$0xff] }
  0x9f   :  { %894 = vmatpush1.msra.mxu1 %v317_v59  ;;  %832 = vmatprep.subr.mxu0 %v170_v60  ;;  %v385_v58 = vld [vmem:[%s2820_s1 + $0xb30] sm:$0xff]  ;;  %v238_v59 = vld [vmem:[%s2820_s1 + $0x698] sm:$0xff] }
  0xa0   :  { %895 = vmatprep.subr.mxu1 %v314_v61  ;;  %833 = vmatpush1.msra.mxu0 %v169_v62  ;;  %v382_v60 = vld [vmem:[%s2820_s1 + $0xb18] sm:$0xff]  ;;  %v237_v61 = vld [vmem:[%s2820_s1 + $0x690] sm:$0xff] }
  0xa1   :  { %896 = vmatpush1.msra.mxu1 %v313_v0  ;;  %834 = vmatprep.subr.mxu0 %v166_v1  ;;  %v381_v62 = vld [vmem:[%s2820_s1 + $0xb10] sm:$0xff]  ;;  %v234_v0 = vld [vmem:[%s2820_s1 + $0x678] sm:$0xff] }
  0xa2   :  { %897 = vmatprep.subr.mxu1 %v310_v3  ;;  %835 = vmatpush1.msra.mxu0 %v165_v4  ;;  %v378_v1 = vld [vmem:[%s2820_s1 + $0xaf8] sm:$0xff]  ;;  %v233_v3 = vld [vmem:[%s2820_s1 + $0x670] sm:$0xff] }
  0xa3   :  { %898 = vmatpush1.msra.mxu1 %v309_v5  ;;  %836 = vmatprep.subr.mxu0 %v162_v6  ;;  %v377_v4 = vld [vmem:[%s2820_s1 + $0xaf0] sm:$0xff]  ;;  %v230_v5 = vld [vmem:[%s2820_s1 + $0x658] sm:$0xff] }
  0xa4   :  { %899 = vmatprep.subr.mxu1 %v306_v7  ;;  %837 = vmatpush1.msra.mxu0 %v161_v8  ;;  %v374_v6 = vld [vmem:[%s2820_s1 + $0xad8] sm:$0xff]  ;;  %v229_v7 = vld [vmem:[%s2820_s1 + $0x650] sm:$0xff] }
  0xa5   :  { %900 = vmatpush1.msra.mxu1 %v305_v9  ;;  %838 = vmatprep.subr.mxu0 %v158_v11  ;;  %v373_v8 = vld [vmem:[%s2820_s1 + $0xad0] sm:$0xff]  ;;  %v226_v9 = vld [vmem:[%s2820_s1 + $0x638] sm:$0xff] }
  0xa6   :  { %901 = vmatprep.subr.mxu1 %v302_v13  ;;  %839 = vmatpush1.msra.mxu0 %v157_v14  ;;  %v370_v11 = vld [vmem:[%s2820_s1 + $0xab8] sm:$0xff]  ;;  %v225_v13 = vld [vmem:[%s2820_s1 + $0x630] sm:$0xff] }
  0xa7   :  { %902 = vmatpush1.msra.mxu1 %v301_v15  ;;  %840 = vmatprep.subr.mxu0 %v282_v16  ;;  %v369_v14 = vld [vmem:[%s2820_s1 + $0xab0] sm:$0xff]  ;;  %v222_v15 = vld [vmem:[%s2820_s1 + $0x618] sm:$0xff] }
  0xa8   :  { %903 = vmatprep.subr.mxu1 %v298_v17  ;;  %841 = vmatpush2.msra.mxu0 %v281_v18  ;;  %v366_v16 = vld [vmem:[%s2820_s1 + $0xa98] sm:$0xff]  ;;  %v221_v17 = vld [vmem:[%s2820_s1 + $0x610] sm:$0xff] }
  0xa9   :  { %904 = vmatpush1.msra.mxu1 %v297_v19  ;;  %842 = vmatprep.subr.mxu0 %v278_v20  ;;  %v365_v18 = vld [vmem:[%s2820_s1 + $0xa90] sm:$0xff]  ;;  %v362_v19 = vld [vmem:[%s2820_s1 + $0xa78] sm:$0xff] }
  0xaa   :  { %905 = vmatprep.subr.mxu1 %v294_v21  ;;  %843 = vmatpush2.msra.mxu0 %v277_v22  ;;  %v426_v20 = vld [vmem:[%s2820_s1 + $0xc78] sm:$0xff]  ;;  %v361_v22 = vld [vmem:[%s2820_s1 + $0xa70] sm:$0xff] }
  0xab   :  { %906 = vmatpush1.msra.mxu1 %v293_v23  ;;  %844 = vmatprep.subr.mxu0 %v274_v24  ;;  %v1335_v21 = vld [vmem:[%s2821_s0 + $0x18] sm:$0xff]  ;;  %v425_v23 = vld [vmem:[%s2820_s1 + $0xc70] sm:$0xff] }
  0xac   :  { %907 = vmatprep.subr.mxu1 %v290_v26  ;;  %845 = vmatpush2.msra.mxu0 %v273_v27  ;;  %v1336_v24 = vld [vmem:[%s2821_s0 + $0x10] sm:$0xff]  ;;  %v358_v26 = vld [vmem:[%s2820_s1 + $0xa58] sm:$0xff] }
  0xad   :  { %908 = vmatpush1.msra.mxu1 %v289_v28  ;;  %846 = vmatprep.subr.mxu0 %v270_v29  ;;  %v422_v27 = vld [vmem:[%s2820_s1 + $0xc58] sm:$0xff]  ;;  %v357_v28 = vld [vmem:[%s2820_s1 + $0xa50] sm:$0xff] }
  0xae   :  { %909 = vmatprep.subr.mxu1 %v286_v30  ;;  %847 = vmatpush2.msra.mxu0 %v269_v31  ;;  %v421_v29 = vld [vmem:[%s2820_s1 + $0xc50] sm:$0xff]  ;;  %v354_v30 = vld [vmem:[%s2820_s1 + $0xa38] sm:$0xff] }
  0xaf   :  { %910 = vmatpush1.msra.mxu1 %v285_v32  ;;  %848 = vmatprep.subr.mxu0 %v266_v33  ;;  %v418_v31 = vld [vmem:[%s2820_s1 + $0xc38] sm:$0xff]  ;;  %v353_v32 = vld [vmem:[%s2820_s1 + $0xa30] sm:$0xff] }
  0xb0   :  { %911 = vmatprep.subr.mxu1 %v410_v34  ;;  %849 = vmatpush2.msra.mxu0 %v265_v35  ;;  %v417_v33 = vld [vmem:[%s2820_s1 + $0xc30] sm:$0xff]  ;;  %v350_v34 = vld [vmem:[%s2820_s1 + $0xa18] sm:$0xff] }
  0xb1   :  { %912 = vmatpush2.msra.mxu1 %v409_v63  ;;  %850 = vmatprep.subr.mxu0 %v262_v36  ;;  %v414_v35 = vld [vmem:[%s2820_s1 + $0xc18] sm:$0xff]  ;;  %v349_v63 = vld [vmem:[%s2820_s1 + $0xa10] sm:$0xff] }
  0xb2   :  { %913 = vmatprep.subr.mxu1 %v406_v2  ;;  %851 = vmatpush2.msra.mxu0 %v261_v37  ;;  %v413_v36 = vld [vmem:[%s2820_s1 + $0xc10] sm:$0xff]  ;;  %v1056_v2 = vld [vmem:[%s2822_s3 + $0xf8] sm:$0xff] }
  0xb3   :  { %914 = vmatpush2.msra.mxu1 %v405_v38  ;;  %852 = vmatprep.subr.mxu0 %v258_v39  ;;  %v1040_v37 = vld [vmem:[%s2822_s3 + $0x78] sm:$0xff]  ;;  %v1055_v38 = vld [vmem:[%s2822_s3 + $0xf0] sm:$0xff] }
  0xb4   :  { %915 = vmatprep.subr.mxu1 %v402_v40  ;;  %853 = vmatpush2.msra.mxu0 %v257_v41  ;;  %v1072_v39 = vld [vmem:[%s2822_s3 + $0x178] sm:$0xff]  ;;  %v1087_v40 = vld [vmem:[%s2822_s3 + $0x1f0] sm:$0xff] }
  0xb5   :  { %916 = vmatpush2.msra.mxu1 %v401_v42  ;;  %854 = vmatprep.subr.mxu0 %v254_v43  ;;  %v1071_v41 = vld [vmem:[%s2822_s3 + $0x170] sm:$0xff]  ;;  %v1054_v42 = vld [vmem:[%s2822_s3 + $0xe8] sm:$0xff] }
  0xb6   :  { %917 = vmatprep.subr.mxu1 %v398_v44  ;;  %855 = vmatpush2.msra.mxu0 %v253_v45  ;;  %v1086_v43 = vld [vmem:[%s2822_s3 + $0x1e8] sm:$0xff] }
  0xb7   :  { %918 = vmatpush2.msra.mxu1 %v397_v46  ;;  %856 = vmatprep.subr.mxu0 %v250_v47  ;;  %v1038_v44 = vld [vmem:[%s2822_s3 + $0x68] sm:$0xff]  ;;  %v1053_v46 = vld [vmem:[%s2822_s3 + $0xe0] sm:$0xff] }
  0xb8   :  { %919 = vmatprep.subr.mxu1 %v394_v48  ;;  %857 = vmatpush2.msra.mxu0 %v249_v49  ;;  %v1070_v45 = vld [vmem:[%s2822_s3 + $0x168] sm:$0xff]  ;;  %v1085_v47 = vld [vmem:[%s2822_s3 + $0x1e0] sm:$0xff] }
  0xb9   :  { %920 = vmatpush2.msra.mxu1 %v393_v50  ;;  %858 = vmatprep.subr.mxu0 %v246_v51  ;;  %v1037_v48 = vld [vmem:[%s2822_s3 + $0x60] sm:$0xff]  ;;  %v1052_v50 = vld [vmem:[%s2822_s3 + $0xd8] sm:$0xff] }
  0xba   :  { %921 = vmatprep.subr.mxu1 %v390_v52  ;;  %859 = vmatpush2.msra.mxu0 %v245_v53  ;;  %v1069_v49 = vld [vmem:[%s2822_s3 + $0x160] sm:$0xff]  ;;  %v1084_v51 = vld [vmem:[%s2822_s3 + $0x1d8] sm:$0xff] }
  0xbb   :  { %922 = vmatpush2.msra.mxu1 %v389_v54  ;;  %860 = vmatprep.subr.mxu0 %v242_v55  ;;  %v1036_v52 = vld [vmem:[%s2822_s3 + $0x58] sm:$0xff]  ;;  %v1051_v54 = vld [vmem:[%s2822_s3 + $0xd0] sm:$0xff] }
  0xbc   :  { %923 = vmatprep.subr.mxu1 %v386_v56  ;;  %861 = vmatpush2.msra.mxu0 %v241_v57  ;;  %v1068_v53 = vld [vmem:[%s2822_s3 + $0x158] sm:$0xff]  ;;  %v1083_v55 = vld [vmem:[%s2822_s3 + $0x1d0] sm:$0xff] }
  0xbd   :  { %924 = vmatpush2.msra.mxu1 %v385_v58  ;;  %862 = vmatprep.subr.mxu0 %v238_v59  ;;  %v1035_v56 = vld [vmem:[%s2822_s3 + $0x50] sm:$0xff]  ;;  %v1050_v58 = vld [vmem:[%s2822_s3 + $0xc8] sm:$0xff] }
  0xbe   :  { %925 = vmatprep.subr.mxu1 %v382_v60  ;;  %863 = vmatpush2.msra.mxu0 %v237_v61  ;;  %v1067_v57 = vld [vmem:[%s2822_s3 + $0x150] sm:$0xff]  ;;  %v1082_v59 = vld [vmem:[%s2822_s3 + $0x1c8] sm:$0xff] }
  0xbf   :  { %926 = vmatpush2.msra.mxu1 %v381_v62  ;;  %864 = vmatprep.subr.mxu0 %v234_v0  ;;  %v1034_v60 = vld [vmem:[%s2822_s3 + $0x48] sm:$0xff]  ;;  %v1049_v62 = vld [vmem:[%s2822_s3 + $0xc0] sm:$0xff] }
  0xc0   :  { %927 = vmatprep.subr.mxu1 %v378_v1  ;;  %865 = vmatpush2.msra.mxu0 %v233_v3  ;;  %v1066_v61 = vld [vmem:[%s2822_s3 + $0x148] sm:$0xff]  ;;  %v1033_v0 = vld [vmem:[%s2822_s3 + $0x40] sm:$0xff]  ;;  %v1048_v1 = vld [vmem:[%s2822_s3 + $0xb8] sm:$0xff] }
  0xc1   :  { %928 = vmatpush2.msra.mxu1 %v377_v4  ;;  %866 = vmatprep.subr.mxu0 %v230_v5  ;;  %v1032_v3 = vld [vmem:[%s2822_s3 + $0x38] sm:$0xff]  ;;  %v1047_v4 = vld [vmem:[%s2822_s3 + $0xb0] sm:$0xff] }
  0xc2   :  { %929 = vmatprep.subr.mxu1 %v374_v6  ;;  %867 = vmatpush2.msra.mxu0 %v229_v7  ;;  %v1031_v5 = vld [vmem:[%s2822_s3 + $0x30] sm:$0xff]  ;;  %v1046_v6 = vld [vmem:[%s2822_s3 + $0xa8] sm:$0xff] }
  0xc3   :  { %930 = vmatpush2.msra.mxu1 %v373_v8  ;;  %868 = vmatprep.subr.mxu0 %v226_v9  ;;  %v1030_v7 = vld [vmem:[%s2822_s3 + $0x28] sm:$0xff]  ;;  %v1045_v8 = vld [vmem:[%s2822_s3 + $0xa0] sm:$0xff] }
  0xc4   :  { %931 = vmatprep.subr.mxu1 %v370_v11  ;;  %869 = vmatpush2.msra.mxu0 %v225_v13  ;;  %v1029_v9 = vld [vmem:[%s2822_s3 + $0x20] sm:$0xff]  ;;  %v1044_v11 = vld [vmem:[%s2822_s3 + $0x98] sm:$0xff] }
  0xc5   :  { %932 = vmatpush2.msra.mxu1 %v369_v14  ;;  %870 = vmatprep.subr.mxu0 %v222_v15  ;;  %v1028_v13 = vld [vmem:[%s2822_s3 + $0x18] sm:$0xff]  ;;  %v1043_v14 = vld [vmem:[%s2822_s3 + $0x90] sm:$0xff] }
  0xc6   :  { %933 = vmatprep.subr.mxu1 %v366_v16  ;;  %871 = vmatpush2.msra.mxu0 %v221_v17  ;;  %v1027_v15 = vld [vmem:[%s2822_s3 + $0x10] sm:$0xff]  ;;  %v1042_v16 = vld [vmem:[%s2822_s3 + $0x88] sm:$0xff] }
  0xc7   :  { %872 = vmatprep.mubr.f32.mxu0 %v1335_v21  ;;  %934 = vmatpush2.msra.mxu1 %v365_v18  ;;  %v1026_v17 = vld [vmem:[%s2822_s3 + $0x8] sm:$0xff]  ;;  %v1041_v18 = vld [vmem:[%s2822_s3 + $0x80] sm:$0xff] }
  0xc8   :  { %873 = vmatmul.mubr.f32.vlgmr.msra.gmra.mxu0 %v1336_v24  ;;  %935 = vmatprep.subr.mxu1 %v362_v19  ;;  %v1025_v19 = vld [vmem:[%s2822_s3] sm:$0xff]  ;;  %v1079_v24 = vld [vmem:[%s2822_s3 + $0x1b0] sm:$0xff] }
  0xc9   :  { %974 = vmatprep.subr.mxu0 %v426_v20  ;;  %936 = vmatpush2.msra.mxu1 %v361_v22  ;;  %v1081_v20 = vld [vmem:[%s2822_s3 + $0x1c0] sm:$0xff]  ;;  %v1080_v22 = vld [vmem:[%s2822_s3 + $0x1b8] sm:$0xff] }
  0xca   :  { %975 = vmatpush1.msra.mxu0 %v425_v23  ;;  %937 = vmatprep.subr.mxu1 %v358_v26  ;;  %v1065_v21 = vld [vmem:[%s2822_s3 + $0x140] sm:$0xff]  ;;  %v1064_v23 = vld [vmem:[%s2822_s3 + $0x138] sm:$0xff]  ;;  %v1063_v26 = vld [vmem:[%s2822_s3 + $0x130] sm:$0xff] }
  0xcb   :  { %976 = vmatprep.subr.mxu0 %v422_v27  ;;  %938 = vmatpush2.msra.mxu1 %v357_v28  ;;  %v1078_v27 = vld [vmem:[%s2822_s3 + $0x1a8] sm:$0xff] }
  0xcc   :  { %977 = vmatpush1.msra.mxu0 %v421_v29  ;;  %939 = vmatprep.subr.mxu1 %v354_v30  ;;  %v1062_v28 = vld [vmem:[%s2822_s3 + $0x128] sm:$0xff]  ;;  %v1077_v29 = vld [vmem:[%s2822_s3 + $0x1a0] sm:$0xff] }
  0xcd   :  { %978 = vmatprep.subr.mxu0 %v418_v31  ;;  %940 = vmatpush2.msra.mxu1 %v353_v32  ;;  %v1061_v30 = vld [vmem:[%s2822_s3 + $0x120] sm:$0xff]  ;;  %v1076_v31 = vld [vmem:[%s2822_s3 + $0x198] sm:$0xff] }
  0xce   :  { %979 = vmatpush1.msra.mxu0 %v417_v33  ;;  %941 = vmatprep.subr.mxu1 %v350_v34  ;;  %v1060_v32 = vld [vmem:[%s2822_s3 + $0x118] sm:$0xff]  ;;  %v1075_v33 = vld [vmem:[%s2822_s3 + $0x190] sm:$0xff] }
  0xcf   :  { %980 = vmatprep.subr.mxu0 %v414_v35  ;;  %942 = vmatpush2.msra.mxu1 %v349_v63  ;;  %v1059_v34 = vld [vmem:[%s2822_s3 + $0x110] sm:$0xff]  ;;  %v1074_v35 = vld [vmem:[%s2822_s3 + $0x188] sm:$0xff] }
  0xd0   :  { %943 = vmatprep.mubr.f32.mxu1 %v2160_v10  ;;  %981 = vmatpush1.msra.mxu0 %v413_v36  ;;  %v1337_v10 = vld [vmem:[%s2821_s0 + $0x30] sm:$0xff]  ;;  %v1058_v63 = vld [vmem:[%s2822_s3 + $0x108] sm:$0xff]  ;;  %v1073_v36 = vld [vmem:[%s2822_s3 + $0x180] sm:$0xff] }
  0xd1   :  { %1014 = vmatprep.mubr.f32.mxu0 %v1338_v25  ;;  %944 = vmatmul.mubr.f32.vlgmr.msra.gmra.mxu1 %v2168_v12  ;;  %v1088_v25 = vld [vmem:[%s2822_s3 + $0x1f8] sm:$0xff]  ;;  %v1039_v12 = vld [vmem:[%s2822_s3 + $0x70] sm:$0xff] }
  0xd2   :  { %1258 = vmatmul.mubr.msk.f32.vlgmr.msra.gmra.mxu0 %vm449_vm0, %v1337_v10  ;;  %1260 = vmatprep.subr.mxu0 %v1056_v2  ;;  %v1057_v2 = vld [vmem:[%s2822_s3 + $0x100] sm:$0xff] }
  0xd3   :  { %1295 = vmatprep.subr.mxu1 %v1088_v25  ;;  %1261 = vmatpush3.msra.mxu0 %v1040_v37  ;;  %v429_v37 = vlaneseq  ;;  %v427_v25 = vld [vmem:[%s2823_s2] sm:$0xf] }
  0xd4   :  { %1296 = vmatpush3.msra.mxu1 %v1072_v39  ;;  %1262 = vmatprep.subr.mxu0 %v1055_v38 }
  0xd5   :  { %1297 = vmatprep.subr.mxu1 %v1087_v40  ;;  %1263 = vmatpush3.msra.mxu0 %v1039_v12  ;;  %v430_v38 = vshrl.u32 %v429_v37, 7 }
  0xd6   :  { %1298 = vmatpush3.msra.mxu1 %v1071_v41  ;;  %1264 = vmatprep.subr.mxu0 %v1054_v42 }
  0xd7   :  { %1299 = vmatprep.subr.mxu1 %v1086_v43  ;;  %1265 = vmatpush3.msra.mxu0 %v1038_v44  ;;  %v431_v10 = vsub.s32 0, %v430_v38  ;;  %v435_v39 = vsub.s32 1, %v430_v38 }
  0xd8   :  { %1300 = vmatpush3.msra.mxu1 %v1070_v45  ;;  %1266 = vmatprep.subr.mxu0 %v1053_v46 }
  0xd9   :  { %1301 = vmatprep.subr.mxu1 %v1085_v47  ;;  %1267 = vmatpush3.msra.mxu0 %v1037_v48  ;;  %v432_v12 = vrot.slane %v427_v25, %v431_v10  ;;  %v436_v41 = vrot.slane %v427_v25, %v435_v39 }
  0xda   :  { %1302 = vmatpush3.msra.mxu1 %v1069_v49  ;;  %1268 = vmatprep.subr.mxu0 %v1052_v50 }
  0xdb   :  { %1303 = vmatprep.subr.mxu1 %v1084_v51  ;;  %1269 = vmatpush3.msra.mxu0 %v1036_v52 }
  0xdc   :  { %1304 = vmatpush3.msra.mxu1 %v1068_v53  ;;  %1270 = vmatprep.subr.mxu0 %v1051_v54 }
  0xdd   :  { %1305 = vmatprep.subr.mxu1 %v1083_v55  ;;  %1271 = vmatpush3.msra.mxu0 %v1035_v56 }
  0xde   :  { %1306 = vmatpush3.msra.mxu1 %v1067_v57  ;;  %1272 = vmatprep.subr.mxu0 %v1050_v58 }
  0xdf   :  { %1307 = vmatprep.subr.mxu1 %v1082_v59  ;;  %1273 = vmatpush3.msra.mxu0 %v1034_v60  ;;  %v439_v59 = vsub.s32 2, %v430_v38  ;;  %v443_v60 = vsub.s32 3, %v430_v38 }
  0xe0   :  { %1308 = vmatpush3.msra.mxu1 %v1066_v61  ;;  %1274 = vmatprep.subr.mxu0 %v1049_v62 }
  0xe1   :  { %1275 = vmatpush3.msra.mxu0 %v1033_v0  ;;  %1309 = vmatprep.subr.mxu1 %v1081_v20  ;;  %v440_v62 = vrot.slane %v427_v25, %v439_v59 }
  0xe2   :  { %1276 = vmatprep.subr.mxu0 %v1048_v1  ;;  %1310 = vmatpush3.msra.mxu1 %v1065_v21  ;;  %v444_v1 = vrot.slane %v427_v25, %v443_v60 }
  0xe3   :  { %1277 = vmatpush3.msra.mxu0 %v1032_v3  ;;  %1311 = vmatprep.subr.mxu1 %v1080_v22 }
  0xe4   :  { %1278 = vmatprep.subr.mxu0 %v1047_v4  ;;  %1312 = vmatpush3.msra.mxu1 %v1064_v23 }
  0xe5   :  { %1279 = vmatpush3.msra.mxu0 %v1031_v5  ;;  %1313 = vmatprep.subr.mxu1 %v1079_v24  ;;  %v1259_v24 = vld [vmem:[%s2824_s4] ss:$0 sm:$0xff] }
  0xe6   :  { %1280 = vmatprep.subr.mxu0 %v1046_v6  ;;  %1314 = vmatpush3.msra.mxu1 %v1063_v26 }
  0xe7   :  { %1281 = vmatpush3.msra.mxu0 %v1030_v7  ;;  %1315 = vmatprep.subr.mxu1 %v1078_v27  ;;  %v1237_v27 = vand.u32 127, %v429_v37 }
  0xe8   :  { %1282 = vmatprep.subr.mxu0 %v1045_v8  ;;  %1316 = vmatpush3.msra.mxu1 %v1062_v28 }
  0xe9   :  { %1283 = vmatpush3.msra.mxu0 %v1029_v9  ;;  %1317 = vmatprep.subr.mxu1 %v1077_v29  ;;  %vm1238_vm1 = vcmp.lt.s32.totalorder %v1237_v27, 10 }
  0xea   :  { %1284 = vmatprep.subr.mxu0 %v1044_v11  ;;  %1318 = vmatpush3.msra.mxu1 %v1061_v30 }
  0xeb   :  { %1285 = vmatpush3.msra.mxu0 %v1028_v13  ;;  %1319 = vmatprep.subr.mxu1 %v1076_v31 }
  0xec   :  { %1286 = vmatprep.subr.mxu0 %v1043_v14  ;;  %1320 = vmatpush3.msra.mxu1 %v1060_v32 }
  0xed   :  { %1287 = vmatpush3.msra.mxu0 %v1027_v15  ;;  %1321 = vmatprep.subr.mxu1 %v1075_v33 }
  0xee   :  { %1288 = vmatprep.subr.mxu0 %v1042_v16  ;;  %1322 = vmatpush3.msra.mxu1 %v1059_v34 }
  0xef   :  { %1289 = vmatpush3.msra.mxu0 %v1026_v17  ;;  %1323 = vmatprep.subr.mxu1 %v1074_v35 }
  0xf0   :  { %1290 = vmatprep.subr.mxu0 %v1041_v18  ;;  %1324 = vmatpush3.msra.mxu1 %v1058_v63 }
  0xf1   :  { %1291 = vmatpush3.msra.mxu0 %v1025_v19  ;;  %1325 = vmatprep.subr.mxu1 %v1073_v36 }
  0xf2   :  { %1326 = vmatpush3.msra.mxu1 %v1057_v2 }
 0x103   :  { %v519_v40 = vpop.f32.mrf.mxu0 }
 0x104   :  { %v590_v42 = vpop.f32.mrf.mxu1  ;;  %v520_v44 = vadd.f32 %v519_v40, %v432_v12 }
 0x105   :  { %v521_v43 = vpop.f32.mrf.mxu0 }
 0x106   :  { %v522_v45 = vadd.f32 %v521_v43, %v436_v41  ;;  %v592_v46 = vpop.f32.mrf.mxu1  ;;  %v591_v47 = vadd.f32 %v590_v42, %v520_v44 }
 0x108   :  { %v593_v50 = vadd.f32 %v592_v46, %v522_v45 }
 0x10d   :  { %v732_v48 = vpop.f32.mrf.mxu1 }
 0x10f   :  { %v734_v54 = vpop.f32.mrf.mxu1 }
 0x146   :  { %v661_v49 = vpop.f32.mrf.mxu0 }
 0x147   :  { %v662_v51 = vadd.f32 %v661_v49, %v591_v47 }
 0x148   :  { %v663_v52 = vpop.f32.mrf.mxu0 }
 0x149   :  { %v664_v53 = vadd.f32 %v663_v52, %v593_v50  ;;  %v733_v55 = vadd.f32 %v732_v48, %v662_v51 }
 0x14b   :  { %v735_v56 = vadd.f32 %v734_v54, %v664_v53  ;;  %v1021_v58 = vmax.f32 %v733_v55, 0.0 }
 0x14d   :  { %v1022_v57 = vmax.f32 %v735_v56, 0.0 }
 0x14f   :  { %1160 = vmatprep.mubr.f32.mxu0 %v1022_v57  ;;  %v803_v61 = vpop.f32.mrf.mxu1 }
 0x150   :  { %1161 = vmatmul.mubr.f32.vlgmr.msra.gmra.mxu0 %v1021_v58  ;;  %v804_v4 = vadd.f32 %v803_v61, %v440_v62 }
 0x151   :  { %v805_v3 = vpop.f32.mrf.mxu1 }
 0x152   :  { %v806_v6 = vadd.f32 %v805_v3, %v444_v1 }
 0x188   :  { %v874_v0 = vpop.f32.mrf.mxu0 }
 0x189   :  { %v875_v7 = vadd.f32 %v874_v0, %v804_v4 }
 0x18a   :  { %v876_v5 = vpop.f32.mrf.mxu0 }
 0x18b   :  { %v877_v11 = vadd.f32 %v876_v5, %v806_v6 }
 0x191   :  { %v945_v8 = vpop.f32.mrf.mxu1 }
 0x192   :  { %v1016_v9 = vpop.f32.mrf.mxu0  ;;  %v946_v13 = vadd.f32 %v945_v8, %v875_v7 }
 0x193   :  { %v947_v14 = vpop.f32.mrf.mxu1 }
 0x194   :  { %v948_v15 = vadd.f32 %v947_v14, %v877_v11  ;;  %v1017_v16 = vadd.f32 %v1016_v9, %v946_v13  ;;  %v1018_v17 = vpop.f32.mrf.mxu0 }
 0x196   :  { %v1019_v18 = vadd.f32 %v1018_v17, %v948_v15  ;;  %v1023_v20 = vmax.f32 %v1017_v16, 0.0 }
 0x198   :  { %v1024_v19 = vmax.f32 %v1019_v18, 0.0 }
 0x19a   :  { %1230 = vmatprep.mubr.f32.mxu1 %v1024_v19 }
 0x19b   :  { %1231 = vmatmul.mubr.f32.vlgmr.msra.gmra.mxu1 %v1023_v20 }
 0x210   :  { %v1292_v21 = vpop.f32.mrf.mxu0 }
 0x212   :  { %v1293_v22 = vpop.f32.mrf.mxu0 }
 0x213   :  { %v1294_v23 = vadd.f32 %v1293_v22, %v1292_v21 }
 0x215   :  { %v1163_v29 = vadd.f32 %v1294_v23, %v1259_v24 }
 0x25b   :  { %v1327_v26 = vpop.f32.mrf.mxu1 }
 0x25d   :  { %v1328_v28 = vpop.f32.mrf.mxu1 }
 0x25e   :  { %v1329_v30 = vadd.f32 %v1328_v28, %v1327_v26 }
 0x260   :  { %v1233_v31 = vadd.f32 %v1329_v30, %v1163_v29 }
 0x262   :  { %v1239_v32 = vsel %vm1238_vm1, %v1233_v31, -1e+30 }
 0x263   :  { %1240 = vmax.xlane.f32.xlu0 %v1239_v32 }
 0x2ec   :  { %v1241_v33 = vpop.xlane.xlu0 %1240 }
 0x2ed   :  { %v1242_v34 = vsub.f32 %v1239_v32, %v1241_v33 }
 0x2ef   :  { %v1243_v35 = vmul.f32 1.442695, %v1242_v34 }
 0x2f1   :  { %1331 = vpow2.f32 %v1243_v35 }
 0x2fe   :  { %v1332_v63 = vpop.eup %1331 }
 0x2ff   :  { %v1245_v36 = vsel %vm1238_vm1, %v1332_v63, 0.0 }
 0x300   :  { %1246 = vadd.xlane.f32.xlu0 %v1245_v36 }
 0x389   :  { %v1247_v2 = vpop.xlane.xlu0 %1246 }
 0x38a   :  { %1333 = vlog2.f32 %v1247_v2 }
 0x397   :  { %v1334_v38 = vpop.eup %1333 }
 0x398   :  { %v1249_v10 = vmul.f32 0.6931472, %v1334_v38 }
 0x39a   :  { %v1250_v25 = vadd.f32 %v1249_v10, %v1241_v33 }
 0x39c   :  { %v1251_v37 = vsub.f32 %v1233_v31, %v1250_v25 }
 0x39e   :  { %1252 = vst [vmem:[%s2825_s5] sm:$0xff] %v1251_v37 }

</bundles_post_ra>
